<compile_context>
chip_gen: v5e
topology: v5e:2x2
jax: 0.10.0
libtpu: 0.0.40
codegen_flags: <defaults>
</compile_context>

<pallas_src>
import functools

import jax
import jax.numpy as jnp
from jax.experimental import pallas as pl
from jax.experimental.pallas import tpu as pltpu

KH = KW = 5
PAD = 2
EPS = 1e-5
LANES = 128
MAX_ROWS_PER_STEP = 2048   # pooled-position rows per grid step (VMEM is ample)


def _conv_block_kernel(p_ref, w_ref, b_ref, s_ref, t_ref, o_ref, *, tm):
    """Fused 5x5 conv block: one im2col matmul over 4*tm rows (4 pooling
    quadrants x tm pooled positions) -> +bias -> ReLU -> per-channel affine
    (frozen BN; identity for block 2) -> 2x2 max-pool as a max over the four
    quadrant row-slices.  Channels are pre-padded to 128 lanes so the output
    store is a full-tile unmasked vst."""
    k = p_ref.shape[-1]
    patches = p_ref[...].reshape(4 * tm, k)      # merge leading dims only (tm % 8 == 0)
    y = jnp.dot(patches, w_ref[...], preferred_element_type=jnp.float32)
    y = jnp.maximum(y + b_ref[...], 0.0) * s_ref[...] + t_ref[...]
    o_ref[...] = jnp.maximum(jnp.maximum(y[:tm], y[tm:2 * tm]),
                             jnp.maximum(y[2 * tm:3 * tm], y[3 * tm:]))


def _linear_kernel(x_ref, w_ref, b_ref, o_ref):
    o_ref[...] = jnp.dot(x_ref[...], w_ref[...],
                         preferred_element_type=jnp.float32) + b_ref[...]


def _pad_lanes(a, width=LANES):
    return jnp.pad(a, ((0, 0), (0, width - a.shape[-1])))


def _pack_conv_weight(w_oihw):
    """OIHW (co, ci, 5, 5) -> 2-D (25*ci, 128) im2col weight, zero-padded lanes."""
    co, ci, kh, kw = w_oihw.shape
    w2d = jnp.transpose(w_oihw, (2, 3, 1, 0)).reshape(kh * kw * ci, co)
    return _pad_lanes(w2d)


def _im2col_pool_quadrants(x_nhwc):
    """(B, H, W, C) conv input -> (4, B*(H//2)*(W//2), 25*C) im2col patches,
    one leading slice per 2x2 max-pool quadrant.  Pure XLA glue on KB tensors."""
    b, h, w, c = x_nhwc.shape
    hp, wp = h // 2, w // 2
    xpad = jnp.pad(x_nhwc, ((0, 0), (PAD, PAD), (PAD, PAD), (0, 0)))
    cols = jnp.concatenate(
        [xpad[:, i:i + h, j:j + w, :] for i in range(KH) for j in range(KW)],
        axis=-1)                                         # (B, H, W, 25*C)
    quads = [cols[:, p::2, q::2, :].reshape(b * hp * wp, KH * KW * c)
             for p in range(2) for q in range(2)]
    return jnp.stack(quads, axis=0)                      # (4, M, 25*C)


def _row_tile(m):
    tm = min(m, MAX_ROWS_PER_STEP)
    while m % tm or tm % 8:                              # m is a multiple of 64
        tm -= 8
    return tm


def _conv_block(patches, w2d, bias, scale, shift):
    """patches: (4, M, K); w2d: (K, 128); bias/scale/shift: (1, 128).
    Returns pooled feature rows (M, 128) with M = B*Hp*Wp (row = (b, i, j))."""
    _, m, k = patches.shape
    tm = _row_tile(m)
    kern = functools.partial(_conv_block_kernel, tm=tm)
    return pl.pallas_call(
        kern,
        out_shape=jax.ShapeDtypeStruct((m, LANES), jnp.float32),
        grid=(m // tm,),
        in_specs=[pl.BlockSpec((4, tm, k), lambda i: (0, i, 0)),
                  pl.BlockSpec((k, LANES), lambda i: (0, 0)),
                  pl.BlockSpec((1, LANES), lambda i: (0, 0)),
                  pl.BlockSpec((1, LANES), lambda i: (0, 0)),
                  pl.BlockSpec((1, LANES), lambda i: (0, 0))],
        out_specs=pl.BlockSpec((tm, LANES), lambda i: (i, 0)),
        compiler_params=pltpu.CompilerParams(
            dimension_semantics=("parallel",)),          # independent row tiles
    )(patches, w2d, bias, scale, shift)


def smallcnn_multitask_forward(x_nchw, params):
    b = x_nchw.shape[0]
    x = jnp.transpose(x_nchw, (0, 2, 3, 1)).astype(jnp.float32)      # NHWC

    # block 1: conv1 -> ReLU -> frozen bn1 (running stats) -> max_pool2d(2)
    scale1 = params['bn1_gamma'] / jnp.sqrt(params['bn1_var'] + EPS)
    shift1 = params['bn1_beta'] - params['bn1_mean'] * scale1
    c1 = params['conv1_w'].shape[0]
    y1 = _conv_block(_im2col_pool_quadrants(x),
                     _pack_conv_weight(params['conv1_w']),
                     _pad_lanes(params['conv1_b'][None, :]),
                     _pad_lanes(scale1[None, :]),
                     _pad_lanes(shift1[None, :]))
    y1 = y1[:, :c1].reshape(b, 16, 16, c1)

    # block 2: conv2 -> ReLU -> max_pool2d(2)  (identity affine in the kernel)
    c2 = params['conv2_w'].shape[0]
    y2 = _conv_block(_im2col_pool_quadrants(y1),
                     _pack_conv_weight(params['conv2_w']),
                     _pad_lanes(params['conv2_b'][None, :]),
                     jnp.ones((1, LANES), jnp.float32),
                     jnp.zeros((1, LANES), jnp.float32))
    feat = y2[:, :c2].reshape(b, 8 * 8 * c2)             # HWC-flattened, no transpose

    # classifiers[task_id = 0]: permute weight rows at trace time so feat stays
    # in HWC order (torch flattens CHW); pad the N dim to 128 lanes.
    wc = params['cls_w'].reshape(10, c2, 8, 8)
    wc = jnp.transpose(wc, (2, 3, 1, 0)).reshape(8 * 8 * c2, 10)
    wc = _pad_lanes(wc)                                  # (768, 128)
    bc = _pad_lanes(params['cls_b'][None, :])            # (1, 128)
    out = pl.pallas_call(
        _linear_kernel,
        out_shape=jax.ShapeDtypeStruct((b, LANES), jnp.float32),
        grid=(1,),
        in_specs=[pl.BlockSpec((b, 8 * 8 * c2), lambda i: (0, 0)),
                  pl.BlockSpec((8 * 8 * c2, LANES), lambda i: (0, 0)),
                  pl.BlockSpec((1, LANES), lambda i: (0, 0))],
        out_specs=pl.BlockSpec((b, LANES), lambda i: (0, 0)),
    )(feat, wc, bc)
    return out[:, :10]


def init_params(key):
    ks = jax.random.split(key, 10)
    return {
        'conv1_w': 0.1 * jax.random.normal(ks[0], (6, 3, 5, 5), jnp.float32),
        'conv1_b': 0.1 * jax.random.normal(ks[1], (6,), jnp.float32),
        'bn1_gamma': 1.0 + 0.1 * jax.random.normal(ks[2], (6,), jnp.float32),
        'bn1_beta': 0.1 * jax.random.normal(ks[3], (6,), jnp.float32),
        'bn1_mean': 0.1 * jax.random.normal(ks[4], (6,), jnp.float32),
        'bn1_var': jnp.abs(jax.random.normal(ks[5], (6,), jnp.float32)) + 0.5,
        'conv2_w': 0.1 * jax.random.normal(ks[6], (12, 6, 5, 5), jnp.float32),
        'conv2_b': 0.1 * jax.random.normal(ks[7], (12,), jnp.float32),
        'cls_w': 0.05 * jax.random.normal(ks[8], (10, 12 * 8 * 8), jnp.float32),
        'cls_b': 0.05 * jax.random.normal(ks[9], (10,), jnp.float32),
    }


def reference_forward(x_nchw, params):
    """Pure-JAX reference mirroring the PyTorch forward (NCHW) for validation."""
    prec = jax.lax.Precision.HIGHEST
    y = jax.lax.conv_general_dilated(
        x_nchw, params['conv1_w'], (1, 1), ((2, 2), (2, 2)),
        dimension_numbers=('NCHW', 'OIHW', 'NCHW'), precision=prec)
    y = jnp.maximum(y + params['conv1_b'][None, :, None, None], 0.0)
    scale = params['bn1_gamma'] / jnp.sqrt(params['bn1_var'] + EPS)
    shift = params['bn1_beta'] - params['bn1_mean'] * scale
    y = y * scale[None, :, None, None] + shift[None, :, None, None]
    y = jax.lax.reduce_window(y, -jnp.inf, jax.lax.max,
                              (1, 1, 2, 2), (1, 1, 2, 2), 'VALID')
    y = jax.lax.conv_general_dilated(
        y, params['conv2_w'], (1, 1), ((2, 2), (2, 2)),
        dimension_numbers=('NCHW', 'OIHW', 'NCHW'), precision=prec)
    y = jnp.maximum(y + params['conv2_b'][None, :, None, None], 0.0)
    y = jax.lax.reduce_window(y, -jnp.inf, jax.lax.max,
                              (1, 1, 2, 2), (1, 1, 2, 2), 'VALID')
    feat = y.reshape(y.shape[0], -1)
    return feat @ params['cls_w'].T + params['cls_b'][None, :]


if __name__ == "__main__":
    key = jax.random.PRNGKey(0)
    kx, kp = jax.random.split(key)
    # CIFAR-sized input is required by the hard-coded x.view(-1, 12*8*8).
    x = jax.random.normal(kx, (2, 3, 32, 32), jnp.float32)
    params = init_params(kp)

    out = jax.jit(smallcnn_multitask_forward)(x, params)
    out = jax.block_until_ready(out)
    assert out.shape == (2, 10), out.shape

    ref = reference_forward(x, params)
    assert jnp.allclose(out, ref, rtol=1e-3, atol=1e-3), \
        float(jnp.max(jnp.abs(out - ref)))
    print("KERNEL_OK")
</pallas_src>

<mosaic_0001>
module attributes {stable_mosaic.version = 11 : i64} {
  func.func @_conv_block_kernel(%arg0: i32, %arg1: memref<4x512x75xf32, #tpu.memory_space<vmem>>, %arg2: memref<75x128xf32, #tpu.memory_space<vmem>>, %arg3: memref<1x128xf32, #tpu.memory_space<vmem>>, %arg4: memref<1x128xf32, #tpu.memory_space<vmem>>, %arg5: memref<1x128xf32, #tpu.memory_space<vmem>>, %arg6: memref<512x128xf32, #tpu.memory_space<vmem>>) attributes {dimension_semantics = [#tpu.dimension_semantics<parallel>], iteration_bounds = array<i64: 1>, scalar_prefetch = 0 : i64, scratch_operands = 0 : i64, tpu.core_type = #tpu.core_type<tc>, window_params = [{transform_indices = @transform_0, window_bounds = array<i64: 4, 512, 75>}, {pipeline_mode = #tpu.pipeline_mode<synchronous>, transform_indices = @transform_1, window_bounds = array<i64: 75, 128>}, {pipeline_mode = #tpu.pipeline_mode<synchronous>, transform_indices = @transform_2, window_bounds = array<i64: 1, 128>}, {pipeline_mode = #tpu.pipeline_mode<synchronous>, transform_indices = @transform_3, window_bounds = array<i64: 1, 128>}, {pipeline_mode = #tpu.pipeline_mode<synchronous>, transform_indices = @transform_4, window_bounds = array<i64: 1, 128>}, {transform_indices = @transform_5, window_bounds = array<i64: 512, 128>}]} {
    %c0 = arith.constant 0 : index
    %c0_0 = arith.constant 0 : index
    %c0_1 = arith.constant 0 : index
    %0 = vector.load %arg1[%c0, %c0_0, %c0_1] : memref<4x512x75xf32, #tpu.memory_space<vmem>>, vector<4x512x75xf32>
    %1 = vector.shape_cast %0 : vector<4x512x75xf32> to vector<2048x75xf32>
    %c0_2 = arith.constant 0 : index
    %c0_3 = arith.constant 0 : index
    %2 = vector.load %arg2[%c0_2, %c0_3] : memref<75x128xf32, #tpu.memory_space<vmem>>, vector<75x128xf32>
    %cst = arith.constant dense<0.000000e+00> : vector<2048x128xf32>
    %3 = tpu.matmul %1, %2, %cst {dimension_numbers = #tpu.dot_dimension_numbers<[1], [0], [0], [1], [0, 0, 1, 1], [], []>} : vector<2048x75xf32>, vector<75x128xf32>, vector<2048x128xf32> -> vector<2048x128xf32>
    %c0_4 = arith.constant 0 : index
    %c0_5 = arith.constant 0 : index
    %4 = vector.load %arg3[%c0_4, %c0_5] : memref<1x128xf32, #tpu.memory_space<vmem>>, vector<1x128xf32>
    %5 = vector.broadcast %4 : vector<1x128xf32> to vector<2048x128xf32>
    %6 = arith.addf %3, %5 : vector<2048x128xf32>
    %cst_6 = arith.constant 0.000000e+00 : f32
    %7 = vector.broadcast %cst_6 : f32 to vector<2048x128xf32>
    %8 = arith.maximumf %6, %7 : vector<2048x128xf32>
    %c0_7 = arith.constant 0 : index
    %c0_8 = arith.constant 0 : index
    %9 = vector.load %arg4[%c0_7, %c0_8] : memref<1x128xf32, #tpu.memory_space<vmem>>, vector<1x128xf32>
    %10 = vector.broadcast %9 : vector<1x128xf32> to vector<2048x128xf32>
    %11 = arith.mulf %8, %10 : vector<2048x128xf32>
    %c0_9 = arith.constant 0 : index
    %c0_10 = arith.constant 0 : index
    %12 = vector.load %arg5[%c0_9, %c0_10] : memref<1x128xf32, #tpu.memory_space<vmem>>, vector<1x128xf32>
    %13 = vector.broadcast %12 : vector<1x128xf32> to vector<2048x128xf32>
    %14 = arith.addf %11, %13 : vector<2048x128xf32>
    %15 = vector.extract_strided_slice %14 {offsets = [0, 0], sizes = [512, 128], strides = [1, 1]} : vector<2048x128xf32> to vector<512x128xf32>
    %16 = vector.extract_strided_slice %14 {offsets = [512, 0], sizes = [512, 128], strides = [1, 1]} : vector<2048x128xf32> to vector<512x128xf32>
    %17 = arith.maximumf %15, %16 : vector<512x128xf32>
    %18 = vector.extract_strided_slice %14 {offsets = [1024, 0], sizes = [512, 128], strides = [1, 1]} : vector<2048x128xf32> to vector<512x128xf32>
    %19 = vector.extract_strided_slice %14 {offsets = [1536, 0], sizes = [512, 128], strides = [1, 1]} : vector<2048x128xf32> to vector<512x128xf32>
    %20 = arith.maximumf %18, %19 : vector<512x128xf32>
    %21 = arith.maximumf %17, %20 : vector<512x128xf32>
    %c0_11 = arith.constant 0 : index
    %c0_12 = arith.constant 0 : index
    %22 = vector.load %arg6[%c0_11, %c0_12] : memref<512x128xf32, #tpu.memory_space<vmem>>, vector<512x128xf32>
    tpu.vector_store %arg6[%c0_11, %c0_12], %21 {strides = array<i32>} : memref<512x128xf32, #tpu.memory_space<vmem>>, vector<512x128xf32>,
    return
  }
  func.func @transform_0(%arg0: i32) -> (i32, i32, i32) {
    %c0_i32 = arith.constant 0 : i32
    %c0_i32_0 = arith.constant 0 : i32
    %c0_i32_1 = arith.constant 0 : i32
    return %c0_i32, %arg0, %c0_i32_0 : i32, i32, i32
  }
  func.func @transform_1(%arg0: i32) -> (i32, i32) {
    %c0_i32 = arith.constant 0 : i32
    %c0_i32_0 = arith.constant 0 : i32
    %c0_i32_1 = arith.constant 0 : i32
    return %c0_i32, %c0_i32_0 : i32, i32
  }
  func.func @transform_2(%arg0: i32) -> (i32, i32) {
    %c0_i32 = arith.constant 0 : i32
    %c0_i32_0 = arith.constant 0 : i32
    %c0_i32_1 = arith.constant 0 : i32
    return %c0_i32, %c0_i32_0 : i32, i32
  }
  func.func @transform_3(%arg0: i32) -> (i32, i32) {
    %c0_i32 = arith.constant 0 : i32
    %c0_i32_0 = arith.constant 0 : i32
    %c0_i32_1 = arith.constant 0 : i32
    return %c0_i32, %c0_i32_0 : i32, i32
  }
  func.func @transform_4(%arg0: i32) -> (i32, i32) {
    %c0_i32 = arith.constant 0 : i32
    %c0_i32_0 = arith.constant 0 : i32
    %c0_i32_1 = arith.constant 0 : i32
    return %c0_i32, %c0_i32_0 : i32, i32
  }
  func.func @transform_5(%arg0: i32) -> (i32, i32) {
    %c0_i32 = arith.constant 0 : i32
    %c0_i32_0 = arith.constant 0 : i32
    return %arg0, %c0_i32 : i32, i32
  }
}

module attributes {stable_mosaic.version = 11 : i64} {
  func.func @_conv_block_kernel(%arg0: i32, %arg1: memref<4x128x150xf32, #tpu.memory_space<vmem>>, %arg2: memref<150x128xf32, #tpu.memory_space<vmem>>, %arg3: memref<1x128xf32, #tpu.memory_space<vmem>>, %arg4: memref<1x128xf32, #tpu.memory_space<vmem>>, %arg5: memref<1x128xf32, #tpu.memory_space<vmem>>, %arg6: memref<128x128xf32, #tpu.memory_space<vmem>>) attributes {dimension_semantics = [#tpu.dimension_semantics<parallel>], iteration_bounds = array<i64: 1>, scalar_prefetch = 0 : i64, scratch_operands = 0 : i64, tpu.core_type = #tpu.core_type<tc>, window_params = [{transform_indices = @transform_0, window_bounds = array<i64: 4, 128, 150>}, {pipeline_mode = #tpu.pipeline_mode<synchronous>, transform_indices = @transform_1, window_bounds = array<i64: 150, 128>}, {pipeline_mode = #tpu.pipeline_mode<synchronous>, transform_indices = @transform_2, window_bounds = array<i64: 1, 128>}, {pipeline_mode = #tpu.pipeline_mode<synchronous>, transform_indices = @transform_3, window_bounds = array<i64: 1, 128>}, {pipeline_mode = #tpu.pipeline_mode<synchronous>, transform_indices = @transform_4, window_bounds = array<i64: 1, 128>}, {transform_indices = @transform_5, window_bounds = array<i64: 128, 128>}]} {
    %c0 = arith.constant 0 : index
    %c0_0 = arith.constant 0 : index
    %c0_1 = arith.constant 0 : index
    %0 = vector.load %arg1[%c0, %c0_0, %c0_1] : memref<4x128x150xf32, #tpu.memory_space<vmem>>, vector<4x128x150xf32>
    %1 = vector.shape_cast %0 : vector<4x128x150xf32> to vector<512x150xf32>
    %c0_2 = arith.constant 0 : index
    %c0_3 = arith.constant 0 : index
    %2 = vector.load %arg2[%c0_2, %c0_3] : memref<150x128xf32, #tpu.memory_space<vmem>>, vector<150x128xf32>
    %cst = arith.constant dense<0.000000e+00> : vector<512x128xf32>
    %3 = tpu.matmul %1, %2, %cst {dimension_numbers = #tpu.dot_dimension_numbers<[1], [0], [0], [1], [0, 0, 1, 1], [], []>} : vector<512x150xf32>, vector<150x128xf32>, vector<512x128xf32> -> vector<512x128xf32>
    %c0_4 = arith.constant 0 : index
    %c0_5 = arith.constant 0 : index
    %4 = vector.load %arg3[%c0_4, %c0_5] : memref<1x128xf32, #tpu.memory_space<vmem>>, vector<1x128xf32>
    %5 = vector.broadcast %4 : vector<1x128xf32> to vector<512x128xf32>
    %6 = arith.addf %3, %5 : vector<512x128xf32>
    %cst_6 = arith.constant 0.000000e+00 : f32
    %7 = vector.broadcast %cst_6 : f32 to vector<512x128xf32>
    %8 = arith.maximumf %6, %7 : vector<512x128xf32>
    %c0_7 = arith.constant 0 : index
    %c0_8 = arith.constant 0 : index
    %9 = vector.load %arg4[%c0_7, %c0_8] : memref<1x128xf32, #tpu.memory_space<vmem>>, vector<1x128xf32>
    %10 = vector.broadcast %9 : vector<1x128xf32> to vector<512x128xf32>
    %11 = arith.mulf %8, %10 : vector<512x128xf32>
    %c0_9 = arith.constant 0 : index
    %c0_10 = arith.constant 0 : index
    %12 = vector.load %arg5[%c0_9, %c0_10] : memref<1x128xf32, #tpu.memory_space<vmem>>, vector<1x128xf32>
    %13 = vector.broadcast %12 : vector<1x128xf32> to vector<512x128xf32>
    %14 = arith.addf %11, %13 : vector<512x128xf32>
    %15 = vector.extract_strided_slice %14 {offsets = [0, 0], sizes = [128, 128], strides = [1, 1]} : vector<512x128xf32> to vector<128x128xf32>
    %16 = vector.extract_strided_slice %14 {offsets = [128, 0], sizes = [128, 128], strides = [1, 1]} : vector<512x128xf32> to vector<128x128xf32>
    %17 = arith.maximumf %15, %16 : vector<128x128xf32>
    %18 = vector.extract_strided_slice %14 {offsets = [256, 0], sizes = [128, 128], strides = [1, 1]} : vector<512x128xf32> to vector<128x128xf32>
    %19 = vector.extract_strided_slice %14 {offsets = [384, 0], sizes = [128, 128], strides = [1, 1]} : vector<512x128xf32> to vector<128x128xf32>
    %20 = arith.maximumf %18, %19 : vector<128x128xf32>
    %21 = arith.maximumf %17, %20 : vector<128x128xf32>
    %c0_11 = arith.constant 0 : index
    %c0_12 = arith.constant 0 : index
    %22 = vector.load %arg6[%c0_11, %c0_12] : memref<128x128xf32, #tpu.memory_space<vmem>>, vector<128x128xf32>
    tpu.vector_store %arg6[%c0_11, %c0_12], %21 {strides = array<i32>} : memref<128x128xf32, #tpu.memory_space<vmem>>, vector<128x128xf32>,
    return
  }
  func.func @transform_0(%arg0: i32) -> (i32, i32, i32) {
    %c0_i32 = arith.constant 0 : i32
    %c0_i32_0 = arith.constant 0 : i32
    %c0_i32_1 = arith.constant 0 : i32
    return %c0_i32, %arg0, %c0_i32_0 : i32, i32, i32
  }
  func.func @transform_1(%arg0: i32) -> (i32, i32) {
    %c0_i32 = arith.constant 0 : i32
    %c0_i32_0 = arith.constant 0 : i32
    %c0_i32_1 = arith.constant 0 : i32
    return %c0_i32, %c0_i32_0 : i32, i32
  }
  func.func @transform_2(%arg0: i32) -> (i32, i32) {
    %c0_i32 = arith.constant 0 : i32
    %c0_i32_0 = arith.constant 0 : i32
    %c0_i32_1 = arith.constant 0 : i32
    return %c0_i32, %c0_i32_0 : i32, i32
  }
  func.func @transform_3(%arg0: i32) -> (i32, i32) {
    %c0_i32 = arith.constant 0 : i32
    %c0_i32_0 = arith.constant 0 : i32
    %c0_i32_1 = arith.constant 0 : i32
    return %c0_i32, %c0_i32_0 : i32, i32
  }
  func.func @transform_4(%arg0: i32) -> (i32, i32) {
    %c0_i32 = arith.constant 0 : i32
    %c0_i32_0 = arith.constant 0 : i32
    %c0_i32_1 = arith.constant 0 : i32
    return %c0_i32, %c0_i32_0 : i32, i32
  }
  func.func @transform_5(%arg0: i32) -> (i32, i32) {
    %c0_i32 = arith.constant 0 : i32
    %c0_i32_0 = arith.constant 0 : i32
    return %arg0, %c0_i32 : i32, i32
  }
}

module attributes {stable_mosaic.version = 11 : i64} {
  func.func @_linear_kernel(%arg0: i32, %arg1: memref<2x768xf32, #tpu.memory_space<vmem>>, %arg2: memref<768x128xf32, #tpu.memory_space<vmem>>, %arg3: memref<1x128xf32, #tpu.memory_space<vmem>>, %arg4: memref<2x128xf32, #tpu.memory_space<vmem>>) attributes {dimension_semantics = [#tpu.dimension_semantics<arbitrary>], iteration_bounds = array<i64: 1>, scalar_prefetch = 0 : i64, scratch_operands = 0 : i64, tpu.core_type = #tpu.core_type<tc>, window_params = [{pipeline_mode = #tpu.pipeline_mode<synchronous>, transform_indices = @transform_0, window_bounds = array<i64: 2, 768>}, {pipeline_mode = #tpu.pipeline_mode<synchronous>, transform_indices = @transform_1, window_bounds = array<i64: 768, 128>}, {pipeline_mode = #tpu.pipeline_mode<synchronous>, transform_indices = @transform_2, window_bounds = array<i64: 1, 128>}, {pipeline_mode = #tpu.pipeline_mode<synchronous>, transform_indices = @transform_3, window_bounds = array<i64: 2, 128>}]} {
    %c0 = arith.constant 0 : index
    %c0_0 = arith.constant 0 : index
    %0 = vector.load %arg1[%c0, %c0_0] : memref<2x768xf32, #tpu.memory_space<vmem>>, vector<2x768xf32>
    %c0_1 = arith.constant 0 : index
    %c0_2 = arith.constant 0 : index
    %1 = vector.load %arg2[%c0_1, %c0_2] : memref<768x128xf32, #tpu.memory_space<vmem>>, vector<768x128xf32>
    %cst = arith.constant dense<0.000000e+00> : vector<2x128xf32>
    %2 = tpu.matmul %0, %1, %cst {dimension_numbers = #tpu.dot_dimension_numbers<[1], [0], [0], [1], [0, 0, 1, 1], [], []>} : vector<2x768xf32>, vector<768x128xf32>, vector<2x128xf32> -> vector<2x128xf32>
    %c0_3 = arith.constant 0 : index
    %c0_4 = arith.constant 0 : index
    %3 = vector.load %arg3[%c0_3, %c0_4] : memref<1x128xf32, #tpu.memory_space<vmem>>, vector<1x128xf32>
    %4 = vector.broadcast %3 : vector<1x128xf32> to vector<2x128xf32>
    %5 = arith.addf %2, %4 : vector<2x128xf32>
    %c0_5 = arith.constant 0 : index
    %c0_6 = arith.constant 0 : index
    %6 = vector.load %arg4[%c0_5, %c0_6] : memref<2x128xf32, #tpu.memory_space<vmem>>, vector<2x128xf32>
    tpu.vector_store %arg4[%c0_5, %c0_6], %5 {strides = array<i32>} : memref<2x128xf32, #tpu.memory_space<vmem>>, vector<2x128xf32>,
    return
  }
  func.func @transform_0(%arg0: i32) -> (i32, i32) {
    %c0_i32 = arith.constant 0 : i32
    %c0_i32_0 = arith.constant 0 : i32
    %c0_i32_1 = arith.constant 0 : i32
    return %c0_i32, %c0_i32_0 : i32, i32
  }
  func.func @transform_1(%arg0: i32) -> (i32, i32) {
    %c0_i32 = arith.constant 0 : i32
    %c0_i32_0 = arith.constant 0 : i32
    %c0_i32_1 = arith.constant 0 : i32
    return %c0_i32, %c0_i32_0 : i32, i32
  }
  func.func @transform_2(%arg0: i32) -> (i32, i32) {
    %c0_i32 = arith.constant 0 : i32
    %c0_i32_0 = arith.constant 0 : i32
    %c0_i32_1 = arith.constant 0 : i32
    return %c0_i32, %c0_i32_0 : i32, i32
  }
  func.func @transform_3(%arg0: i32) -> (i32, i32) {
    %c0_i32 = arith.constant 0 : i32
    %c0_i32_0 = arith.constant 0 : i32
    %c0_i32_1 = arith.constant 0 : i32
    return %c0_i32, %c0_i32_0 : i32, i32
  }
}

</mosaic_0001>

<bundles_post_ra>
// kernel: smallcnn_multitask_forward.3
= control target key start
LH: loop header
LB: loop body
LE: loop exit
PB: predicated region body
PF: predicated region fallthrough
CT: control target
= control target key end

     0   :  { %vm1059_vm0 = vcmask 1042432   ;;  %vm290_vm1 = vcmask 613376   ;;  %s5287_s1 = inlined_call_operand.vmem [shape: f32[75,128], index: 1, kind: input, shape index: {}]   ;;  %s5288_s0 = inlined_call_operand.vmem [shape: f32[4,512,75], index: 0, kind: input, shape index: {}]   ;;  %s5289_s2 = inlined_call_operand.vmem [shape: f32[1,128], index: 2, kind: input, shape index: {}]   ;;  %s5290_s3 = inlined_call_operand.vmem [shape: f32[1,128], index: 3, kind: input, shape index: {}]   ;;  %s5291_s4 = inlined_call_operand.vmem [shape: f32[1,128], index: 4, kind: input, shape index: {}]   ;;  %s5292_s5 = inlined_call_operand.vmem [shape: f32[512,128], index: 5, kind: output, shape index: {}]  }
   0x1   :  { %v285_v0 = vld [vmem:[%s5287_s1 + $0x48] sm:$0x7]  ;;  %v284_v1 = vld [vmem:[%s5287_s1 + $0x40] sm:$0xff]  ;;  %v283_v2 = vld [vmem:[%s5287_s1 + $0x38] sm:$0xff] }
   0x2   :  { %3142 = vmatpush.msk.msra.mxu2 %vm1059_vm0, %v285_v0  ;;  %3143 = vmatpush.msk.msra.mxu3 %vm1059_vm0, %v285_v0  ;;  %v282_v3 = vld [vmem:[%s5287_s1 + $0x30] sm:$0xff]  ;;  %v281_v4 = vld [vmem:[%s5287_s1 + $0x28] sm:$0xff]  ;;  %v280_v5 = vld [vmem:[%s5287_s1 + $0x20] sm:$0xff] }
   0x3   :  { %2884 = vmatpush.msk.msra.mxu0 %vm1059_vm0, %v285_v0  ;;  %3141 = vmatpush.msk.msra.mxu1 %vm1059_vm0, %v285_v0  ;;  %v279_v6 = vld [vmem:[%s5287_s1 + $0x18] sm:$0xff]  ;;  %v278_v7 = vld [vmem:[%s5287_s1 + $0x10] sm:$0xff]  ;;  %v277_v8 = vld [vmem:[%s5287_s1 + $0x8] sm:$0xff] }
   0x4   :  { %3145 = vmatpush.msra.mxu2 %v284_v1  ;;  %3146 = vmatpush.msra.mxu3 %v284_v1  ;;  %v276_v9 = vld [vmem:[%s5287_s1] sm:$0xff]  ;;  %v149_v14 = vld [vmem:[%s5288_s0 + $0x408] sm:$0xff]  ;;  %v150_v18 = vld [vmem:[%s5288_s0 + $0x410] sm:$0xff] }
   0x5   :  { %1070 = vmatpush.msra.mxu0 %v284_v1  ;;  %3144 = vmatpush.msra.mxu1 %v284_v1  ;;  %v148_v10 = vld [vmem:[%s5288_s0 + $0x400] sm:$0xff]  ;;  %v213_v15 = vld [vmem:[%s5288_s0 + $0x608] sm:$0xff]  ;;  %v214_v19 = vld [vmem:[%s5288_s0 + $0x610] sm:$0xff] }
   0x6   :  { %3148 = vmatpush.msra.mxu2 %v283_v2  ;;  %3149 = vmatpush.msra.mxu3 %v283_v2  ;;  %v212_v11 = vld [vmem:[%s5288_s0 + $0x600] sm:$0xff]  ;;  %v21_v16 = vld [vmem:[%s5288_s0 + $0x8] sm:$0xff]  ;;  %v22_v20 = vld [vmem:[%s5288_s0 + $0x10] sm:$0xff] }
   0x7   :  { %1071 = vmatpush.msra.mxu0 %v283_v2  ;;  %3147 = vmatpush.msra.mxu1 %v283_v2  ;;  %v20_v12 = vld [vmem:[%s5288_s0] sm:$0xff]  ;;  %v85_v17 = vld [vmem:[%s5288_s0 + $0x208] sm:$0xff]  ;;  %v86_v21 = vld [vmem:[%s5288_s0 + $0x210] sm:$0xff] }
   0x8   :  { %3151 = vmatpush.msra.mxu2 %v282_v3  ;;  %3152 = vmatpush.msra.mxu3 %v282_v3  ;;  %v84_v13 = vld [vmem:[%s5288_s0 + $0x200] sm:$0xff]  ;;  %v151_v22 = vld [vmem:[%s5288_s0 + $0x418] sm:$0xff]  ;;  %v153_v30 = vld [vmem:[%s5288_s0 + $0x428] sm:$0xff] }
   0x9   :  { %1072 = vmatpush.msra.mxu0 %v282_v3  ;;  %3150 = vmatpush.msra.mxu1 %v282_v3  ;;  %v215_v23 = vld [vmem:[%s5288_s0 + $0x618] sm:$0xff]  ;;  %v152_v26 = vld [vmem:[%s5288_s0 + $0x420] sm:$0xff]  ;;  %v217_v31 = vld [vmem:[%s5288_s0 + $0x628] sm:$0xff] }
   0xa   :  { %3154 = vmatpush.msra.mxu2 %v281_v4  ;;  %3155 = vmatpush.msra.mxu3 %v281_v4  ;;  %v23_v24 = vld [vmem:[%s5288_s0 + $0x18] sm:$0xff]  ;;  %v216_v27 = vld [vmem:[%s5288_s0 + $0x620] sm:$0xff]  ;;  %v25_v32 = vld [vmem:[%s5288_s0 + $0x28] sm:$0xff] }
   0xb   :  { %1073 = vmatpush.msra.mxu0 %v281_v4  ;;  %3153 = vmatpush.msra.mxu1 %v281_v4  ;;  %v87_v25 = vld [vmem:[%s5288_s0 + $0x218] sm:$0xff]  ;;  %v24_v28 = vld [vmem:[%s5288_s0 + $0x20] sm:$0xff]  ;;  %v89_v33 = vld [vmem:[%s5288_s0 + $0x228] sm:$0xff] }
   0xc   :  { %3157 = vmatpush.msra.mxu2 %v280_v5  ;;  %3158 = vmatpush.msra.mxu3 %v280_v5  ;;  %v88_v29 = vld [vmem:[%s5288_s0 + $0x220] sm:$0xff]  ;;  %v154_v34 = vld [vmem:[%s5288_s0 + $0x430] sm:$0xff]  ;;  %v155_v38 = vld [vmem:[%s5288_s0 + $0x438] sm:$0xff] }
   0xd   :  { %1074 = vmatpush.msra.mxu0 %v280_v5  ;;  %3156 = vmatpush.msra.mxu1 %v280_v5  ;;  %v218_v35 = vld [vmem:[%s5288_s0 + $0x630] sm:$0xff]  ;;  %v219_v39 = vld [vmem:[%s5288_s0 + $0x638] sm:$0xff]  ;;  %v156_v42 = vld [vmem:[%s5288_s0 + $0x440] sm:$0xff] }
   0xe   :  { %3160 = vmatpush.msra.mxu2 %v279_v6  ;;  %3161 = vmatpush.msra.mxu3 %v279_v6  ;;  %v26_v36 = vld [vmem:[%s5288_s0 + $0x30] sm:$0xff]  ;;  %v27_v40 = vld [vmem:[%s5288_s0 + $0x38] sm:$0xff]  ;;  %v220_v43 = vld [vmem:[%s5288_s0 + $0x640] sm:$0xff] }
   0xf   :  { %1075 = vmatpush.msra.mxu0 %v279_v6  ;;  %3159 = vmatpush.msra.mxu1 %v279_v6  ;;  %v90_v37 = vld [vmem:[%s5288_s0 + $0x230] sm:$0xff]  ;;  %v91_v41 = vld [vmem:[%s5288_s0 + $0x238] sm:$0xff]  ;;  %v28_v44 = vld [vmem:[%s5288_s0 + $0x40] sm:$0xff] }
  0x10   :  { %3163 = vmatpush.msra.mxu2 %v278_v7  ;;  %3164 = vmatpush.msra.mxu3 %v278_v7  ;;  %v92_v45 = vld [vmem:[%s5288_s0 + $0x240] sm:$0xff]  ;;  %v157_v46 = vld [vmem:[%s5288_s0 + $0x448] sm:$0xff]  ;;  %v158_v50 = vld [vmem:[%s5288_s0 + $0x450] sm:$0xff] }
  0x11   :  { %1076 = vmatpush.msra.mxu0 %v278_v7  ;;  %3162 = vmatpush.msra.mxu1 %v278_v7  ;;  %v221_v47 = vld [vmem:[%s5288_s0 + $0x648] sm:$0xff]  ;;  %v222_v51 = vld [vmem:[%s5288_s0 + $0x650] sm:$0xff]  ;;  %v159_v54 = vld [vmem:[%s5288_s0 + $0x458] sm:$0xff] }
  0x12   :  { %3166 = vmatpush.msra.mxu2 %v277_v8  ;;  %3167 = vmatpush.msra.mxu3 %v277_v8  ;;  %v29_v48 = vld [vmem:[%s5288_s0 + $0x48] sm:$0xff]  ;;  %v30_v52 = vld [vmem:[%s5288_s0 + $0x50] sm:$0xff]  ;;  %v223_v55 = vld [vmem:[%s5288_s0 + $0x658] sm:$0xff] }
  0x13   :  { %1077 = vmatpush.msra.mxu0 %v277_v8  ;;  %3165 = vmatpush.msra.mxu1 %v277_v8  ;;  %v93_v49 = vld [vmem:[%s5288_s0 + $0x248] sm:$0xff]  ;;  %v94_v53 = vld [vmem:[%s5288_s0 + $0x250] sm:$0xff]  ;;  %v31_v56 = vld [vmem:[%s5288_s0 + $0x58] sm:$0xff] }
  0x14   :  { %3169 = vmatpush.msra.mxu2 %v276_v9  ;;  %3170 = vmatpush.msra.mxu3 %v276_v9  ;;  %v95_v57 = vld [vmem:[%s5288_s0 + $0x258] sm:$0xff]  ;;  %v160_v58 = vld [vmem:[%s5288_s0 + $0x460] sm:$0xff]  ;;  %v161_v62 = vld [vmem:[%s5288_s0 + $0x468] sm:$0xff] }
  0x15   :  { %3013 = vmatmul.msk.f32.vlgmr.msra.gmra.mxu2 %vm290_vm1, %v148_v10  ;;  %3077 = vmatmul.msk.f32.vlgmr.msra.gmra.mxu3 %vm290_vm1, %v212_v11  ;;  %v224_v59 = vld [vmem:[%s5288_s0 + $0x660] sm:$0xff]  ;;  %v225_v63 = vld [vmem:[%s5288_s0 + $0x668] sm:$0xff]  ;;  %v162_v2 = vld [vmem:[%s5288_s0 + $0x470] sm:$0xff] }
  0x16   :  { %1078 = vmatpush.msra.mxu0 %v276_v9  ;;  %3168 = vmatpush.msra.mxu1 %v276_v9  ;;  %v32_v60 = vld [vmem:[%s5288_s0 + $0x60] sm:$0xff]  ;;  %v33_v0 = vld [vmem:[%s5288_s0 + $0x68] sm:$0xff]  ;;  %v226_v3 = vld [vmem:[%s5288_s0 + $0x670] sm:$0xff] }
  0x17   :  { %2885 = vmatmul.msk.f32.vlgmr.msra.gmra.mxu0 %vm290_vm1, %v20_v12  ;;  %2949 = vmatmul.msk.f32.vlgmr.msra.gmra.mxu1 %vm290_vm1, %v84_v13  ;;  %v96_v61 = vld [vmem:[%s5288_s0 + $0x260] sm:$0xff]  ;;  %v97_v1 = vld [vmem:[%s5288_s0 + $0x268] sm:$0xff]  ;;  %v34_v4 = vld [vmem:[%s5288_s0 + $0x70] sm:$0xff] }
  0x18   :  { %v98_v5 = vld [vmem:[%s5288_s0 + $0x270] sm:$0xff]  ;;  %v163_v6 = vld [vmem:[%s5288_s0 + $0x478] sm:$0xff]  ;;  %v3502_v10 = vld [vmem:[%s5289_s2] ss:$0 sm:$0xff] }
  0x19   :  { %v227_v7 = vld [vmem:[%s5288_s0 + $0x678] sm:$0xff]  ;;  %v164_v11 = vld [vmem:[%s5288_s0 + $0x480] sm:$0xff] }
  0x1a   :  { %v35_v8 = vld [vmem:[%s5288_s0 + $0x78] sm:$0xff]  ;;  %v228_v12 = vld [vmem:[%s5288_s0 + $0x680] sm:$0xff] }
  0x1b   :  { %v99_v9 = vld [vmem:[%s5288_s0 + $0x278] sm:$0xff] }
  0x1d   :  { %3014 = vmatmul.msk.f32.gmra.mxu2 %vm290_vm1, %v149_v14  ;;  %3078 = vmatmul.msk.f32.gmra.mxu3 %vm290_vm1, %v213_v15  ;;  %v36_v15 = vld [vmem:[%s5288_s0 + $0x80] sm:$0xff] }
  0x1f   :  { %2886 = vmatmul.msk.f32.gmra.mxu0 %vm290_vm1, %v21_v16  ;;  %2950 = vmatmul.msk.f32.gmra.mxu1 %vm290_vm1, %v85_v17  ;;  %v100_v16 = vld [vmem:[%s5288_s0 + $0x280] sm:$0xff] }
  0x25   :  { %3015 = vmatmul.msk.f32.gmra.mxu2 %vm290_vm1, %v150_v18  ;;  %3079 = vmatmul.msk.f32.gmra.mxu3 %vm290_vm1, %v214_v19  ;;  %v3522_v18 = vld [vmem:[%s5290_s3] ss:$0 sm:$0xff] }
  0x27   :  { %2887 = vmatmul.msk.f32.gmra.mxu0 %vm290_vm1, %v22_v20  ;;  %2951 = vmatmul.msk.f32.gmra.mxu1 %vm290_vm1, %v86_v21  ;;  %v3528_v21 = vld [vmem:[%s5291_s4] ss:$0 sm:$0xff] }
  0x2d   :  { %3016 = vmatmul.msk.f32.gmra.mxu2 %vm290_vm1, %v151_v22  ;;  %3080 = vmatmul.msk.f32.gmra.mxu3 %vm290_vm1, %v215_v23 }
  0x2f   :  { %2888 = vmatmul.msk.f32.gmra.mxu0 %vm290_vm1, %v23_v24  ;;  %2952 = vmatmul.msk.f32.gmra.mxu1 %vm290_vm1, %v87_v25 }
  0x35   :  { %3017 = vmatmul.msk.f32.gmra.mxu2 %vm290_vm1, %v152_v26  ;;  %3081 = vmatmul.msk.f32.gmra.mxu3 %vm290_vm1, %v216_v27 }
  0x37   :  { %2889 = vmatmul.msk.f32.gmra.mxu0 %vm290_vm1, %v24_v28  ;;  %2953 = vmatmul.msk.f32.gmra.mxu1 %vm290_vm1, %v88_v29  ;;  %v165_v29 = vld [vmem:[%s5288_s0 + $0x488] sm:$0xff] }
  0x3d   :  { %3018 = vmatmul.msk.f32.gmra.mxu2 %vm290_vm1, %v153_v30  ;;  %3082 = vmatmul.msk.f32.gmra.mxu3 %vm290_vm1, %v217_v31  ;;  %v229_v30 = vld [vmem:[%s5288_s0 + $0x688] sm:$0xff] }
  0x3f   :  { %2890 = vmatmul.msk.f32.gmra.mxu0 %vm290_vm1, %v25_v32  ;;  %2954 = vmatmul.msk.f32.gmra.mxu1 %vm290_vm1, %v89_v33 }
  0x45   :  { %3019 = vmatmul.msk.f32.gmra.mxu2 %vm290_vm1, %v154_v34  ;;  %3083 = vmatmul.msk.f32.gmra.mxu3 %vm290_vm1, %v218_v35 }
  0x47   :  { %2891 = vmatmul.msk.f32.gmra.mxu0 %vm290_vm1, %v26_v36  ;;  %2955 = vmatmul.msk.f32.gmra.mxu1 %vm290_vm1, %v90_v37  ;;  %v37_v37 = vld [vmem:[%s5288_s0 + $0x88] sm:$0xff] }
  0x4d   :  { %3020 = vmatmul.msk.f32.gmra.mxu2 %vm290_vm1, %v155_v38  ;;  %3084 = vmatmul.msk.f32.gmra.mxu3 %vm290_vm1, %v219_v39  ;;  %v101_v38 = vld [vmem:[%s5288_s0 + $0x288] sm:$0xff] }
  0x4f   :  { %2892 = vmatmul.msk.f32.gmra.mxu0 %vm290_vm1, %v27_v40  ;;  %2956 = vmatmul.msk.f32.gmra.mxu1 %vm290_vm1, %v91_v41 }
  0x55   :  { %3021 = vmatmul.msk.f32.gmra.mxu2 %vm290_vm1, %v156_v42  ;;  %3085 = vmatmul.msk.f32.gmra.mxu3 %vm290_vm1, %v220_v43 }
  0x57   :  { %2893 = vmatmul.msk.f32.gmra.mxu0 %vm290_vm1, %v28_v44  ;;  %2957 = vmatmul.msk.f32.gmra.mxu1 %vm290_vm1, %v92_v45 }
  0x5d   :  { %3022 = vmatmul.msk.f32.gmra.mxu2 %vm290_vm1, %v157_v46  ;;  %3086 = vmatmul.msk.f32.gmra.mxu3 %vm290_vm1, %v221_v47 }
  0x5f   :  { %2894 = vmatmul.msk.f32.gmra.mxu0 %vm290_vm1, %v29_v48  ;;  %2958 = vmatmul.msk.f32.gmra.mxu1 %vm290_vm1, %v93_v49 }
  0x65   :  { %3023 = vmatmul.msk.f32.gmra.mxu2 %vm290_vm1, %v158_v50  ;;  %3087 = vmatmul.msk.f32.gmra.mxu3 %vm290_vm1, %v222_v51 }
  0x67   :  { %2895 = vmatmul.msk.f32.gmra.mxu0 %vm290_vm1, %v30_v52  ;;  %2959 = vmatmul.msk.f32.gmra.mxu1 %vm290_vm1, %v94_v53 }
  0x6d   :  { %3024 = vmatmul.msk.f32.gmra.mxu2 %vm290_vm1, %v159_v54  ;;  %3088 = vmatmul.msk.f32.gmra.mxu3 %vm290_vm1, %v223_v55  ;;  %v166_v55 = vld [vmem:[%s5288_s0 + $0x490] sm:$0xff] }
  0x6f   :  { %2896 = vmatmul.msk.f32.gmra.mxu0 %vm290_vm1, %v31_v56  ;;  %2960 = vmatmul.msk.f32.gmra.mxu1 %vm290_vm1, %v95_v57  ;;  %v230_v56 = vld [vmem:[%s5288_s0 + $0x690] sm:$0xff] }
  0x75   :  { %3025 = vmatmul.msk.f32.gmra.mxu2 %vm290_vm1, %v160_v58  ;;  %3089 = vmatmul.msk.f32.gmra.mxu3 %vm290_vm1, %v224_v59 }
  0x77   :  { %2897 = vmatmul.msk.f32.gmra.mxu0 %vm290_vm1, %v32_v60  ;;  %2961 = vmatmul.msk.f32.gmra.mxu1 %vm290_vm1, %v96_v61 }
  0x7d   :  { %3026 = vmatmul.msk.f32.gmra.mxu2 %vm290_vm1, %v161_v62  ;;  %3090 = vmatmul.msk.f32.gmra.mxu3 %vm290_vm1, %v225_v63 }
  0x7f   :  { %2898 = vmatmul.msk.f32.gmra.mxu0 %vm290_vm1, %v33_v0  ;;  %2962 = vmatmul.msk.f32.gmra.mxu1 %vm290_vm1, %v97_v1  ;;  %v38_v0 = vld [vmem:[%s5288_s0 + $0x90] sm:$0xff] }
  0x80   :  { %v102_v1 = vld [vmem:[%s5288_s0 + $0x290] sm:$0xff] }
  0x85   :  { %3027 = vmatmul.msk.f32.gmra.mxu2 %vm290_vm1, %v162_v2  ;;  %3091 = vmatmul.msk.f32.gmra.mxu3 %vm290_vm1, %v226_v3 }
  0x87   :  { %2899 = vmatmul.msk.f32.gmra.mxu0 %vm290_vm1, %v34_v4  ;;  %2963 = vmatmul.msk.f32.gmra.mxu1 %vm290_vm1, %v98_v5 }
  0x8d   :  { %3028 = vmatmul.msk.f32.gmra.mxu2 %vm290_vm1, %v163_v6  ;;  %3092 = vmatmul.msk.f32.gmra.mxu3 %vm290_vm1, %v227_v7 }
  0x8f   :  { %2900 = vmatmul.msk.f32.gmra.mxu0 %vm290_vm1, %v35_v8  ;;  %2964 = vmatmul.msk.f32.gmra.mxu1 %vm290_vm1, %v99_v9 }
  0x94   :  { %v1080_v13 = vpop.f32.mrf.mxu0  ;;  %v1272_v14 = vpop.f32.mrf.mxu1 }
  0x95   :  { %3029 = vmatmul.msk.f32.gmra.mxu2 %vm290_vm1, %v164_v11  ;;  %3093 = vmatmul.msk.f32.gmra.mxu3 %vm290_vm1, %v228_v12  ;;  %v1081_v17 = vadd.f32 %v3502_v10, %v1080_v13  ;;  %v1273_v19 = vadd.f32 %v3502_v10, %v1272_v14 }
  0x97   :  { %v1848_v20 = vmax.f32 %v1081_v17, 0.0  ;;  %v1912_v22 = vmax.f32 %v1273_v19, 0.0  ;;  %2901 = vmatmul.msk.f32.gmra.mxu0 %vm290_vm1, %v36_v15  ;;  %2965 = vmatmul.msk.f32.gmra.mxu1 %vm290_vm1, %v100_v16 }
  0x98   :  { %v1464_v23 = vpop.f32.mrf.mxu2  ;;  %v1656_v24 = vpop.f32.mrf.mxu3 }
  0x99   :  { %v2108_v25 = vmul.f32 %v3522_v18, %v1848_v20  ;;  %v2172_v26 = vmul.f32 %v3522_v18, %v1912_v22  ;;  %v1465_v27 = vadd.f32 %v3502_v10, %v1464_v23  ;;  %v1657_v28 = vadd.f32 %v3502_v10, %v1656_v24  ;;  %v167_v20 = vld [vmem:[%s5288_s0 + $0x498] sm:$0xff] }
  0x9a   :  { %v231_v22 = vld [vmem:[%s5288_s0 + $0x698] sm:$0xff] }
  0x9b   :  { %v2368_v31 = vadd.f32 %v3528_v21, %v2108_v25  ;;  %v2432_v32 = vadd.f32 %v3528_v21, %v2172_v26  ;;  %v1976_v33 = vmax.f32 %v1465_v27, 0.0  ;;  %v2040_v34 = vmax.f32 %v1657_v28, 0.0 }
  0x9c   :  { %v1083_v35 = vpop.f32.mrf.mxu0  ;;  %v1275_v36 = vpop.f32.mrf.mxu1 }
  0x9d   :  { %v2236_v39 = vmul.f32 %v3522_v18, %v1976_v33  ;;  %v2300_v40 = vmul.f32 %v3522_v18, %v2040_v34  ;;  %3030 = vmatmul.msk.f32.gmra.mxu2 %vm290_vm1, %v165_v29  ;;  %3094 = vmatmul.msk.f32.gmra.mxu3 %vm290_vm1, %v229_v30  ;;  %v1084_v41 = vadd.f32 %v3502_v10, %v1083_v35  ;;  %v39_v30 = vld [vmem:[%s5288_s0 + $0x98] sm:$0xff] }
  0x9e   :  { %v1276_v42 = vadd.f32 %v3502_v10, %v1275_v36  ;;  %v2624_v43 = vmax.f32 %v2368_v31, %v2432_v32  ;;  %v103_v31 = vld [vmem:[%s5288_s0 + $0x298] sm:$0xff] }
  0x9f   :  { %v2496_v44 = vadd.f32 %v3528_v21, %v2236_v39  ;;  %v2560_v45 = vadd.f32 %v3528_v21, %v2300_v40  ;;  %2902 = vmatmul.msk.f32.gmra.mxu0 %vm290_vm1, %v37_v37  ;;  %2966 = vmatmul.msk.f32.gmra.mxu1 %vm290_vm1, %v101_v38  ;;  %v1849_v46 = vmax.f32 %v1084_v41, 0.0 }
  0xa0   :  { %v1913_v47 = vmax.f32 %v1276_v42, 0.0  ;;  %v1467_v48 = vpop.f32.mrf.mxu2  ;;  %v1659_v49 = vpop.f32.mrf.mxu3 }
  0xa1   :  { %v2688_v50 = vmax.f32 %v2496_v44, %v2560_v45  ;;  %v1468_v51 = vadd.f32 %v3502_v10, %v1467_v48  ;;  %v1660_v52 = vadd.f32 %v3502_v10, %v1659_v49  ;;  %v2109_v53 = vmul.f32 %v3522_v18, %v1849_v46  ;;  %v168_v48 = vld [vmem:[%s5288_s0 + $0x4a0] sm:$0xff] }
  0xa2   :  { %v2173_v54 = vmul.f32 %v3522_v18, %v1913_v47  ;;  %v232_v49 = vld [vmem:[%s5288_s0 + $0x6a0] sm:$0xff] }
  0xa3   :  { %v2752_v57 = vmax.f32 %v2624_v43, %v2688_v50  ;;  %v1977_v58 = vmax.f32 %v1468_v51, 0.0  ;;  %v2041_v59 = vmax.f32 %v1660_v52, 0.0  ;;  %v2369_v60 = vadd.f32 %v3528_v21, %v2109_v53 }
  0xa4   :  { %v2433_v61 = vadd.f32 %v3528_v21, %v2173_v54  ;;  %v1086_v62 = vpop.f32.mrf.mxu0  ;;  %v1278_v63 = vpop.f32.mrf.mxu1 }
  0xa5   :  { %2816 = vst [vmem:[%s5292_s5] sm:$0xff] %v2752_v57  ;;  %v2237_v2 = vmul.f32 %v3522_v18, %v1977_v58  ;;  %v2301_v3 = vmul.f32 %v3522_v18, %v2041_v59  ;;  %3031 = vmatmul.msk.f32.gmra.mxu2 %vm290_vm1, %v166_v55  ;;  %3095 = vmatmul.msk.f32.gmra.mxu3 %vm290_vm1, %v230_v56  ;;  %v40_v57 = vld [vmem:[%s5288_s0 + $0xa0] sm:$0xff] }
  0xa6   :  { %v1087_v4 = vadd.f32 %v3502_v10, %v1086_v62  ;;  %v1279_v5 = vadd.f32 %v3502_v10, %v1278_v63  ;;  %v2625_v6 = vmax.f32 %v2369_v60, %v2433_v61  ;;  %v104_v58 = vld [vmem:[%s5288_s0 + $0x2a0] sm:$0xff] }
  0xa7   :  { %v2497_v7 = vadd.f32 %v3528_v21, %v2237_v2  ;;  %v2561_v8 = vadd.f32 %v3528_v21, %v2301_v3  ;;  %2903 = vmatmul.msk.f32.gmra.mxu0 %vm290_vm1, %v38_v0  ;;  %2967 = vmatmul.msk.f32.gmra.mxu1 %vm290_vm1, %v102_v1 }
  0xa8   :  { %v1850_v9 = vmax.f32 %v1087_v4, 0.0  ;;  %v1914_v11 = vmax.f32 %v1279_v5, 0.0  ;;  %v1470_v12 = vpop.f32.mrf.mxu2  ;;  %v1662_v13 = vpop.f32.mrf.mxu3 }
  0xa9   :  { %v2689_v14 = vmax.f32 %v2497_v7, %v2561_v8  ;;  %v1471_v16 = vadd.f32 %v3502_v10, %v1470_v12  ;;  %v1663_v17 = vadd.f32 %v3502_v10, %v1662_v13  ;;  %v169_v12 = vld [vmem:[%s5288_s0 + $0x4a8] sm:$0xff] }
  0xaa   :  { %v2110_v15 = vmul.f32 %v3522_v18, %v1850_v9  ;;  %v2174_v19 = vmul.f32 %v3522_v18, %v1914_v11  ;;  %v233_v13 = vld [vmem:[%s5288_s0 + $0x6a8] sm:$0xff] }
  0xab   :  { %v2753_v23 = vmax.f32 %v2625_v6, %v2689_v14  ;;  %v1978_v25 = vmax.f32 %v1471_v16, 0.0  ;;  %v2042_v26 = vmax.f32 %v1663_v17, 0.0 }
  0xac   :  { %v2370_v24 = vadd.f32 %v3528_v21, %v2110_v15  ;;  %v2434_v27 = vadd.f32 %v3528_v21, %v2174_v19  ;;  %v1089_v28 = vpop.f32.mrf.mxu0  ;;  %v1281_v29 = vpop.f32.mrf.mxu1 }
  0xad   :  { %2817 = vst [vmem:[%s5292_s5 + $0x8] sm:$0xff] %v2753_v23  ;;  %v2238_v32 = vmul.f32 %v3522_v18, %v1978_v25  ;;  %v2302_v33 = vmul.f32 %v3522_v18, %v2042_v26  ;;  %3032 = vmatmul.msk.f32.gmra.mxu2 %vm290_vm1, %v167_v20  ;;  %3096 = vmatmul.msk.f32.gmra.mxu3 %vm290_vm1, %v231_v22  ;;  %v41_v23 = vld [vmem:[%s5288_s0 + $0xa8] sm:$0xff] }
  0xae   :  { %v1090_v34 = vadd.f32 %v3502_v10, %v1089_v28  ;;  %v1282_v35 = vadd.f32 %v3502_v10, %v1281_v29  ;;  %v2626_v36 = vmax.f32 %v2370_v24, %v2434_v27  ;;  %v105_v24 = vld [vmem:[%s5288_s0 + $0x2a8] sm:$0xff] }
  0xaf   :  { %v2498_v37 = vadd.f32 %v3528_v21, %v2238_v32  ;;  %v2562_v38 = vadd.f32 %v3528_v21, %v2302_v33  ;;  %2904 = vmatmul.msk.f32.gmra.mxu0 %vm290_vm1, %v39_v30  ;;  %2968 = vmatmul.msk.f32.gmra.mxu1 %vm290_vm1, %v103_v31 }
  0xb0   :  { %v1851_v39 = vmax.f32 %v1090_v34, 0.0  ;;  %v1915_v40 = vmax.f32 %v1282_v35, 0.0  ;;  %v1473_v41 = vpop.f32.mrf.mxu2  ;;  %v1665_v42 = vpop.f32.mrf.mxu3 }
  0xb1   :  { %v2690_v43 = vmax.f32 %v2498_v37, %v2562_v38  ;;  %v1474_v45 = vadd.f32 %v3502_v10, %v1473_v41  ;;  %v1666_v46 = vadd.f32 %v3502_v10, %v1665_v42  ;;  %v170_v41 = vld [vmem:[%s5288_s0 + $0x4b0] sm:$0xff] }
  0xb2   :  { %v2111_v44 = vmul.f32 %v3522_v18, %v1851_v39  ;;  %v2175_v47 = vmul.f32 %v3522_v18, %v1915_v40  ;;  %v234_v42 = vld [vmem:[%s5288_s0 + $0x6b0] sm:$0xff] }
  0xb3   :  { %v2754_v50 = vmax.f32 %v2626_v36, %v2690_v43  ;;  %v1979_v52 = vmax.f32 %v1474_v45, 0.0  ;;  %v2043_v53 = vmax.f32 %v1666_v46, 0.0 }
  0xb4   :  { %v2371_v51 = vadd.f32 %v3528_v21, %v2111_v44  ;;  %v2435_v54 = vadd.f32 %v3528_v21, %v2175_v47  ;;  %v1092_v55 = vpop.f32.mrf.mxu0  ;;  %v1284_v56 = vpop.f32.mrf.mxu1 }
  0xb5   :  { %2818 = vst [vmem:[%s5292_s5 + $0x10] sm:$0xff] %v2754_v50  ;;  %v2239_v59 = vmul.f32 %v3522_v18, %v1979_v52  ;;  %v2303_v60 = vmul.f32 %v3522_v18, %v2043_v53  ;;  %3033 = vmatmul.msk.f32.gmra.mxu2 %vm290_vm1, %v168_v48  ;;  %3097 = vmatmul.msk.f32.gmra.mxu3 %vm290_vm1, %v232_v49  ;;  %v42_v50 = vld [vmem:[%s5288_s0 + $0xb0] sm:$0xff] }
  0xb6   :  { %v1093_v61 = vadd.f32 %v3502_v10, %v1092_v55  ;;  %v1285_v62 = vadd.f32 %v3502_v10, %v1284_v56  ;;  %v2627_v63 = vmax.f32 %v2371_v51, %v2435_v54  ;;  %v106_v51 = vld [vmem:[%s5288_s0 + $0x2b0] sm:$0xff] }
  0xb7   :  { %v2499_v0 = vadd.f32 %v3528_v21, %v2239_v59  ;;  %v2563_v1 = vadd.f32 %v3528_v21, %v2303_v60  ;;  %2905 = vmatmul.msk.f32.gmra.mxu0 %vm290_vm1, %v40_v57  ;;  %2969 = vmatmul.msk.f32.gmra.mxu1 %vm290_vm1, %v104_v58 }
  0xb8   :  { %v1852_v2 = vmax.f32 %v1093_v61, 0.0  ;;  %v1916_v3 = vmax.f32 %v1285_v62, 0.0  ;;  %v1476_v4 = vpop.f32.mrf.mxu2  ;;  %v1668_v5 = vpop.f32.mrf.mxu3 }
  0xb9   :  { %v2691_v6 = vmax.f32 %v2499_v0, %v2563_v1  ;;  %v1477_v8 = vadd.f32 %v3502_v10, %v1476_v4  ;;  %v1669_v9 = vadd.f32 %v3502_v10, %v1668_v5  ;;  %v171_v4 = vld [vmem:[%s5288_s0 + $0x4b8] sm:$0xff] }
  0xba   :  { %v2112_v7 = vmul.f32 %v3522_v18, %v1852_v2  ;;  %v2176_v11 = vmul.f32 %v3522_v18, %v1916_v3  ;;  %v235_v5 = vld [vmem:[%s5288_s0 + $0x6b8] sm:$0xff] }
  0xbb   :  { %v2755_v14 = vmax.f32 %v2627_v63, %v2691_v6  ;;  %v1980_v16 = vmax.f32 %v1477_v8, 0.0  ;;  %v2044_v17 = vmax.f32 %v1669_v9, 0.0 }
  0xbc   :  { %v2372_v15 = vadd.f32 %v3528_v21, %v2112_v7  ;;  %v2436_v19 = vadd.f32 %v3528_v21, %v2176_v11  ;;  %v1095_v20 = vpop.f32.mrf.mxu0  ;;  %v1287_v22 = vpop.f32.mrf.mxu1 }
  0xbd   :  { %2819 = vst [vmem:[%s5292_s5 + $0x18] sm:$0xff] %v2755_v14  ;;  %v2240_v25 = vmul.f32 %v3522_v18, %v1980_v16  ;;  %v2304_v26 = vmul.f32 %v3522_v18, %v2044_v17  ;;  %3034 = vmatmul.msk.f32.gmra.mxu2 %vm290_vm1, %v169_v12  ;;  %3098 = vmatmul.msk.f32.gmra.mxu3 %vm290_vm1, %v233_v13  ;;  %v43_v14 = vld [vmem:[%s5288_s0 + $0xb8] sm:$0xff] }
  0xbe   :  { %v1096_v27 = vadd.f32 %v3502_v10, %v1095_v20  ;;  %v1288_v28 = vadd.f32 %v3502_v10, %v1287_v22  ;;  %v2628_v29 = vmax.f32 %v2372_v15, %v2436_v19  ;;  %v107_v15 = vld [vmem:[%s5288_s0 + $0x2b8] sm:$0xff] }
  0xbf   :  { %v2500_v30 = vadd.f32 %v3528_v21, %v2240_v25  ;;  %v2564_v31 = vadd.f32 %v3528_v21, %v2304_v26  ;;  %2906 = vmatmul.msk.f32.gmra.mxu0 %vm290_vm1, %v41_v23  ;;  %2970 = vmatmul.msk.f32.gmra.mxu1 %vm290_vm1, %v105_v24 }
  0xc0   :  { %v1853_v32 = vmax.f32 %v1096_v27, 0.0  ;;  %v1917_v33 = vmax.f32 %v1288_v28, 0.0  ;;  %v1479_v34 = vpop.f32.mrf.mxu2  ;;  %v1671_v35 = vpop.f32.mrf.mxu3 }
  0xc1   :  { %v2692_v36 = vmax.f32 %v2500_v30, %v2564_v31  ;;  %v1480_v38 = vadd.f32 %v3502_v10, %v1479_v34  ;;  %v1672_v39 = vadd.f32 %v3502_v10, %v1671_v35  ;;  %v172_v34 = vld [vmem:[%s5288_s0 + $0x4c0] sm:$0xff] }
  0xc2   :  { %v2113_v37 = vmul.f32 %v3522_v18, %v1853_v32  ;;  %v2177_v40 = vmul.f32 %v3522_v18, %v1917_v33  ;;  %v236_v35 = vld [vmem:[%s5288_s0 + $0x6c0] sm:$0xff] }
  0xc3   :  { %v2756_v43 = vmax.f32 %v2628_v29, %v2692_v36  ;;  %v1981_v45 = vmax.f32 %v1480_v38, 0.0  ;;  %v2045_v46 = vmax.f32 %v1672_v39, 0.0 }
  0xc4   :  { %v2373_v44 = vadd.f32 %v3528_v21, %v2113_v37  ;;  %v2437_v47 = vadd.f32 %v3528_v21, %v2177_v40  ;;  %v1098_v48 = vpop.f32.mrf.mxu0  ;;  %v1290_v49 = vpop.f32.mrf.mxu1 }
  0xc5   :  { %2820 = vst [vmem:[%s5292_s5 + $0x20] sm:$0xff] %v2756_v43  ;;  %v2241_v52 = vmul.f32 %v3522_v18, %v1981_v45  ;;  %v2305_v53 = vmul.f32 %v3522_v18, %v2045_v46  ;;  %3035 = vmatmul.msk.f32.gmra.mxu2 %vm290_vm1, %v170_v41  ;;  %3099 = vmatmul.msk.f32.gmra.mxu3 %vm290_vm1, %v234_v42  ;;  %v44_v43 = vld [vmem:[%s5288_s0 + $0xc0] sm:$0xff] }
  0xc6   :  { %v1099_v54 = vadd.f32 %v3502_v10, %v1098_v48  ;;  %v1291_v55 = vadd.f32 %v3502_v10, %v1290_v49  ;;  %v2629_v56 = vmax.f32 %v2373_v44, %v2437_v47  ;;  %v108_v44 = vld [vmem:[%s5288_s0 + $0x2c0] sm:$0xff] }
  0xc7   :  { %v2501_v57 = vadd.f32 %v3528_v21, %v2241_v52  ;;  %v2565_v58 = vadd.f32 %v3528_v21, %v2305_v53  ;;  %2907 = vmatmul.msk.f32.gmra.mxu0 %vm290_vm1, %v42_v50  ;;  %2971 = vmatmul.msk.f32.gmra.mxu1 %vm290_vm1, %v106_v51 }
  0xc8   :  { %v1854_v59 = vmax.f32 %v1099_v54, 0.0  ;;  %v1918_v60 = vmax.f32 %v1291_v55, 0.0  ;;  %v1482_v61 = vpop.f32.mrf.mxu2  ;;  %v1674_v62 = vpop.f32.mrf.mxu3 }
  0xc9   :  { %v2693_v63 = vmax.f32 %v2501_v57, %v2565_v58  ;;  %v1483_v1 = vadd.f32 %v3502_v10, %v1482_v61  ;;  %v1675_v2 = vadd.f32 %v3502_v10, %v1674_v62  ;;  %v173_v61 = vld [vmem:[%s5288_s0 + $0x4c8] sm:$0xff] }
  0xca   :  { %v2114_v0 = vmul.f32 %v3522_v18, %v1854_v59  ;;  %v2178_v3 = vmul.f32 %v3522_v18, %v1918_v60  ;;  %v237_v62 = vld [vmem:[%s5288_s0 + $0x6c8] sm:$0xff] }
  0xcb   :  { %v2757_v6 = vmax.f32 %v2629_v56, %v2693_v63  ;;  %v1982_v8 = vmax.f32 %v1483_v1, 0.0  ;;  %v2046_v9 = vmax.f32 %v1675_v2, 0.0 }
  0xcc   :  { %v2374_v7 = vadd.f32 %v3528_v21, %v2114_v0  ;;  %v2438_v11 = vadd.f32 %v3528_v21, %v2178_v3  ;;  %v1101_v12 = vpop.f32.mrf.mxu0  ;;  %v1293_v13 = vpop.f32.mrf.mxu1 }
  0xcd   :  { %2821 = vst [vmem:[%s5292_s5 + $0x28] sm:$0xff] %v2757_v6  ;;  %v2242_v16 = vmul.f32 %v3522_v18, %v1982_v8  ;;  %v2306_v17 = vmul.f32 %v3522_v18, %v2046_v9  ;;  %3036 = vmatmul.msk.f32.gmra.mxu2 %vm290_vm1, %v171_v4  ;;  %3100 = vmatmul.msk.f32.gmra.mxu3 %vm290_vm1, %v235_v5  ;;  %v45_v6 = vld [vmem:[%s5288_s0 + $0xc8] sm:$0xff] }
  0xce   :  { %v1102_v19 = vadd.f32 %v3502_v10, %v1101_v12  ;;  %v1294_v20 = vadd.f32 %v3502_v10, %v1293_v13  ;;  %v2630_v22 = vmax.f32 %v2374_v7, %v2438_v11  ;;  %v109_v7 = vld [vmem:[%s5288_s0 + $0x2c8] sm:$0xff] }
  0xcf   :  { %v2502_v23 = vadd.f32 %v3528_v21, %v2242_v16  ;;  %v2566_v24 = vadd.f32 %v3528_v21, %v2306_v17  ;;  %2908 = vmatmul.msk.f32.gmra.mxu0 %vm290_vm1, %v43_v14  ;;  %2972 = vmatmul.msk.f32.gmra.mxu1 %vm290_vm1, %v107_v15 }
  0xd0   :  { %v1855_v25 = vmax.f32 %v1102_v19, 0.0  ;;  %v1919_v26 = vmax.f32 %v1294_v20, 0.0  ;;  %v1485_v27 = vpop.f32.mrf.mxu2  ;;  %v1677_v28 = vpop.f32.mrf.mxu3 }
  0xd1   :  { %v2694_v29 = vmax.f32 %v2502_v23, %v2566_v24  ;;  %v1486_v31 = vadd.f32 %v3502_v10, %v1485_v27  ;;  %v1678_v32 = vadd.f32 %v3502_v10, %v1677_v28  ;;  %v174_v27 = vld [vmem:[%s5288_s0 + $0x4d0] sm:$0xff] }
  0xd2   :  { %v2115_v30 = vmul.f32 %v3522_v18, %v1855_v25  ;;  %v2179_v33 = vmul.f32 %v3522_v18, %v1919_v26  ;;  %v238_v28 = vld [vmem:[%s5288_s0 + $0x6d0] sm:$0xff] }
  0xd3   :  { %v2758_v36 = vmax.f32 %v2630_v22, %v2694_v29  ;;  %v1983_v38 = vmax.f32 %v1486_v31, 0.0  ;;  %v2047_v39 = vmax.f32 %v1678_v32, 0.0 }
  0xd4   :  { %v2375_v37 = vadd.f32 %v3528_v21, %v2115_v30  ;;  %v2439_v40 = vadd.f32 %v3528_v21, %v2179_v33  ;;  %v1104_v41 = vpop.f32.mrf.mxu0  ;;  %v1296_v42 = vpop.f32.mrf.mxu1 }
  0xd5   :  { %2822 = vst [vmem:[%s5292_s5 + $0x30] sm:$0xff] %v2758_v36  ;;  %v2243_v45 = vmul.f32 %v3522_v18, %v1983_v38  ;;  %v2307_v46 = vmul.f32 %v3522_v18, %v2047_v39  ;;  %3037 = vmatmul.msk.f32.gmra.mxu2 %vm290_vm1, %v172_v34  ;;  %3101 = vmatmul.msk.f32.gmra.mxu3 %vm290_vm1, %v236_v35  ;;  %v46_v36 = vld [vmem:[%s5288_s0 + $0xd0] sm:$0xff] }
  0xd6   :  { %v1105_v47 = vadd.f32 %v3502_v10, %v1104_v41  ;;  %v1297_v48 = vadd.f32 %v3502_v10, %v1296_v42  ;;  %v2631_v49 = vmax.f32 %v2375_v37, %v2439_v40  ;;  %v110_v37 = vld [vmem:[%s5288_s0 + $0x2d0] sm:$0xff] }
  0xd7   :  { %v2503_v50 = vadd.f32 %v3528_v21, %v2243_v45  ;;  %v2567_v51 = vadd.f32 %v3528_v21, %v2307_v46  ;;  %2909 = vmatmul.msk.f32.gmra.mxu0 %vm290_vm1, %v44_v43  ;;  %2973 = vmatmul.msk.f32.gmra.mxu1 %vm290_vm1, %v108_v44 }
  0xd8   :  { %v1856_v52 = vmax.f32 %v1105_v47, 0.0  ;;  %v1920_v53 = vmax.f32 %v1297_v48, 0.0  ;;  %v1488_v54 = vpop.f32.mrf.mxu2  ;;  %v1680_v55 = vpop.f32.mrf.mxu3 }
  0xd9   :  { %v2695_v56 = vmax.f32 %v2503_v50, %v2567_v51  ;;  %v1489_v58 = vadd.f32 %v3502_v10, %v1488_v54  ;;  %v1681_v59 = vadd.f32 %v3502_v10, %v1680_v55  ;;  %v175_v54 = vld [vmem:[%s5288_s0 + $0x4d8] sm:$0xff] }
  0xda   :  { %v2116_v57 = vmul.f32 %v3522_v18, %v1856_v52  ;;  %v2180_v60 = vmul.f32 %v3522_v18, %v1920_v53  ;;  %v239_v55 = vld [vmem:[%s5288_s0 + $0x6d8] sm:$0xff] }
  0xdb   :  { %v2759_v63 = vmax.f32 %v2631_v49, %v2695_v56  ;;  %v1984_v1 = vmax.f32 %v1489_v58, 0.0  ;;  %v2048_v2 = vmax.f32 %v1681_v59, 0.0 }
  0xdc   :  { %v2376_v0 = vadd.f32 %v3528_v21, %v2116_v57  ;;  %v2440_v3 = vadd.f32 %v3528_v21, %v2180_v60  ;;  %v1107_v4 = vpop.f32.mrf.mxu0  ;;  %v1299_v5 = vpop.f32.mrf.mxu1 }
  0xdd   :  { %2823 = vst [vmem:[%s5292_s5 + $0x38] sm:$0xff] %v2759_v63  ;;  %v2244_v8 = vmul.f32 %v3522_v18, %v1984_v1  ;;  %v2308_v9 = vmul.f32 %v3522_v18, %v2048_v2  ;;  %3038 = vmatmul.msk.f32.gmra.mxu2 %vm290_vm1, %v173_v61  ;;  %3102 = vmatmul.msk.f32.gmra.mxu3 %vm290_vm1, %v237_v62  ;;  %v47_v63 = vld [vmem:[%s5288_s0 + $0xd8] sm:$0xff] }
  0xde   :  { %v1108_v11 = vadd.f32 %v3502_v10, %v1107_v4  ;;  %v1300_v12 = vadd.f32 %v3502_v10, %v1299_v5  ;;  %v2632_v13 = vmax.f32 %v2376_v0, %v2440_v3  ;;  %v111_v0 = vld [vmem:[%s5288_s0 + $0x2d8] sm:$0xff] }
  0xdf   :  { %v2504_v14 = vadd.f32 %v3528_v21, %v2244_v8  ;;  %v2568_v15 = vadd.f32 %v3528_v21, %v2308_v9  ;;  %2910 = vmatmul.msk.f32.gmra.mxu0 %vm290_vm1, %v45_v6  ;;  %2974 = vmatmul.msk.f32.gmra.mxu1 %vm290_vm1, %v109_v7 }
  0xe0   :  { %v1857_v16 = vmax.f32 %v1108_v11, 0.0  ;;  %v1921_v17 = vmax.f32 %v1300_v12, 0.0  ;;  %v1491_v19 = vpop.f32.mrf.mxu2  ;;  %v1683_v20 = vpop.f32.mrf.mxu3 }
  0xe1   :  { %v2696_v22 = vmax.f32 %v2504_v14, %v2568_v15  ;;  %v1492_v24 = vadd.f32 %v3502_v10, %v1491_v19  ;;  %v1684_v25 = vadd.f32 %v3502_v10, %v1683_v20  ;;  %v176_v19 = vld [vmem:[%s5288_s0 + $0x4e0] sm:$0xff] }
  0xe2   :  { %v2117_v23 = vmul.f32 %v3522_v18, %v1857_v16  ;;  %v2181_v26 = vmul.f32 %v3522_v18, %v1921_v17  ;;  %v240_v20 = vld [vmem:[%s5288_s0 + $0x6e0] sm:$0xff] }
  0xe3   :  { %v2760_v29 = vmax.f32 %v2632_v13, %v2696_v22  ;;  %v1985_v31 = vmax.f32 %v1492_v24, 0.0  ;;  %v2049_v32 = vmax.f32 %v1684_v25, 0.0 }
  0xe4   :  { %v2377_v30 = vadd.f32 %v3528_v21, %v2117_v23  ;;  %v2441_v33 = vadd.f32 %v3528_v21, %v2181_v26  ;;  %v1110_v34 = vpop.f32.mrf.mxu0  ;;  %v1302_v35 = vpop.f32.mrf.mxu1 }
  0xe5   :  { %2824 = vst [vmem:[%s5292_s5 + $0x40] sm:$0xff] %v2760_v29  ;;  %v2245_v38 = vmul.f32 %v3522_v18, %v1985_v31  ;;  %v2309_v39 = vmul.f32 %v3522_v18, %v2049_v32  ;;  %3039 = vmatmul.msk.f32.gmra.mxu2 %vm290_vm1, %v174_v27  ;;  %3103 = vmatmul.msk.f32.gmra.mxu3 %vm290_vm1, %v238_v28  ;;  %v48_v29 = vld [vmem:[%s5288_s0 + $0xe0] sm:$0xff] }
  0xe6   :  { %v1111_v40 = vadd.f32 %v3502_v10, %v1110_v34  ;;  %v1303_v41 = vadd.f32 %v3502_v10, %v1302_v35  ;;  %v2633_v42 = vmax.f32 %v2377_v30, %v2441_v33  ;;  %v112_v30 = vld [vmem:[%s5288_s0 + $0x2e0] sm:$0xff] }
  0xe7   :  { %v2505_v43 = vadd.f32 %v3528_v21, %v2245_v38  ;;  %v2569_v44 = vadd.f32 %v3528_v21, %v2309_v39  ;;  %2911 = vmatmul.msk.f32.gmra.mxu0 %vm290_vm1, %v46_v36  ;;  %2975 = vmatmul.msk.f32.gmra.mxu1 %vm290_vm1, %v110_v37 }
  0xe8   :  { %v1858_v45 = vmax.f32 %v1111_v40, 0.0  ;;  %v1922_v46 = vmax.f32 %v1303_v41, 0.0  ;;  %v1494_v47 = vpop.f32.mrf.mxu2  ;;  %v1686_v48 = vpop.f32.mrf.mxu3 }
  0xe9   :  { %v2697_v49 = vmax.f32 %v2505_v43, %v2569_v44  ;;  %v1495_v51 = vadd.f32 %v3502_v10, %v1494_v47  ;;  %v1687_v52 = vadd.f32 %v3502_v10, %v1686_v48  ;;  %v177_v47 = vld [vmem:[%s5288_s0 + $0x4e8] sm:$0xff] }
  0xea   :  { %v2118_v50 = vmul.f32 %v3522_v18, %v1858_v45  ;;  %v2182_v53 = vmul.f32 %v3522_v18, %v1922_v46  ;;  %v241_v48 = vld [vmem:[%s5288_s0 + $0x6e8] sm:$0xff] }
  0xeb   :  { %v2761_v56 = vmax.f32 %v2633_v42, %v2697_v49  ;;  %v1986_v58 = vmax.f32 %v1495_v51, 0.0  ;;  %v2050_v59 = vmax.f32 %v1687_v52, 0.0 }
  0xec   :  { %v2378_v57 = vadd.f32 %v3528_v21, %v2118_v50  ;;  %v2442_v60 = vadd.f32 %v3528_v21, %v2182_v53  ;;  %v1113_v61 = vpop.f32.mrf.mxu0  ;;  %v1305_v62 = vpop.f32.mrf.mxu1 }
  0xed   :  { %2825 = vst [vmem:[%s5292_s5 + $0x48] sm:$0xff] %v2761_v56  ;;  %v2246_v1 = vmul.f32 %v3522_v18, %v1986_v58  ;;  %v2310_v2 = vmul.f32 %v3522_v18, %v2050_v59  ;;  %3040 = vmatmul.msk.f32.gmra.mxu2 %vm290_vm1, %v175_v54  ;;  %3104 = vmatmul.msk.f32.gmra.mxu3 %vm290_vm1, %v239_v55  ;;  %v49_v56 = vld [vmem:[%s5288_s0 + $0xe8] sm:$0xff] }
  0xee   :  { %v1114_v3 = vadd.f32 %v3502_v10, %v1113_v61  ;;  %v1306_v4 = vadd.f32 %v3502_v10, %v1305_v62  ;;  %v2634_v5 = vmax.f32 %v2378_v57, %v2442_v60  ;;  %v113_v57 = vld [vmem:[%s5288_s0 + $0x2e8] sm:$0xff] }
  0xef   :  { %v2506_v6 = vadd.f32 %v3528_v21, %v2246_v1  ;;  %v2570_v7 = vadd.f32 %v3528_v21, %v2310_v2  ;;  %2912 = vmatmul.msk.f32.gmra.mxu0 %vm290_vm1, %v47_v63  ;;  %2976 = vmatmul.msk.f32.gmra.mxu1 %vm290_vm1, %v111_v0 }
  0xf0   :  { %v1859_v8 = vmax.f32 %v1114_v3, 0.0  ;;  %v1923_v9 = vmax.f32 %v1306_v4, 0.0  ;;  %v1497_v11 = vpop.f32.mrf.mxu2  ;;  %v1689_v12 = vpop.f32.mrf.mxu3 }
  0xf1   :  { %v2698_v13 = vmax.f32 %v2506_v6, %v2570_v7  ;;  %v1498_v15 = vadd.f32 %v3502_v10, %v1497_v11  ;;  %v1690_v16 = vadd.f32 %v3502_v10, %v1689_v12  ;;  %v178_v11 = vld [vmem:[%s5288_s0 + $0x4f0] sm:$0xff] }
  0xf2   :  { %v2119_v14 = vmul.f32 %v3522_v18, %v1859_v8  ;;  %v2183_v17 = vmul.f32 %v3522_v18, %v1923_v9  ;;  %v242_v12 = vld [vmem:[%s5288_s0 + $0x6f0] sm:$0xff] }
  0xf3   :  { %v2762_v22 = vmax.f32 %v2634_v5, %v2698_v13  ;;  %v1987_v24 = vmax.f32 %v1498_v15, 0.0  ;;  %v2051_v25 = vmax.f32 %v1690_v16, 0.0 }
  0xf4   :  { %v2379_v23 = vadd.f32 %v3528_v21, %v2119_v14  ;;  %v2443_v26 = vadd.f32 %v3528_v21, %v2183_v17  ;;  %v1116_v27 = vpop.f32.mrf.mxu0  ;;  %v1308_v28 = vpop.f32.mrf.mxu1 }
  0xf5   :  { %2826 = vst [vmem:[%s5292_s5 + $0x50] sm:$0xff] %v2762_v22  ;;  %v2247_v31 = vmul.f32 %v3522_v18, %v1987_v24  ;;  %v2311_v32 = vmul.f32 %v3522_v18, %v2051_v25  ;;  %3041 = vmatmul.msk.f32.gmra.mxu2 %vm290_vm1, %v176_v19  ;;  %3105 = vmatmul.msk.f32.gmra.mxu3 %vm290_vm1, %v240_v20  ;;  %v50_v22 = vld [vmem:[%s5288_s0 + $0xf0] sm:$0xff] }
  0xf6   :  { %v1117_v33 = vadd.f32 %v3502_v10, %v1116_v27  ;;  %v1309_v34 = vadd.f32 %v3502_v10, %v1308_v28  ;;  %v2635_v35 = vmax.f32 %v2379_v23, %v2443_v26  ;;  %v114_v23 = vld [vmem:[%s5288_s0 + $0x2f0] sm:$0xff] }
  0xf7   :  { %v2507_v36 = vadd.f32 %v3528_v21, %v2247_v31  ;;  %v2571_v37 = vadd.f32 %v3528_v21, %v2311_v32  ;;  %2913 = vmatmul.msk.f32.gmra.mxu0 %vm290_vm1, %v48_v29  ;;  %2977 = vmatmul.msk.f32.gmra.mxu1 %vm290_vm1, %v112_v30 }
  0xf8   :  { %v1860_v38 = vmax.f32 %v1117_v33, 0.0  ;;  %v1924_v39 = vmax.f32 %v1309_v34, 0.0  ;;  %v1500_v40 = vpop.f32.mrf.mxu2  ;;  %v1692_v41 = vpop.f32.mrf.mxu3 }
  0xf9   :  { %v2699_v42 = vmax.f32 %v2507_v36, %v2571_v37  ;;  %v1501_v44 = vadd.f32 %v3502_v10, %v1500_v40  ;;  %v1693_v45 = vadd.f32 %v3502_v10, %v1692_v41  ;;  %v179_v40 = vld [vmem:[%s5288_s0 + $0x4f8] sm:$0xff] }
  0xfa   :  { %v2120_v43 = vmul.f32 %v3522_v18, %v1860_v38  ;;  %v2184_v46 = vmul.f32 %v3522_v18, %v1924_v39  ;;  %v243_v41 = vld [vmem:[%s5288_s0 + $0x6f8] sm:$0xff] }
  0xfb   :  { %v2763_v49 = vmax.f32 %v2635_v35, %v2699_v42  ;;  %v1988_v51 = vmax.f32 %v1501_v44, 0.0  ;;  %v2052_v52 = vmax.f32 %v1693_v45, 0.0 }
  0xfc   :  { %v2380_v50 = vadd.f32 %v3528_v21, %v2120_v43  ;;  %v2444_v53 = vadd.f32 %v3528_v21, %v2184_v46  ;;  %v1119_v54 = vpop.f32.mrf.mxu0  ;;  %v1311_v55 = vpop.f32.mrf.mxu1 }
  0xfd   :  { %2827 = vst [vmem:[%s5292_s5 + $0x58] sm:$0xff] %v2763_v49  ;;  %v2248_v58 = vmul.f32 %v3522_v18, %v1988_v51  ;;  %v2312_v59 = vmul.f32 %v3522_v18, %v2052_v52  ;;  %3042 = vmatmul.msk.f32.gmra.mxu2 %vm290_vm1, %v177_v47  ;;  %3106 = vmatmul.msk.f32.gmra.mxu3 %vm290_vm1, %v241_v48  ;;  %v51_v49 = vld [vmem:[%s5288_s0 + $0xf8] sm:$0xff] }
  0xfe   :  { %v1120_v60 = vadd.f32 %v3502_v10, %v1119_v54  ;;  %v1312_v61 = vadd.f32 %v3502_v10, %v1311_v55  ;;  %v2636_v62 = vmax.f32 %v2380_v50, %v2444_v53  ;;  %v115_v50 = vld [vmem:[%s5288_s0 + $0x2f8] sm:$0xff] }
  0xff   :  { %v2508_v63 = vadd.f32 %v3528_v21, %v2248_v58  ;;  %v2572_v0 = vadd.f32 %v3528_v21, %v2312_v59  ;;  %2914 = vmatmul.msk.f32.gmra.mxu0 %vm290_vm1, %v49_v56  ;;  %2978 = vmatmul.msk.f32.gmra.mxu1 %vm290_vm1, %v113_v57 }
 0x100   :  { %v1861_v1 = vmax.f32 %v1120_v60, 0.0  ;;  %v1925_v2 = vmax.f32 %v1312_v61, 0.0  ;;  %v1503_v3 = vpop.f32.mrf.mxu2  ;;  %v1695_v4 = vpop.f32.mrf.mxu3 }
 0x101   :  { %v2700_v5 = vmax.f32 %v2508_v63, %v2572_v0  ;;  %v1504_v7 = vadd.f32 %v3502_v10, %v1503_v3  ;;  %v1696_v8 = vadd.f32 %v3502_v10, %v1695_v4  ;;  %v180_v3 = vld [vmem:[%s5288_s0 + $0x500] sm:$0xff] }
 0x102   :  { %v2121_v6 = vmul.f32 %v3522_v18, %v1861_v1  ;;  %v2185_v9 = vmul.f32 %v3522_v18, %v1925_v2  ;;  %v244_v4 = vld [vmem:[%s5288_s0 + $0x700] sm:$0xff] }
 0x103   :  { %v2764_v13 = vmax.f32 %v2636_v62, %v2700_v5  ;;  %v1989_v15 = vmax.f32 %v1504_v7, 0.0  ;;  %v2053_v16 = vmax.f32 %v1696_v8, 0.0 }
 0x104   :  { %v2381_v14 = vadd.f32 %v3528_v21, %v2121_v6  ;;  %v2445_v17 = vadd.f32 %v3528_v21, %v2185_v9  ;;  %v1122_v19 = vpop.f32.mrf.mxu0  ;;  %v1314_v20 = vpop.f32.mrf.mxu1 }
 0x105   :  { %2828 = vst [vmem:[%s5292_s5 + $0x60] sm:$0xff] %v2764_v13  ;;  %v2249_v24 = vmul.f32 %v3522_v18, %v1989_v15  ;;  %v2313_v25 = vmul.f32 %v3522_v18, %v2053_v16  ;;  %3043 = vmatmul.msk.f32.gmra.mxu2 %vm290_vm1, %v178_v11  ;;  %3107 = vmatmul.msk.f32.gmra.mxu3 %vm290_vm1, %v242_v12  ;;  %v116_v13 = vld [vmem:[%s5288_s0 + $0x300] sm:$0xff] }
 0x106   :  { %v1123_v26 = vadd.f32 %v3502_v10, %v1122_v19  ;;  %v1315_v27 = vadd.f32 %v3502_v10, %v1314_v20  ;;  %v2637_v28 = vmax.f32 %v2381_v14, %v2445_v17  ;;  %v4022_v16 = vld [vmem:[%s5289_s2] ss:$0 sm:$0xff] }
 0x107   :  { %v2509_v29 = vadd.f32 %v3528_v21, %v2249_v24  ;;  %v2573_v30 = vadd.f32 %v3528_v21, %v2313_v25  ;;  %2915 = vmatmul.msk.f32.gmra.mxu0 %vm290_vm1, %v50_v22  ;;  %2979 = vmatmul.msk.f32.gmra.mxu1 %vm290_vm1, %v114_v23 }
 0x108   :  { %v1862_v31 = vmax.f32 %v1123_v26, 0.0  ;;  %v1926_v32 = vmax.f32 %v1315_v27, 0.0  ;;  %v1506_v33 = vpop.f32.mrf.mxu2  ;;  %v1698_v34 = vpop.f32.mrf.mxu3 }
 0x109   :  { %v2701_v35 = vmax.f32 %v2509_v29, %v2573_v30  ;;  %v1507_v37 = vadd.f32 %v3502_v10, %v1506_v33  ;;  %v1699_v38 = vadd.f32 %v3502_v10, %v1698_v34  ;;  %v245_v33 = vld [vmem:[%s5288_s0 + $0x708] sm:$0xff] }
 0x10a   :  { %v2122_v36 = vmul.f32 %v3522_v18, %v1862_v31  ;;  %v2186_v39 = vmul.f32 %v3522_v18, %v1926_v32  ;;  %v181_v32 = vld [vmem:[%s5288_s0 + $0x508] sm:$0xff] }
 0x10b   :  { %v2765_v42 = vmax.f32 %v2637_v28, %v2701_v35  ;;  %v1990_v44 = vmax.f32 %v1507_v37, 0.0  ;;  %v2054_v45 = vmax.f32 %v1699_v38, 0.0  ;;  %v4033_v28 = vld [vmem:[%s5290_s3] ss:$0 sm:$0xff] }
 0x10c   :  { %v2382_v43 = vadd.f32 %v3528_v21, %v2122_v36  ;;  %v2446_v46 = vadd.f32 %v3528_v21, %v2186_v39  ;;  %v1125_v47 = vpop.f32.mrf.mxu0  ;;  %v1317_v48 = vpop.f32.mrf.mxu1  ;;  %v4048_v35 = vld [vmem:[%s5291_s4] ss:$0 sm:$0xff] }
 0x10d   :  { %2829 = vst [vmem:[%s5292_s5 + $0x68] sm:$0xff] %v2765_v42  ;;  %v2250_v51 = vmul.f32 %v3522_v18, %v1990_v44  ;;  %v2314_v52 = vmul.f32 %v3522_v18, %v2054_v45  ;;  %3044 = vmatmul.msk.f32.gmra.mxu2 %vm290_vm1, %v179_v40  ;;  %3108 = vmatmul.msk.f32.gmra.mxu3 %vm290_vm1, %v243_v41  ;;  %v53_v42 = vld [vmem:[%s5288_s0 + $0x108] sm:$0xff] }
 0x10e   :  { %v1126_v53 = vadd.f32 %v3502_v10, %v1125_v47  ;;  %v1318_v54 = vadd.f32 %v3502_v10, %v1317_v48  ;;  %v2638_v55 = vmax.f32 %v2382_v43, %v2446_v46  ;;  %v117_v43 = vld [vmem:[%s5288_s0 + $0x308] sm:$0xff] }
 0x10f   :  { %v2510_v56 = vadd.f32 %v3528_v21, %v2250_v51  ;;  %v2574_v57 = vadd.f32 %v3528_v21, %v2314_v52  ;;  %2916 = vmatmul.msk.f32.gmra.mxu0 %vm290_vm1, %v51_v49  ;;  %2980 = vmatmul.msk.f32.gmra.mxu1 %vm290_vm1, %v115_v50 }
 0x110   :  { %v1863_v58 = vmax.f32 %v1126_v53, 0.0  ;;  %v1927_v59 = vmax.f32 %v1318_v54, 0.0  ;;  %v1509_v60 = vpop.f32.mrf.mxu2  ;;  %v1701_v61 = vpop.f32.mrf.mxu3 }
 0x111   :  { %v2702_v62 = vmax.f32 %v2510_v56, %v2574_v57  ;;  %v1510_v0 = vadd.f32 %v3502_v10, %v1509_v60  ;;  %v1702_v1 = vadd.f32 %v3502_v10, %v1701_v61  ;;  %v52_v10 = vld [vmem:[%s5288_s0 + $0x100] sm:$0xff]  ;;  %v182_v60 = vld [vmem:[%s5288_s0 + $0x510] sm:$0xff] }
 0x112   :  { %v2123_v63 = vmul.f32 %v3522_v18, %v1863_v58  ;;  %v2187_v2 = vmul.f32 %v3522_v18, %v1927_v59  ;;  %v246_v61 = vld [vmem:[%s5288_s0 + $0x710] sm:$0xff] }
 0x113   :  { %v2766_v5 = vmax.f32 %v2638_v55, %v2702_v62  ;;  %v1991_v7 = vmax.f32 %v1510_v0, 0.0  ;;  %v2055_v8 = vmax.f32 %v1702_v1, 0.0 }
 0x114   :  { %v2383_v6 = vadd.f32 %v3528_v21, %v2123_v63  ;;  %v2447_v9 = vadd.f32 %v3528_v21, %v2187_v2  ;;  %v1128_v11 = vpop.f32.mrf.mxu0  ;;  %v1320_v12 = vpop.f32.mrf.mxu1 }
 0x115   :  { %2830 = vst [vmem:[%s5292_s5 + $0x70] sm:$0xff] %v2766_v5  ;;  %v2251_v14 = vmul.f32 %v3522_v18, %v1991_v7  ;;  %v2315_v15 = vmul.f32 %v3522_v18, %v2055_v8  ;;  %3045 = vmatmul.msk.f32.gmra.mxu2 %vm290_vm1, %v180_v3  ;;  %3109 = vmatmul.msk.f32.gmra.mxu3 %vm290_vm1, %v244_v4  ;;  %v54_v5 = vld [vmem:[%s5288_s0 + $0x110] sm:$0xff] }
 0x116   :  { %v1129_v17 = vadd.f32 %v4022_v16, %v1128_v11  ;;  %v1321_v19 = vadd.f32 %v4022_v16, %v1320_v12  ;;  %v2639_v20 = vmax.f32 %v2383_v6, %v2447_v9  ;;  %v118_v6 = vld [vmem:[%s5288_s0 + $0x310] sm:$0xff] }
 0x117   :  { %v2511_v22 = vadd.f32 %v3528_v21, %v2251_v14  ;;  %v2575_v23 = vadd.f32 %v3528_v21, %v2315_v15  ;;  %2917 = vmatmul.msk.f32.gmra.mxu0 %vm290_vm1, %v52_v10  ;;  %2981 = vmatmul.msk.f32.gmra.mxu1 %vm290_vm1, %v116_v13 }
 0x118   :  { %v1864_v24 = vmax.f32 %v1129_v17, 0.0  ;;  %v1928_v18 = vmax.f32 %v1321_v19, 0.0  ;;  %v1512_v25 = vpop.f32.mrf.mxu2  ;;  %v1704_v26 = vpop.f32.mrf.mxu3 }
 0x119   :  { %v2703_v27 = vmax.f32 %v2511_v22, %v2575_v23  ;;  %v1513_v30 = vadd.f32 %v4022_v16, %v1512_v25  ;;  %v1705_v21 = vadd.f32 %v4022_v16, %v1704_v26  ;;  %v183_v25 = vld [vmem:[%s5288_s0 + $0x518] sm:$0xff] }
 0x11a   :  { %v2124_v29 = vmul.f32 %v4033_v28, %v1864_v24  ;;  %v2188_v31 = vmul.f32 %v4033_v28, %v1928_v18  ;;  %v247_v26 = vld [vmem:[%s5288_s0 + $0x718] sm:$0xff] }
 0x11b   :  { %v2767_v34 = vmax.f32 %v2639_v20, %v2703_v27  ;;  %v1992_v37 = vmax.f32 %v1513_v30, 0.0  ;;  %v2056_v38 = vmax.f32 %v1705_v21, 0.0 }
 0x11c   :  { %v2384_v36 = vadd.f32 %v4048_v35, %v2124_v29  ;;  %v2448_v39 = vadd.f32 %v4048_v35, %v2188_v31  ;;  %v1131_v40 = vpop.f32.mrf.mxu0  ;;  %v1323_v41 = vpop.f32.mrf.mxu1 }
 0x11d   :  { %2831 = vst [vmem:[%s5292_s5 + $0x78] sm:$0xff] %v2767_v34  ;;  %v2252_v44 = vmul.f32 %v4033_v28, %v1992_v37  ;;  %v2316_v45 = vmul.f32 %v4033_v28, %v2056_v38  ;;  %3046 = vmatmul.msk.f32.gmra.mxu2 %vm290_vm1, %v181_v32  ;;  %3110 = vmatmul.msk.f32.gmra.mxu3 %vm290_vm1, %v245_v33  ;;  %v55_v34 = vld [vmem:[%s5288_s0 + $0x118] sm:$0xff] }
 0x11e   :  { %v1132_v46 = vadd.f32 %v4022_v16, %v1131_v40  ;;  %v1324_v47 = vadd.f32 %v4022_v16, %v1323_v41  ;;  %v2640_v48 = vmax.f32 %v2384_v36, %v2448_v39  ;;  %v119_v36 = vld [vmem:[%s5288_s0 + $0x318] sm:$0xff] }
 0x11f   :  { %v2512_v49 = vadd.f32 %v4048_v35, %v2252_v44  ;;  %v2576_v50 = vadd.f32 %v4048_v35, %v2316_v45  ;;  %2918 = vmatmul.msk.f32.gmra.mxu0 %vm290_vm1, %v53_v42  ;;  %2982 = vmatmul.msk.f32.gmra.mxu1 %vm290_vm1, %v117_v43 }
 0x120   :  { %v1865_v51 = vmax.f32 %v1132_v46, 0.0  ;;  %v1929_v52 = vmax.f32 %v1324_v47, 0.0  ;;  %v1515_v53 = vpop.f32.mrf.mxu2  ;;  %v1707_v54 = vpop.f32.mrf.mxu3 }
 0x121   :  { %v2704_v55 = vmax.f32 %v2512_v49, %v2576_v50  ;;  %v1516_v57 = vadd.f32 %v4022_v16, %v1515_v53  ;;  %v1708_v58 = vadd.f32 %v4022_v16, %v1707_v54  ;;  %v184_v53 = vld [vmem:[%s5288_s0 + $0x520] sm:$0xff] }
 0x122   :  { %v2125_v56 = vmul.f32 %v4033_v28, %v1865_v51  ;;  %v2189_v59 = vmul.f32 %v4033_v28, %v1929_v52  ;;  %v248_v54 = vld [vmem:[%s5288_s0 + $0x720] sm:$0xff] }
 0x123   :  { %v2768_v62 = vmax.f32 %v2640_v48, %v2704_v55  ;;  %v1993_v0 = vmax.f32 %v1516_v57, 0.0  ;;  %v2057_v1 = vmax.f32 %v1708_v58, 0.0 }
 0x124   :  { %v2385_v63 = vadd.f32 %v4048_v35, %v2125_v56  ;;  %v2449_v2 = vadd.f32 %v4048_v35, %v2189_v59  ;;  %v1134_v3 = vpop.f32.mrf.mxu0  ;;  %v1326_v4 = vpop.f32.mrf.mxu1 }
 0x125   :  { %2832 = vst [vmem:[%s5292_s5 + $0x80] sm:$0xff] %v2768_v62  ;;  %v2253_v7 = vmul.f32 %v4033_v28, %v1993_v0  ;;  %v2317_v8 = vmul.f32 %v4033_v28, %v2057_v1  ;;  %3047 = vmatmul.msk.f32.gmra.mxu2 %vm290_vm1, %v182_v60  ;;  %3111 = vmatmul.msk.f32.gmra.mxu3 %vm290_vm1, %v246_v61  ;;  %v56_v62 = vld [vmem:[%s5288_s0 + $0x120] sm:$0xff] }
 0x126   :  { %v1135_v9 = vadd.f32 %v4022_v16, %v1134_v3  ;;  %v1327_v11 = vadd.f32 %v4022_v16, %v1326_v4  ;;  %v2641_v12 = vmax.f32 %v2385_v63, %v2449_v2  ;;  %v120_v63 = vld [vmem:[%s5288_s0 + $0x320] sm:$0xff] }
 0x127   :  { %v2513_v10 = vadd.f32 %v4048_v35, %v2253_v7  ;;  %v2577_v13 = vadd.f32 %v4048_v35, %v2317_v8  ;;  %2919 = vmatmul.msk.f32.gmra.mxu0 %vm290_vm1, %v54_v5  ;;  %2983 = vmatmul.msk.f32.gmra.mxu1 %vm290_vm1, %v118_v6 }
 0x128   :  { %v1866_v14 = vmax.f32 %v1135_v9, 0.0  ;;  %v1930_v15 = vmax.f32 %v1327_v11, 0.0  ;;  %v1518_v17 = vpop.f32.mrf.mxu2  ;;  %v1710_v19 = vpop.f32.mrf.mxu3 }
 0x129   :  { %v2705_v20 = vmax.f32 %v2513_v10, %v2577_v13  ;;  %v1519_v23 = vadd.f32 %v4022_v16, %v1518_v17  ;;  %v1711_v24 = vadd.f32 %v4022_v16, %v1710_v19  ;;  %v185_v17 = vld [vmem:[%s5288_s0 + $0x528] sm:$0xff] }
 0x12a   :  { %v2126_v22 = vmul.f32 %v4033_v28, %v1866_v14  ;;  %v2190_v18 = vmul.f32 %v4033_v28, %v1930_v15  ;;  %v249_v19 = vld [vmem:[%s5288_s0 + $0x728] sm:$0xff] }
 0x12b   :  { %v2769_v27 = vmax.f32 %v2641_v12, %v2705_v20  ;;  %v1994_v30 = vmax.f32 %v1519_v23, 0.0  ;;  %v2058_v21 = vmax.f32 %v1711_v24, 0.0 }
 0x12c   :  { %v2386_v29 = vadd.f32 %v4048_v35, %v2126_v22  ;;  %v2450_v31 = vadd.f32 %v4048_v35, %v2190_v18  ;;  %v1137_v32 = vpop.f32.mrf.mxu0  ;;  %v1329_v33 = vpop.f32.mrf.mxu1 }
 0x12d   :  { %2833 = vst [vmem:[%s5292_s5 + $0x88] sm:$0xff] %v2769_v27  ;;  %v2254_v37 = vmul.f32 %v4033_v28, %v1994_v30  ;;  %v2318_v38 = vmul.f32 %v4033_v28, %v2058_v21  ;;  %3048 = vmatmul.msk.f32.gmra.mxu2 %vm290_vm1, %v183_v25  ;;  %3112 = vmatmul.msk.f32.gmra.mxu3 %vm290_vm1, %v247_v26  ;;  %v57_v27 = vld [vmem:[%s5288_s0 + $0x128] sm:$0xff] }
 0x12e   :  { %v1138_v39 = vadd.f32 %v4022_v16, %v1137_v32  ;;  %v1330_v40 = vadd.f32 %v4022_v16, %v1329_v33  ;;  %v2642_v41 = vmax.f32 %v2386_v29, %v2450_v31  ;;  %v121_v29 = vld [vmem:[%s5288_s0 + $0x328] sm:$0xff] }
 0x12f   :  { %v2514_v42 = vadd.f32 %v4048_v35, %v2254_v37  ;;  %v2578_v43 = vadd.f32 %v4048_v35, %v2318_v38  ;;  %2920 = vmatmul.msk.f32.gmra.mxu0 %vm290_vm1, %v55_v34  ;;  %2984 = vmatmul.msk.f32.gmra.mxu1 %vm290_vm1, %v119_v36 }
 0x130   :  { %v1867_v44 = vmax.f32 %v1138_v39, 0.0  ;;  %v1931_v45 = vmax.f32 %v1330_v40, 0.0  ;;  %v1521_v46 = vpop.f32.mrf.mxu2  ;;  %v1713_v47 = vpop.f32.mrf.mxu3 }
 0x131   :  { %v2706_v48 = vmax.f32 %v2514_v42, %v2578_v43  ;;  %v1522_v50 = vadd.f32 %v4022_v16, %v1521_v46  ;;  %v1714_v51 = vadd.f32 %v4022_v16, %v1713_v47  ;;  %v186_v46 = vld [vmem:[%s5288_s0 + $0x530] sm:$0xff] }
 0x132   :  { %v2127_v49 = vmul.f32 %v4033_v28, %v1867_v44  ;;  %v2191_v52 = vmul.f32 %v4033_v28, %v1931_v45  ;;  %v250_v47 = vld [vmem:[%s5288_s0 + $0x730] sm:$0xff] }
 0x133   :  { %v2770_v55 = vmax.f32 %v2642_v41, %v2706_v48  ;;  %v1995_v57 = vmax.f32 %v1522_v50, 0.0  ;;  %v2059_v58 = vmax.f32 %v1714_v51, 0.0 }
 0x134   :  { %v2387_v56 = vadd.f32 %v4048_v35, %v2127_v49  ;;  %v2451_v59 = vadd.f32 %v4048_v35, %v2191_v52  ;;  %v1140_v60 = vpop.f32.mrf.mxu0  ;;  %v1332_v61 = vpop.f32.mrf.mxu1 }
 0x135   :  { %2834 = vst [vmem:[%s5292_s5 + $0x90] sm:$0xff] %v2770_v55  ;;  %v2255_v0 = vmul.f32 %v4033_v28, %v1995_v57  ;;  %v2319_v1 = vmul.f32 %v4033_v28, %v2059_v58  ;;  %3049 = vmatmul.msk.f32.gmra.mxu2 %vm290_vm1, %v184_v53  ;;  %3113 = vmatmul.msk.f32.gmra.mxu3 %vm290_vm1, %v248_v54  ;;  %v58_v55 = vld [vmem:[%s5288_s0 + $0x130] sm:$0xff] }
 0x136   :  { %v1141_v2 = vadd.f32 %v4022_v16, %v1140_v60  ;;  %v1333_v3 = vadd.f32 %v4022_v16, %v1332_v61  ;;  %v2643_v4 = vmax.f32 %v2387_v56, %v2451_v59  ;;  %v122_v56 = vld [vmem:[%s5288_s0 + $0x330] sm:$0xff] }
 0x137   :  { %v2515_v5 = vadd.f32 %v4048_v35, %v2255_v0  ;;  %v2579_v6 = vadd.f32 %v4048_v35, %v2319_v1  ;;  %2921 = vmatmul.msk.f32.gmra.mxu0 %vm290_vm1, %v56_v62  ;;  %2985 = vmatmul.msk.f32.gmra.mxu1 %vm290_vm1, %v120_v63 }
 0x138   :  { %v1868_v7 = vmax.f32 %v1141_v2, 0.0  ;;  %v1932_v8 = vmax.f32 %v1333_v3, 0.0  ;;  %v1524_v9 = vpop.f32.mrf.mxu2  ;;  %v1716_v11 = vpop.f32.mrf.mxu3 }
 0x139   :  { %v2707_v12 = vmax.f32 %v2515_v5, %v2579_v6  ;;  %v1525_v13 = vadd.f32 %v4022_v16, %v1524_v9  ;;  %v1717_v14 = vadd.f32 %v4022_v16, %v1716_v11  ;;  %v187_v9 = vld [vmem:[%s5288_s0 + $0x538] sm:$0xff] }
 0x13a   :  { %v2128_v10 = vmul.f32 %v4033_v28, %v1868_v7  ;;  %v2192_v15 = vmul.f32 %v4033_v28, %v1932_v8  ;;  %v251_v11 = vld [vmem:[%s5288_s0 + $0x738] sm:$0xff] }
 0x13b   :  { %v2771_v20 = vmax.f32 %v2643_v4, %v2707_v12  ;;  %v1996_v23 = vmax.f32 %v1525_v13, 0.0  ;;  %v2060_v24 = vmax.f32 %v1717_v14, 0.0 }
 0x13c   :  { %v2388_v22 = vadd.f32 %v4048_v35, %v2128_v10  ;;  %v2452_v18 = vadd.f32 %v4048_v35, %v2192_v15  ;;  %v1143_v25 = vpop.f32.mrf.mxu0  ;;  %v1335_v26 = vpop.f32.mrf.mxu1 }
 0x13d   :  { %2835 = vst [vmem:[%s5292_s5 + $0x98] sm:$0xff] %v2771_v20  ;;  %v2256_v30 = vmul.f32 %v4033_v28, %v1996_v23  ;;  %v2320_v21 = vmul.f32 %v4033_v28, %v2060_v24  ;;  %3050 = vmatmul.msk.f32.gmra.mxu2 %vm290_vm1, %v185_v17  ;;  %3114 = vmatmul.msk.f32.gmra.mxu3 %vm290_vm1, %v249_v19  ;;  %v59_v20 = vld [vmem:[%s5288_s0 + $0x138] sm:$0xff] }
 0x13e   :  { %v1144_v31 = vadd.f32 %v4022_v16, %v1143_v25  ;;  %v1336_v32 = vadd.f32 %v4022_v16, %v1335_v26  ;;  %v2644_v33 = vmax.f32 %v2388_v22, %v2452_v18  ;;  %v123_v22 = vld [vmem:[%s5288_s0 + $0x338] sm:$0xff] }
 0x13f   :  { %v2516_v34 = vadd.f32 %v4048_v35, %v2256_v30  ;;  %v2580_v36 = vadd.f32 %v4048_v35, %v2320_v21  ;;  %2922 = vmatmul.msk.f32.gmra.mxu0 %vm290_vm1, %v57_v27  ;;  %2986 = vmatmul.msk.f32.gmra.mxu1 %vm290_vm1, %v121_v29 }
 0x140   :  { %v1869_v37 = vmax.f32 %v1144_v31, 0.0  ;;  %v1933_v38 = vmax.f32 %v1336_v32, 0.0  ;;  %v1527_v39 = vpop.f32.mrf.mxu2  ;;  %v1719_v40 = vpop.f32.mrf.mxu3 }
 0x141   :  { %v2708_v41 = vmax.f32 %v2516_v34, %v2580_v36  ;;  %v1528_v43 = vadd.f32 %v4022_v16, %v1527_v39  ;;  %v1720_v44 = vadd.f32 %v4022_v16, %v1719_v40  ;;  %v188_v39 = vld [vmem:[%s5288_s0 + $0x540] sm:$0xff] }
 0x142   :  { %v2129_v42 = vmul.f32 %v4033_v28, %v1869_v37  ;;  %v2193_v45 = vmul.f32 %v4033_v28, %v1933_v38  ;;  %v252_v40 = vld [vmem:[%s5288_s0 + $0x740] sm:$0xff] }
 0x143   :  { %v2772_v48 = vmax.f32 %v2644_v33, %v2708_v41  ;;  %v1997_v50 = vmax.f32 %v1528_v43, 0.0  ;;  %v2061_v51 = vmax.f32 %v1720_v44, 0.0 }
 0x144   :  { %v2389_v49 = vadd.f32 %v4048_v35, %v2129_v42  ;;  %v2453_v52 = vadd.f32 %v4048_v35, %v2193_v45  ;;  %v1146_v53 = vpop.f32.mrf.mxu0  ;;  %v1338_v54 = vpop.f32.mrf.mxu1 }
 0x145   :  { %2836 = vst [vmem:[%s5292_s5 + $0xa0] sm:$0xff] %v2772_v48  ;;  %v2257_v57 = vmul.f32 %v4033_v28, %v1997_v50  ;;  %v2321_v58 = vmul.f32 %v4033_v28, %v2061_v51  ;;  %3051 = vmatmul.msk.f32.gmra.mxu2 %vm290_vm1, %v186_v46  ;;  %3115 = vmatmul.msk.f32.gmra.mxu3 %vm290_vm1, %v250_v47  ;;  %v60_v48 = vld [vmem:[%s5288_s0 + $0x140] sm:$0xff] }
 0x146   :  { %v1147_v59 = vadd.f32 %v4022_v16, %v1146_v53  ;;  %v1339_v60 = vadd.f32 %v4022_v16, %v1338_v54  ;;  %v2645_v61 = vmax.f32 %v2389_v49, %v2453_v52  ;;  %v124_v49 = vld [vmem:[%s5288_s0 + $0x340] sm:$0xff] }
 0x147   :  { %v2517_v62 = vadd.f32 %v4048_v35, %v2257_v57  ;;  %v2581_v63 = vadd.f32 %v4048_v35, %v2321_v58  ;;  %2923 = vmatmul.msk.f32.gmra.mxu0 %vm290_vm1, %v58_v55  ;;  %2987 = vmatmul.msk.f32.gmra.mxu1 %vm290_vm1, %v122_v56 }
 0x148   :  { %v1870_v0 = vmax.f32 %v1147_v59, 0.0  ;;  %v1934_v1 = vmax.f32 %v1339_v60, 0.0  ;;  %v1530_v2 = vpop.f32.mrf.mxu2  ;;  %v1722_v3 = vpop.f32.mrf.mxu3 }
 0x149   :  { %v2709_v4 = vmax.f32 %v2517_v62, %v2581_v63  ;;  %v1531_v6 = vadd.f32 %v4022_v16, %v1530_v2  ;;  %v1723_v7 = vadd.f32 %v4022_v16, %v1722_v3  ;;  %v189_v2 = vld [vmem:[%s5288_s0 + $0x548] sm:$0xff] }
 0x14a   :  { %v2130_v5 = vmul.f32 %v4033_v28, %v1870_v0  ;;  %v2194_v8 = vmul.f32 %v4033_v28, %v1934_v1  ;;  %v253_v3 = vld [vmem:[%s5288_s0 + $0x748] sm:$0xff] }
 0x14b   :  { %v2773_v12 = vmax.f32 %v2645_v61, %v2709_v4  ;;  %v1998_v13 = vmax.f32 %v1531_v6, 0.0  ;;  %v2062_v14 = vmax.f32 %v1723_v7, 0.0 }
 0x14c   :  { %v2390_v10 = vadd.f32 %v4048_v35, %v2130_v5  ;;  %v2454_v15 = vadd.f32 %v4048_v35, %v2194_v8  ;;  %v1149_v17 = vpop.f32.mrf.mxu0  ;;  %v1341_v19 = vpop.f32.mrf.mxu1 }
 0x14d   :  { %2837 = vst [vmem:[%s5292_s5 + $0xa8] sm:$0xff] %v2773_v12  ;;  %v2258_v23 = vmul.f32 %v4033_v28, %v1998_v13  ;;  %v2322_v24 = vmul.f32 %v4033_v28, %v2062_v14  ;;  %3052 = vmatmul.msk.f32.gmra.mxu2 %vm290_vm1, %v187_v9  ;;  %3116 = vmatmul.msk.f32.gmra.mxu3 %vm290_vm1, %v251_v11  ;;  %v61_v12 = vld [vmem:[%s5288_s0 + $0x148] sm:$0xff] }
 0x14e   :  { %v1150_v18 = vadd.f32 %v4022_v16, %v1149_v17  ;;  %v1342_v25 = vadd.f32 %v4022_v16, %v1341_v19  ;;  %v2646_v26 = vmax.f32 %v2390_v10, %v2454_v15  ;;  %v125_v10 = vld [vmem:[%s5288_s0 + $0x348] sm:$0xff] }
 0x14f   :  { %v2518_v27 = vadd.f32 %v4048_v35, %v2258_v23  ;;  %v2582_v29 = vadd.f32 %v4048_v35, %v2322_v24  ;;  %2924 = vmatmul.msk.f32.gmra.mxu0 %vm290_vm1, %v59_v20  ;;  %2988 = vmatmul.msk.f32.gmra.mxu1 %vm290_vm1, %v123_v22 }
 0x150   :  { %v1871_v30 = vmax.f32 %v1150_v18, 0.0  ;;  %v1935_v21 = vmax.f32 %v1342_v25, 0.0  ;;  %v1533_v31 = vpop.f32.mrf.mxu2  ;;  %v1725_v32 = vpop.f32.mrf.mxu3 }
 0x151   :  { %v2710_v33 = vmax.f32 %v2518_v27, %v2582_v29  ;;  %v1534_v36 = vadd.f32 %v4022_v16, %v1533_v31  ;;  %v1726_v37 = vadd.f32 %v4022_v16, %v1725_v32  ;;  %v190_v31 = vld [vmem:[%s5288_s0 + $0x550] sm:$0xff] }
 0x152   :  { %v2131_v34 = vmul.f32 %v4033_v28, %v1871_v30  ;;  %v2195_v38 = vmul.f32 %v4033_v28, %v1935_v21  ;;  %v254_v32 = vld [vmem:[%s5288_s0 + $0x750] sm:$0xff] }
 0x153   :  { %v2774_v41 = vmax.f32 %v2646_v26, %v2710_v33  ;;  %v1999_v43 = vmax.f32 %v1534_v36, 0.0  ;;  %v2063_v44 = vmax.f32 %v1726_v37, 0.0 }
 0x154   :  { %v2391_v42 = vadd.f32 %v4048_v35, %v2131_v34  ;;  %v2455_v45 = vadd.f32 %v4048_v35, %v2195_v38  ;;  %v1152_v46 = vpop.f32.mrf.mxu0  ;;  %v1344_v47 = vpop.f32.mrf.mxu1 }
 0x155   :  { %2838 = vst [vmem:[%s5292_s5 + $0xb0] sm:$0xff] %v2774_v41  ;;  %v2259_v50 = vmul.f32 %v4033_v28, %v1999_v43  ;;  %v2323_v51 = vmul.f32 %v4033_v28, %v2063_v44  ;;  %3053 = vmatmul.msk.f32.gmra.mxu2 %vm290_vm1, %v188_v39  ;;  %3117 = vmatmul.msk.f32.gmra.mxu3 %vm290_vm1, %v252_v40  ;;  %v62_v41 = vld [vmem:[%s5288_s0 + $0x150] sm:$0xff] }
 0x156   :  { %v1153_v52 = vadd.f32 %v4022_v16, %v1152_v46  ;;  %v1345_v53 = vadd.f32 %v4022_v16, %v1344_v47  ;;  %v2647_v54 = vmax.f32 %v2391_v42, %v2455_v45  ;;  %v126_v42 = vld [vmem:[%s5288_s0 + $0x350] sm:$0xff] }
 0x157   :  { %v2519_v55 = vadd.f32 %v4048_v35, %v2259_v50  ;;  %v2583_v56 = vadd.f32 %v4048_v35, %v2323_v51  ;;  %2925 = vmatmul.msk.f32.gmra.mxu0 %vm290_vm1, %v60_v48  ;;  %2989 = vmatmul.msk.f32.gmra.mxu1 %vm290_vm1, %v124_v49 }
 0x158   :  { %v1872_v57 = vmax.f32 %v1153_v52, 0.0  ;;  %v1936_v58 = vmax.f32 %v1345_v53, 0.0  ;;  %v1536_v59 = vpop.f32.mrf.mxu2  ;;  %v1728_v60 = vpop.f32.mrf.mxu3 }
 0x159   :  { %v2711_v61 = vmax.f32 %v2519_v55, %v2583_v56  ;;  %v1537_v63 = vadd.f32 %v4022_v16, %v1536_v59  ;;  %v1729_v0 = vadd.f32 %v4022_v16, %v1728_v60  ;;  %v191_v59 = vld [vmem:[%s5288_s0 + $0x558] sm:$0xff] }
 0x15a   :  { %v2132_v62 = vmul.f32 %v4033_v28, %v1872_v57  ;;  %v2196_v1 = vmul.f32 %v4033_v28, %v1936_v58  ;;  %v255_v60 = vld [vmem:[%s5288_s0 + $0x758] sm:$0xff] }
 0x15b   :  { %v2775_v4 = vmax.f32 %v2647_v54, %v2711_v61  ;;  %v2000_v6 = vmax.f32 %v1537_v63, 0.0  ;;  %v2064_v7 = vmax.f32 %v1729_v0, 0.0 }
 0x15c   :  { %v2392_v5 = vadd.f32 %v4048_v35, %v2132_v62  ;;  %v2456_v8 = vadd.f32 %v4048_v35, %v2196_v1  ;;  %v1155_v9 = vpop.f32.mrf.mxu0  ;;  %v1347_v11 = vpop.f32.mrf.mxu1 }
 0x15d   :  { %2839 = vst [vmem:[%s5292_s5 + $0xb8] sm:$0xff] %v2775_v4  ;;  %v2260_v13 = vmul.f32 %v4033_v28, %v2000_v6  ;;  %v2324_v14 = vmul.f32 %v4033_v28, %v2064_v7  ;;  %3054 = vmatmul.msk.f32.gmra.mxu2 %vm290_vm1, %v189_v2  ;;  %3118 = vmatmul.msk.f32.gmra.mxu3 %vm290_vm1, %v253_v3  ;;  %v63_v4 = vld [vmem:[%s5288_s0 + $0x158] sm:$0xff] }
 0x15e   :  { %v1156_v15 = vadd.f32 %v4022_v16, %v1155_v9  ;;  %v1348_v17 = vadd.f32 %v4022_v16, %v1347_v11  ;;  %v2648_v19 = vmax.f32 %v2392_v5, %v2456_v8  ;;  %v127_v5 = vld [vmem:[%s5288_s0 + $0x358] sm:$0xff] }
 0x15f   :  { %v2520_v20 = vadd.f32 %v4048_v35, %v2260_v13  ;;  %v2584_v22 = vadd.f32 %v4048_v35, %v2324_v14  ;;  %2926 = vmatmul.msk.f32.gmra.mxu0 %vm290_vm1, %v61_v12  ;;  %2990 = vmatmul.msk.f32.gmra.mxu1 %vm290_vm1, %v125_v10 }
 0x160   :  { %v1873_v23 = vmax.f32 %v1156_v15, 0.0  ;;  %v1937_v24 = vmax.f32 %v1348_v17, 0.0  ;;  %v1539_v18 = vpop.f32.mrf.mxu2  ;;  %v1731_v25 = vpop.f32.mrf.mxu3 }
 0x161   :  { %v2712_v26 = vmax.f32 %v2520_v20, %v2584_v22  ;;  %v1540_v29 = vadd.f32 %v4022_v16, %v1539_v18  ;;  %v1732_v30 = vadd.f32 %v4022_v16, %v1731_v25  ;;  %v192_v18 = vld [vmem:[%s5288_s0 + $0x560] sm:$0xff] }
 0x162   :  { %v2133_v27 = vmul.f32 %v4033_v28, %v1873_v23  ;;  %v2197_v21 = vmul.f32 %v4033_v28, %v1937_v24  ;;  %v256_v25 = vld [vmem:[%s5288_s0 + $0x760] sm:$0xff] }
 0x163   :  { %v2776_v33 = vmax.f32 %v2648_v19, %v2712_v26  ;;  %v2001_v36 = vmax.f32 %v1540_v29, 0.0  ;;  %v2065_v37 = vmax.f32 %v1732_v30, 0.0 }
 0x164   :  { %v2393_v34 = vadd.f32 %v4048_v35, %v2133_v27  ;;  %v2457_v38 = vadd.f32 %v4048_v35, %v2197_v21  ;;  %v1158_v39 = vpop.f32.mrf.mxu0  ;;  %v1350_v40 = vpop.f32.mrf.mxu1 }
 0x165   :  { %2840 = vst [vmem:[%s5292_s5 + $0xc0] sm:$0xff] %v2776_v33  ;;  %v2261_v43 = vmul.f32 %v4033_v28, %v2001_v36  ;;  %v2325_v44 = vmul.f32 %v4033_v28, %v2065_v37  ;;  %3055 = vmatmul.msk.f32.gmra.mxu2 %vm290_vm1, %v190_v31  ;;  %3119 = vmatmul.msk.f32.gmra.mxu3 %vm290_vm1, %v254_v32  ;;  %v64_v33 = vld [vmem:[%s5288_s0 + $0x160] sm:$0xff] }
 0x166   :  { %v1159_v45 = vadd.f32 %v4022_v16, %v1158_v39  ;;  %v1351_v46 = vadd.f32 %v4022_v16, %v1350_v40  ;;  %v2649_v47 = vmax.f32 %v2393_v34, %v2457_v38  ;;  %v128_v34 = vld [vmem:[%s5288_s0 + $0x360] sm:$0xff] }
 0x167   :  { %v2521_v48 = vadd.f32 %v4048_v35, %v2261_v43  ;;  %v2585_v49 = vadd.f32 %v4048_v35, %v2325_v44  ;;  %2927 = vmatmul.msk.f32.gmra.mxu0 %vm290_vm1, %v62_v41  ;;  %2991 = vmatmul.msk.f32.gmra.mxu1 %vm290_vm1, %v126_v42 }
 0x168   :  { %v1874_v50 = vmax.f32 %v1159_v45, 0.0  ;;  %v1938_v51 = vmax.f32 %v1351_v46, 0.0  ;;  %v1542_v52 = vpop.f32.mrf.mxu2  ;;  %v1734_v53 = vpop.f32.mrf.mxu3 }
 0x169   :  { %v2713_v54 = vmax.f32 %v2521_v48, %v2585_v49  ;;  %v1543_v56 = vadd.f32 %v4022_v16, %v1542_v52  ;;  %v1735_v57 = vadd.f32 %v4022_v16, %v1734_v53  ;;  %v193_v52 = vld [vmem:[%s5288_s0 + $0x568] sm:$0xff] }
 0x16a   :  { %v2134_v55 = vmul.f32 %v4033_v28, %v1874_v50  ;;  %v2198_v58 = vmul.f32 %v4033_v28, %v1938_v51  ;;  %v257_v53 = vld [vmem:[%s5288_s0 + $0x768] sm:$0xff] }
 0x16b   :  { %v2777_v61 = vmax.f32 %v2649_v47, %v2713_v54  ;;  %v2002_v63 = vmax.f32 %v1543_v56, 0.0  ;;  %v2066_v0 = vmax.f32 %v1735_v57, 0.0 }
 0x16c   :  { %v2394_v62 = vadd.f32 %v4048_v35, %v2134_v55  ;;  %v2458_v1 = vadd.f32 %v4048_v35, %v2198_v58  ;;  %v1161_v2 = vpop.f32.mrf.mxu0  ;;  %v1353_v3 = vpop.f32.mrf.mxu1 }
 0x16d   :  { %2841 = vst [vmem:[%s5292_s5 + $0xc8] sm:$0xff] %v2777_v61  ;;  %v2262_v6 = vmul.f32 %v4033_v28, %v2002_v63  ;;  %v2326_v7 = vmul.f32 %v4033_v28, %v2066_v0  ;;  %3056 = vmatmul.msk.f32.gmra.mxu2 %vm290_vm1, %v191_v59  ;;  %3120 = vmatmul.msk.f32.gmra.mxu3 %vm290_vm1, %v255_v60  ;;  %v65_v61 = vld [vmem:[%s5288_s0 + $0x168] sm:$0xff] }
 0x16e   :  { %v1162_v8 = vadd.f32 %v4022_v16, %v1161_v2  ;;  %v1354_v9 = vadd.f32 %v4022_v16, %v1353_v3  ;;  %v2650_v11 = vmax.f32 %v2394_v62, %v2458_v1  ;;  %v129_v62 = vld [vmem:[%s5288_s0 + $0x368] sm:$0xff] }
 0x16f   :  { %v2522_v12 = vadd.f32 %v4048_v35, %v2262_v6  ;;  %v2586_v10 = vadd.f32 %v4048_v35, %v2326_v7  ;;  %2928 = vmatmul.msk.f32.gmra.mxu0 %vm290_vm1, %v63_v4  ;;  %2992 = vmatmul.msk.f32.gmra.mxu1 %vm290_vm1, %v127_v5 }
 0x170   :  { %v1875_v13 = vmax.f32 %v1162_v8, 0.0  ;;  %v1939_v14 = vmax.f32 %v1354_v9, 0.0  ;;  %v1545_v15 = vpop.f32.mrf.mxu2  ;;  %v1737_v17 = vpop.f32.mrf.mxu3 }
 0x171   :  { %v2714_v19 = vmax.f32 %v2522_v12, %v2586_v10  ;;  %v1546_v22 = vadd.f32 %v4022_v16, %v1545_v15  ;;  %v1738_v23 = vadd.f32 %v4022_v16, %v1737_v17  ;;  %v194_v15 = vld [vmem:[%s5288_s0 + $0x570] sm:$0xff] }
 0x172   :  { %v2135_v20 = vmul.f32 %v4033_v28, %v1875_v13  ;;  %v2199_v24 = vmul.f32 %v4033_v28, %v1939_v14  ;;  %v258_v17 = vld [vmem:[%s5288_s0 + $0x770] sm:$0xff] }
 0x173   :  { %v2778_v26 = vmax.f32 %v2650_v11, %v2714_v19  ;;  %v2003_v29 = vmax.f32 %v1546_v22, 0.0  ;;  %v2067_v30 = vmax.f32 %v1738_v23, 0.0 }
 0x174   :  { %v2395_v27 = vadd.f32 %v4048_v35, %v2135_v20  ;;  %v2459_v21 = vadd.f32 %v4048_v35, %v2199_v24  ;;  %v1164_v31 = vpop.f32.mrf.mxu0  ;;  %v1356_v32 = vpop.f32.mrf.mxu1 }
 0x175   :  { %2842 = vst [vmem:[%s5292_s5 + $0xd0] sm:$0xff] %v2778_v26  ;;  %v2263_v36 = vmul.f32 %v4033_v28, %v2003_v29  ;;  %v2327_v37 = vmul.f32 %v4033_v28, %v2067_v30  ;;  %3057 = vmatmul.msk.f32.gmra.mxu2 %vm290_vm1, %v192_v18  ;;  %3121 = vmatmul.msk.f32.gmra.mxu3 %vm290_vm1, %v256_v25  ;;  %v66_v26 = vld [vmem:[%s5288_s0 + $0x170] sm:$0xff] }
 0x176   :  { %v1165_v38 = vadd.f32 %v4022_v16, %v1164_v31  ;;  %v1357_v39 = vadd.f32 %v4022_v16, %v1356_v32  ;;  %v2651_v40 = vmax.f32 %v2395_v27, %v2459_v21  ;;  %v130_v27 = vld [vmem:[%s5288_s0 + $0x370] sm:$0xff] }
 0x177   :  { %v2523_v41 = vadd.f32 %v4048_v35, %v2263_v36  ;;  %v2587_v42 = vadd.f32 %v4048_v35, %v2327_v37  ;;  %2929 = vmatmul.msk.f32.gmra.mxu0 %vm290_vm1, %v64_v33  ;;  %2993 = vmatmul.msk.f32.gmra.mxu1 %vm290_vm1, %v128_v34 }
 0x178   :  { %v1876_v43 = vmax.f32 %v1165_v38, 0.0  ;;  %v1940_v44 = vmax.f32 %v1357_v39, 0.0  ;;  %v1548_v45 = vpop.f32.mrf.mxu2  ;;  %v1740_v46 = vpop.f32.mrf.mxu3 }
 0x179   :  { %v2715_v47 = vmax.f32 %v2523_v41, %v2587_v42  ;;  %v1549_v49 = vadd.f32 %v4022_v16, %v1548_v45  ;;  %v1741_v50 = vadd.f32 %v4022_v16, %v1740_v46  ;;  %v195_v45 = vld [vmem:[%s5288_s0 + $0x578] sm:$0xff] }
 0x17a   :  { %v2136_v48 = vmul.f32 %v4033_v28, %v1876_v43  ;;  %v2200_v51 = vmul.f32 %v4033_v28, %v1940_v44  ;;  %v259_v46 = vld [vmem:[%s5288_s0 + $0x778] sm:$0xff] }
 0x17b   :  { %v2779_v54 = vmax.f32 %v2651_v40, %v2715_v47  ;;  %v2004_v56 = vmax.f32 %v1549_v49, 0.0  ;;  %v2068_v57 = vmax.f32 %v1741_v50, 0.0 }
 0x17c   :  { %v2396_v55 = vadd.f32 %v4048_v35, %v2136_v48  ;;  %v2460_v58 = vadd.f32 %v4048_v35, %v2200_v51  ;;  %v1167_v59 = vpop.f32.mrf.mxu0  ;;  %v1359_v60 = vpop.f32.mrf.mxu1 }
 0x17d   :  { %2843 = vst [vmem:[%s5292_s5 + $0xd8] sm:$0xff] %v2779_v54  ;;  %v2264_v63 = vmul.f32 %v4033_v28, %v2004_v56  ;;  %v2328_v0 = vmul.f32 %v4033_v28, %v2068_v57  ;;  %3058 = vmatmul.msk.f32.gmra.mxu2 %vm290_vm1, %v193_v52  ;;  %3122 = vmatmul.msk.f32.gmra.mxu3 %vm290_vm1, %v257_v53  ;;  %v67_v54 = vld [vmem:[%s5288_s0 + $0x178] sm:$0xff] }
 0x17e   :  { %v1168_v1 = vadd.f32 %v4022_v16, %v1167_v59  ;;  %v1360_v2 = vadd.f32 %v4022_v16, %v1359_v60  ;;  %v2652_v3 = vmax.f32 %v2396_v55, %v2460_v58  ;;  %v131_v55 = vld [vmem:[%s5288_s0 + $0x378] sm:$0xff] }
 0x17f   :  { %v2524_v4 = vadd.f32 %v4048_v35, %v2264_v63  ;;  %v2588_v5 = vadd.f32 %v4048_v35, %v2328_v0  ;;  %2930 = vmatmul.msk.f32.gmra.mxu0 %vm290_vm1, %v65_v61  ;;  %2994 = vmatmul.msk.f32.gmra.mxu1 %vm290_vm1, %v129_v62 }
 0x180   :  { %v1877_v6 = vmax.f32 %v1168_v1, 0.0  ;;  %v1941_v7 = vmax.f32 %v1360_v2, 0.0  ;;  %v1551_v8 = vpop.f32.mrf.mxu2  ;;  %v1743_v9 = vpop.f32.mrf.mxu3 }
 0x181   :  { %v2716_v11 = vmax.f32 %v2524_v4, %v2588_v5  ;;  %v1552_v10 = vadd.f32 %v4022_v16, %v1551_v8  ;;  %v1744_v13 = vadd.f32 %v4022_v16, %v1743_v9  ;;  %v196_v8 = vld [vmem:[%s5288_s0 + $0x580] sm:$0xff] }
 0x182   :  { %v2137_v12 = vmul.f32 %v4033_v28, %v1877_v6  ;;  %v2201_v14 = vmul.f32 %v4033_v28, %v1941_v7  ;;  %v260_v9 = vld [vmem:[%s5288_s0 + $0x780] sm:$0xff] }
 0x183   :  { %v2780_v19 = vmax.f32 %v2652_v3, %v2716_v11  ;;  %v2005_v22 = vmax.f32 %v1552_v10, 0.0  ;;  %v2069_v23 = vmax.f32 %v1744_v13, 0.0 }
 0x184   :  { %v2397_v20 = vadd.f32 %v4048_v35, %v2137_v12  ;;  %v2461_v24 = vadd.f32 %v4048_v35, %v2201_v14  ;;  %v1170_v18 = vpop.f32.mrf.mxu0  ;;  %v1362_v25 = vpop.f32.mrf.mxu1 }
 0x185   :  { %2844 = vst [vmem:[%s5292_s5 + $0xe0] sm:$0xff] %v2780_v19  ;;  %v2265_v29 = vmul.f32 %v4033_v28, %v2005_v22  ;;  %v2329_v30 = vmul.f32 %v4033_v28, %v2069_v23  ;;  %3059 = vmatmul.msk.f32.gmra.mxu2 %vm290_vm1, %v194_v15  ;;  %3123 = vmatmul.msk.f32.gmra.mxu3 %vm290_vm1, %v258_v17  ;;  %v132_v19 = vld [vmem:[%s5288_s0 + $0x380] sm:$0xff] }
 0x186   :  { %v1171_v21 = vadd.f32 %v4022_v16, %v1170_v18  ;;  %v1363_v31 = vadd.f32 %v4022_v16, %v1362_v25  ;;  %v2653_v32 = vmax.f32 %v2397_v20, %v2461_v24  ;;  %v4533_v23 = vld [vmem:[%s5289_s2] ss:$0 sm:$0xff] }
 0x187   :  { %v2525_v33 = vadd.f32 %v4048_v35, %v2265_v29  ;;  %v2589_v34 = vadd.f32 %v4048_v35, %v2329_v30  ;;  %2931 = vmatmul.msk.f32.gmra.mxu0 %vm290_vm1, %v66_v26  ;;  %2995 = vmatmul.msk.f32.gmra.mxu1 %vm290_vm1, %v130_v27 }
 0x188   :  { %v1878_v36 = vmax.f32 %v1171_v21, 0.0  ;;  %v1942_v37 = vmax.f32 %v1363_v31, 0.0  ;;  %v1554_v38 = vpop.f32.mrf.mxu2  ;;  %v1746_v39 = vpop.f32.mrf.mxu3 }
 0x189   :  { %v2717_v40 = vmax.f32 %v2525_v33, %v2589_v34  ;;  %v1555_v42 = vadd.f32 %v4022_v16, %v1554_v38  ;;  %v1747_v43 = vadd.f32 %v4022_v16, %v1746_v39  ;;  %v261_v38 = vld [vmem:[%s5288_s0 + $0x788] sm:$0xff] }
 0x18a   :  { %v2138_v41 = vmul.f32 %v4033_v28, %v1878_v36  ;;  %v2202_v44 = vmul.f32 %v4033_v28, %v1942_v37  ;;  %v197_v37 = vld [vmem:[%s5288_s0 + $0x588] sm:$0xff] }
 0x18b   :  { %v2781_v47 = vmax.f32 %v2653_v32, %v2717_v40  ;;  %v2006_v49 = vmax.f32 %v1555_v42, 0.0  ;;  %v2070_v50 = vmax.f32 %v1747_v43, 0.0  ;;  %v4544_v32 = vld [vmem:[%s5290_s3] ss:$0 sm:$0xff] }
 0x18c   :  { %v2398_v48 = vadd.f32 %v4048_v35, %v2138_v41  ;;  %v2462_v51 = vadd.f32 %v4048_v35, %v2202_v44  ;;  %v1173_v52 = vpop.f32.mrf.mxu0  ;;  %v1365_v53 = vpop.f32.mrf.mxu1  ;;  %v4559_v40 = vld [vmem:[%s5291_s4] ss:$0 sm:$0xff] }
 0x18d   :  { %2845 = vst [vmem:[%s5292_s5 + $0xe8] sm:$0xff] %v2781_v47  ;;  %v2266_v56 = vmul.f32 %v4033_v28, %v2006_v49  ;;  %v2330_v57 = vmul.f32 %v4033_v28, %v2070_v50  ;;  %3060 = vmatmul.msk.f32.gmra.mxu2 %vm290_vm1, %v195_v45  ;;  %3124 = vmatmul.msk.f32.gmra.mxu3 %vm290_vm1, %v259_v46  ;;  %v69_v47 = vld [vmem:[%s5288_s0 + $0x188] sm:$0xff] }
 0x18e   :  { %v1174_v58 = vadd.f32 %v4022_v16, %v1173_v52  ;;  %v1366_v59 = vadd.f32 %v4022_v16, %v1365_v53  ;;  %v2654_v60 = vmax.f32 %v2398_v48, %v2462_v51  ;;  %v133_v48 = vld [vmem:[%s5288_s0 + $0x388] sm:$0xff] }
 0x18f   :  { %v2526_v61 = vadd.f32 %v4048_v35, %v2266_v56  ;;  %v2590_v62 = vadd.f32 %v4048_v35, %v2330_v57  ;;  %2932 = vmatmul.msk.f32.gmra.mxu0 %vm290_vm1, %v67_v54  ;;  %2996 = vmatmul.msk.f32.gmra.mxu1 %vm290_vm1, %v131_v55 }
 0x190   :  { %v1879_v63 = vmax.f32 %v1174_v58, 0.0  ;;  %v1943_v0 = vmax.f32 %v1366_v59, 0.0  ;;  %v1557_v1 = vpop.f32.mrf.mxu2  ;;  %v1749_v2 = vpop.f32.mrf.mxu3 }
 0x191   :  { %v2718_v3 = vmax.f32 %v2526_v61, %v2590_v62  ;;  %v1558_v5 = vadd.f32 %v4022_v16, %v1557_v1  ;;  %v1750_v6 = vadd.f32 %v4022_v16, %v1749_v2  ;;  %v68_v16 = vld [vmem:[%s5288_s0 + $0x180] sm:$0xff]  ;;  %v198_v1 = vld [vmem:[%s5288_s0 + $0x590] sm:$0xff] }
 0x192   :  { %v2139_v4 = vmul.f32 %v4033_v28, %v1879_v63  ;;  %v2203_v7 = vmul.f32 %v4033_v28, %v1943_v0  ;;  %v262_v2 = vld [vmem:[%s5288_s0 + $0x790] sm:$0xff] }
 0x193   :  { %v2782_v11 = vmax.f32 %v2654_v60, %v2718_v3  ;;  %v2007_v10 = vmax.f32 %v1558_v5, 0.0  ;;  %v2071_v13 = vmax.f32 %v1750_v6, 0.0 }
 0x194   :  { %v2399_v12 = vadd.f32 %v4048_v35, %v2139_v4  ;;  %v2463_v14 = vadd.f32 %v4048_v35, %v2203_v7  ;;  %v1176_v15 = vpop.f32.mrf.mxu0  ;;  %v1368_v17 = vpop.f32.mrf.mxu1 }
 0x195   :  { %2846 = vst [vmem:[%s5292_s5 + $0xf0] sm:$0xff] %v2782_v11  ;;  %v2267_v20 = vmul.f32 %v4033_v28, %v2007_v10  ;;  %v2331_v22 = vmul.f32 %v4033_v28, %v2071_v13  ;;  %3061 = vmatmul.msk.f32.gmra.mxu2 %vm290_vm1, %v196_v8  ;;  %3125 = vmatmul.msk.f32.gmra.mxu3 %vm290_vm1, %v260_v9  ;;  %v70_v11 = vld [vmem:[%s5288_s0 + $0x190] sm:$0xff] }
 0x196   :  { %v1177_v24 = vadd.f32 %v4533_v23, %v1176_v15  ;;  %v1369_v18 = vadd.f32 %v4533_v23, %v1368_v17  ;;  %v2655_v25 = vmax.f32 %v2399_v12, %v2463_v14  ;;  %v134_v12 = vld [vmem:[%s5288_s0 + $0x390] sm:$0xff] }
 0x197   :  { %v2527_v26 = vadd.f32 %v4048_v35, %v2267_v20  ;;  %v2591_v27 = vadd.f32 %v4048_v35, %v2331_v22  ;;  %2933 = vmatmul.msk.f32.gmra.mxu0 %vm290_vm1, %v68_v16  ;;  %2997 = vmatmul.msk.f32.gmra.mxu1 %vm290_vm1, %v132_v19 }
 0x198   :  { %v1880_v29 = vmax.f32 %v1177_v24, 0.0  ;;  %v1944_v28 = vmax.f32 %v1369_v18, 0.0  ;;  %v1560_v30 = vpop.f32.mrf.mxu2  ;;  %v1752_v21 = vpop.f32.mrf.mxu3 }
 0x199   :  { %v2719_v31 = vmax.f32 %v2527_v26, %v2591_v27  ;;  %v1561_v34 = vadd.f32 %v4533_v23, %v1560_v30  ;;  %v1753_v35 = vadd.f32 %v4533_v23, %v1752_v21  ;;  %v199_v30 = vld [vmem:[%s5288_s0 + $0x598] sm:$0xff] }
 0x19a   :  { %v2140_v33 = vmul.f32 %v4544_v32, %v1880_v29  ;;  %v2204_v36 = vmul.f32 %v4544_v32, %v1944_v28  ;;  %v263_v21 = vld [vmem:[%s5288_s0 + $0x798] sm:$0xff] }
 0x19b   :  { %v2783_v39 = vmax.f32 %v2655_v25, %v2719_v31  ;;  %v2008_v42 = vmax.f32 %v1561_v34, 0.0  ;;  %v2072_v43 = vmax.f32 %v1753_v35, 0.0 }
 0x19c   :  { %v2400_v41 = vadd.f32 %v4559_v40, %v2140_v33  ;;  %v2464_v44 = vadd.f32 %v4559_v40, %v2204_v36  ;;  %v1179_v45 = vpop.f32.mrf.mxu0  ;;  %v1371_v46 = vpop.f32.mrf.mxu1 }
 0x19d   :  { %2847 = vst [vmem:[%s5292_s5 + $0xf8] sm:$0xff] %v2783_v39  ;;  %v2268_v49 = vmul.f32 %v4544_v32, %v2008_v42  ;;  %v2332_v50 = vmul.f32 %v4544_v32, %v2072_v43  ;;  %3062 = vmatmul.msk.f32.gmra.mxu2 %vm290_vm1, %v197_v37  ;;  %3126 = vmatmul.msk.f32.gmra.mxu3 %vm290_vm1, %v261_v38  ;;  %v71_v39 = vld [vmem:[%s5288_s0 + $0x198] sm:$0xff] }
 0x19e   :  { %v1180_v51 = vadd.f32 %v4533_v23, %v1179_v45  ;;  %v1372_v52 = vadd.f32 %v4533_v23, %v1371_v46  ;;  %v2656_v53 = vmax.f32 %v2400_v41, %v2464_v44  ;;  %v135_v41 = vld [vmem:[%s5288_s0 + $0x398] sm:$0xff] }
 0x19f   :  { %v2528_v54 = vadd.f32 %v4559_v40, %v2268_v49  ;;  %v2592_v55 = vadd.f32 %v4559_v40, %v2332_v50  ;;  %2934 = vmatmul.msk.f32.gmra.mxu0 %vm290_vm1, %v69_v47  ;;  %2998 = vmatmul.msk.f32.gmra.mxu1 %vm290_vm1, %v133_v48 }
 0x1a0   :  { %v1881_v56 = vmax.f32 %v1180_v51, 0.0  ;;  %v1945_v57 = vmax.f32 %v1372_v52, 0.0  ;;  %v1563_v58 = vpop.f32.mrf.mxu2  ;;  %v1755_v59 = vpop.f32.mrf.mxu3 }
 0x1a1   :  { %v2720_v60 = vmax.f32 %v2528_v54, %v2592_v55  ;;  %v1564_v62 = vadd.f32 %v4533_v23, %v1563_v58  ;;  %v1756_v63 = vadd.f32 %v4533_v23, %v1755_v59  ;;  %v200_v58 = vld [vmem:[%s5288_s0 + $0x5a0] sm:$0xff] }
 0x1a2   :  { %v2141_v61 = vmul.f32 %v4544_v32, %v1881_v56  ;;  %v2205_v0 = vmul.f32 %v4544_v32, %v1945_v57  ;;  %v264_v59 = vld [vmem:[%s5288_s0 + $0x7a0] sm:$0xff] }
 0x1a3   :  { %v2784_v3 = vmax.f32 %v2656_v53, %v2720_v60  ;;  %v2009_v5 = vmax.f32 %v1564_v62, 0.0  ;;  %v2073_v6 = vmax.f32 %v1756_v63, 0.0 }
 0x1a4   :  { %v2401_v4 = vadd.f32 %v4559_v40, %v2141_v61  ;;  %v2465_v7 = vadd.f32 %v4559_v40, %v2205_v0  ;;  %v1182_v8 = vpop.f32.mrf.mxu0  ;;  %v1374_v9 = vpop.f32.mrf.mxu1 }
 0x1a5   :  { %2848 = vst [vmem:[%s5292_s5 + $0x100] sm:$0xff] %v2784_v3  ;;  %v2269_v10 = vmul.f32 %v4544_v32, %v2009_v5  ;;  %v2333_v13 = vmul.f32 %v4544_v32, %v2073_v6  ;;  %3063 = vmatmul.msk.f32.gmra.mxu2 %vm290_vm1, %v198_v1  ;;  %3127 = vmatmul.msk.f32.gmra.mxu3 %vm290_vm1, %v262_v2  ;;  %v72_v3 = vld [vmem:[%s5288_s0 + $0x1a0] sm:$0xff] }
 0x1a6   :  { %v1183_v14 = vadd.f32 %v4533_v23, %v1182_v8  ;;  %v1375_v15 = vadd.f32 %v4533_v23, %v1374_v9  ;;  %v2657_v17 = vmax.f32 %v2401_v4, %v2465_v7  ;;  %v136_v4 = vld [vmem:[%s5288_s0 + $0x3a0] sm:$0xff] }
 0x1a7   :  { %v2529_v16 = vadd.f32 %v4559_v40, %v2269_v10  ;;  %v2593_v19 = vadd.f32 %v4559_v40, %v2333_v13  ;;  %2935 = vmatmul.msk.f32.gmra.mxu0 %vm290_vm1, %v70_v11  ;;  %2999 = vmatmul.msk.f32.gmra.mxu1 %vm290_vm1, %v134_v12 }
 0x1a8   :  { %v1882_v20 = vmax.f32 %v1183_v14, 0.0  ;;  %v1946_v22 = vmax.f32 %v1375_v15, 0.0  ;;  %v1566_v24 = vpop.f32.mrf.mxu2  ;;  %v1758_v18 = vpop.f32.mrf.mxu3 }
 0x1a9   :  { %v2721_v25 = vmax.f32 %v2529_v16, %v2593_v19  ;;  %v1567_v27 = vadd.f32 %v4533_v23, %v1566_v24  ;;  %v1759_v29 = vadd.f32 %v4533_v23, %v1758_v18  ;;  %v201_v24 = vld [vmem:[%s5288_s0 + $0x5a8] sm:$0xff] }
 0x1aa   :  { %v2142_v26 = vmul.f32 %v4544_v32, %v1882_v20  ;;  %v2206_v28 = vmul.f32 %v4544_v32, %v1946_v22  ;;  %v265_v18 = vld [vmem:[%s5288_s0 + $0x7a8] sm:$0xff] }
 0x1ab   :  { %v2785_v31 = vmax.f32 %v2657_v17, %v2721_v25  ;;  %v2010_v34 = vmax.f32 %v1567_v27, 0.0  ;;  %v2074_v35 = vmax.f32 %v1759_v29, 0.0 }
 0x1ac   :  { %v2402_v33 = vadd.f32 %v4559_v40, %v2142_v26  ;;  %v2466_v36 = vadd.f32 %v4559_v40, %v2206_v28  ;;  %v1185_v37 = vpop.f32.mrf.mxu0  ;;  %v1377_v38 = vpop.f32.mrf.mxu1 }
 0x1ad   :  { %2849 = vst [vmem:[%s5292_s5 + $0x108] sm:$0xff] %v2785_v31  ;;  %v2270_v42 = vmul.f32 %v4544_v32, %v2010_v34  ;;  %v2334_v43 = vmul.f32 %v4544_v32, %v2074_v35  ;;  %3064 = vmatmul.msk.f32.gmra.mxu2 %vm290_vm1, %v199_v30  ;;  %3128 = vmatmul.msk.f32.gmra.mxu3 %vm290_vm1, %v263_v21  ;;  %v73_v31 = vld [vmem:[%s5288_s0 + $0x1a8] sm:$0xff] }
 0x1ae   :  { %v1186_v44 = vadd.f32 %v4533_v23, %v1185_v37  ;;  %v1378_v45 = vadd.f32 %v4533_v23, %v1377_v38  ;;  %v2658_v46 = vmax.f32 %v2402_v33, %v2466_v36  ;;  %v137_v33 = vld [vmem:[%s5288_s0 + $0x3a8] sm:$0xff] }
 0x1af   :  { %v2530_v47 = vadd.f32 %v4559_v40, %v2270_v42  ;;  %v2594_v48 = vadd.f32 %v4559_v40, %v2334_v43  ;;  %2936 = vmatmul.msk.f32.gmra.mxu0 %vm290_vm1, %v71_v39  ;;  %3000 = vmatmul.msk.f32.gmra.mxu1 %vm290_vm1, %v135_v41 }
 0x1b0   :  { %v1883_v49 = vmax.f32 %v1186_v44, 0.0  ;;  %v1947_v50 = vmax.f32 %v1378_v45, 0.0  ;;  %v1569_v51 = vpop.f32.mrf.mxu2  ;;  %v1761_v52 = vpop.f32.mrf.mxu3 }
 0x1b1   :  { %v2722_v53 = vmax.f32 %v2530_v47, %v2594_v48  ;;  %v1570_v55 = vadd.f32 %v4533_v23, %v1569_v51  ;;  %v1762_v56 = vadd.f32 %v4533_v23, %v1761_v52  ;;  %v202_v51 = vld [vmem:[%s5288_s0 + $0x5b0] sm:$0xff] }
 0x1b2   :  { %v2143_v54 = vmul.f32 %v4544_v32, %v1883_v49  ;;  %v2207_v57 = vmul.f32 %v4544_v32, %v1947_v50  ;;  %v266_v52 = vld [vmem:[%s5288_s0 + $0x7b0] sm:$0xff] }
 0x1b3   :  { %v2786_v60 = vmax.f32 %v2658_v46, %v2722_v53  ;;  %v2011_v62 = vmax.f32 %v1570_v55, 0.0  ;;  %v2075_v63 = vmax.f32 %v1762_v56, 0.0 }
 0x1b4   :  { %v2403_v61 = vadd.f32 %v4559_v40, %v2143_v54  ;;  %v2467_v0 = vadd.f32 %v4559_v40, %v2207_v57  ;;  %v1188_v1 = vpop.f32.mrf.mxu0  ;;  %v1380_v2 = vpop.f32.mrf.mxu1 }
 0x1b5   :  { %2850 = vst [vmem:[%s5292_s5 + $0x110] sm:$0xff] %v2786_v60  ;;  %v2271_v5 = vmul.f32 %v4544_v32, %v2011_v62  ;;  %v2335_v6 = vmul.f32 %v4544_v32, %v2075_v63  ;;  %3065 = vmatmul.msk.f32.gmra.mxu2 %vm290_vm1, %v200_v58  ;;  %3129 = vmatmul.msk.f32.gmra.mxu3 %vm290_vm1, %v264_v59  ;;  %v74_v60 = vld [vmem:[%s5288_s0 + $0x1b0] sm:$0xff] }
 0x1b6   :  { %v1189_v7 = vadd.f32 %v4533_v23, %v1188_v1  ;;  %v1381_v8 = vadd.f32 %v4533_v23, %v1380_v2  ;;  %v2659_v9 = vmax.f32 %v2403_v61, %v2467_v0  ;;  %v138_v61 = vld [vmem:[%s5288_s0 + $0x3b0] sm:$0xff] }
 0x1b7   :  { %v2531_v11 = vadd.f32 %v4559_v40, %v2271_v5  ;;  %v2595_v12 = vadd.f32 %v4559_v40, %v2335_v6  ;;  %2937 = vmatmul.msk.f32.gmra.mxu0 %vm290_vm1, %v72_v3  ;;  %3001 = vmatmul.msk.f32.gmra.mxu1 %vm290_vm1, %v136_v4 }
 0x1b8   :  { %v1884_v10 = vmax.f32 %v1189_v7, 0.0  ;;  %v1948_v13 = vmax.f32 %v1381_v8, 0.0  ;;  %v1572_v14 = vpop.f32.mrf.mxu2  ;;  %v1764_v15 = vpop.f32.mrf.mxu3 }
 0x1b9   :  { %v2723_v17 = vmax.f32 %v2531_v11, %v2595_v12  ;;  %v1573_v19 = vadd.f32 %v4533_v23, %v1572_v14  ;;  %v1765_v20 = vadd.f32 %v4533_v23, %v1764_v15  ;;  %v203_v14 = vld [vmem:[%s5288_s0 + $0x5b8] sm:$0xff] }
 0x1ba   :  { %v2144_v16 = vmul.f32 %v4544_v32, %v1884_v10  ;;  %v2208_v22 = vmul.f32 %v4544_v32, %v1948_v13  ;;  %v267_v15 = vld [vmem:[%s5288_s0 + $0x7b8] sm:$0xff] }
 0x1bb   :  { %v2787_v25 = vmax.f32 %v2659_v9, %v2723_v17  ;;  %v2012_v27 = vmax.f32 %v1573_v19, 0.0  ;;  %v2076_v29 = vmax.f32 %v1765_v20, 0.0 }
 0x1bc   :  { %v2404_v26 = vadd.f32 %v4559_v40, %v2144_v16  ;;  %v2468_v28 = vadd.f32 %v4559_v40, %v2208_v22  ;;  %v1191_v30 = vpop.f32.mrf.mxu0  ;;  %v1383_v21 = vpop.f32.mrf.mxu1 }
 0x1bd   :  { %2851 = vst [vmem:[%s5292_s5 + $0x118] sm:$0xff] %v2787_v25  ;;  %v2272_v34 = vmul.f32 %v4544_v32, %v2012_v27  ;;  %v2336_v35 = vmul.f32 %v4544_v32, %v2076_v29  ;;  %3066 = vmatmul.msk.f32.gmra.mxu2 %vm290_vm1, %v201_v24  ;;  %3130 = vmatmul.msk.f32.gmra.mxu3 %vm290_vm1, %v265_v18  ;;  %v75_v25 = vld [vmem:[%s5288_s0 + $0x1b8] sm:$0xff] }
 0x1be   :  { %v1192_v36 = vadd.f32 %v4533_v23, %v1191_v30  ;;  %v1384_v37 = vadd.f32 %v4533_v23, %v1383_v21  ;;  %v2660_v38 = vmax.f32 %v2404_v26, %v2468_v28  ;;  %v139_v26 = vld [vmem:[%s5288_s0 + $0x3b8] sm:$0xff] }
 0x1bf   :  { %v2532_v39 = vadd.f32 %v4559_v40, %v2272_v34  ;;  %v2596_v41 = vadd.f32 %v4559_v40, %v2336_v35  ;;  %2938 = vmatmul.msk.f32.gmra.mxu0 %vm290_vm1, %v73_v31  ;;  %3002 = vmatmul.msk.f32.gmra.mxu1 %vm290_vm1, %v137_v33 }
 0x1c0   :  { %v1885_v42 = vmax.f32 %v1192_v36, 0.0  ;;  %v1949_v43 = vmax.f32 %v1384_v37, 0.0  ;;  %v1575_v44 = vpop.f32.mrf.mxu2  ;;  %v1767_v45 = vpop.f32.mrf.mxu3 }
 0x1c1   :  { %v2724_v46 = vmax.f32 %v2532_v39, %v2596_v41  ;;  %v1576_v48 = vadd.f32 %v4533_v23, %v1575_v44  ;;  %v1768_v49 = vadd.f32 %v4533_v23, %v1767_v45  ;;  %v204_v44 = vld [vmem:[%s5288_s0 + $0x5c0] sm:$0xff] }
 0x1c2   :  { %v2145_v47 = vmul.f32 %v4544_v32, %v1885_v42  ;;  %v2209_v50 = vmul.f32 %v4544_v32, %v1949_v43  ;;  %v268_v45 = vld [vmem:[%s5288_s0 + $0x7c0] sm:$0xff] }
 0x1c3   :  { %v2788_v53 = vmax.f32 %v2660_v38, %v2724_v46  ;;  %v2013_v55 = vmax.f32 %v1576_v48, 0.0  ;;  %v2077_v56 = vmax.f32 %v1768_v49, 0.0 }
 0x1c4   :  { %v2405_v54 = vadd.f32 %v4559_v40, %v2145_v47  ;;  %v2469_v57 = vadd.f32 %v4559_v40, %v2209_v50  ;;  %v1194_v58 = vpop.f32.mrf.mxu0  ;;  %v1386_v59 = vpop.f32.mrf.mxu1 }
 0x1c5   :  { %2852 = vst [vmem:[%s5292_s5 + $0x120] sm:$0xff] %v2788_v53  ;;  %v2273_v62 = vmul.f32 %v4544_v32, %v2013_v55  ;;  %v2337_v63 = vmul.f32 %v4544_v32, %v2077_v56  ;;  %3067 = vmatmul.msk.f32.gmra.mxu2 %vm290_vm1, %v202_v51  ;;  %3131 = vmatmul.msk.f32.gmra.mxu3 %vm290_vm1, %v266_v52  ;;  %v76_v53 = vld [vmem:[%s5288_s0 + $0x1c0] sm:$0xff] }
 0x1c6   :  { %v1195_v0 = vadd.f32 %v4533_v23, %v1194_v58  ;;  %v1387_v1 = vadd.f32 %v4533_v23, %v1386_v59  ;;  %v2661_v2 = vmax.f32 %v2405_v54, %v2469_v57  ;;  %v140_v54 = vld [vmem:[%s5288_s0 + $0x3c0] sm:$0xff] }
 0x1c7   :  { %v2533_v3 = vadd.f32 %v4559_v40, %v2273_v62  ;;  %v2597_v4 = vadd.f32 %v4559_v40, %v2337_v63  ;;  %2939 = vmatmul.msk.f32.gmra.mxu0 %vm290_vm1, %v74_v60  ;;  %3003 = vmatmul.msk.f32.gmra.mxu1 %vm290_vm1, %v138_v61 }
 0x1c8   :  { %v1886_v5 = vmax.f32 %v1195_v0, 0.0  ;;  %v1950_v6 = vmax.f32 %v1387_v1, 0.0  ;;  %v1578_v7 = vpop.f32.mrf.mxu2  ;;  %v1770_v8 = vpop.f32.mrf.mxu3 }
 0x1c9   :  { %v2725_v9 = vmax.f32 %v2533_v3, %v2597_v4  ;;  %v1579_v12 = vadd.f32 %v4533_v23, %v1578_v7  ;;  %v1771_v10 = vadd.f32 %v4533_v23, %v1770_v8  ;;  %v205_v7 = vld [vmem:[%s5288_s0 + $0x5c8] sm:$0xff] }
 0x1ca   :  { %v2146_v11 = vmul.f32 %v4544_v32, %v1886_v5  ;;  %v2210_v13 = vmul.f32 %v4544_v32, %v1950_v6  ;;  %v269_v8 = vld [vmem:[%s5288_s0 + $0x7c8] sm:$0xff] }
 0x1cb   :  { %v2789_v17 = vmax.f32 %v2661_v2, %v2725_v9  ;;  %v2014_v19 = vmax.f32 %v1579_v12, 0.0  ;;  %v2078_v20 = vmax.f32 %v1771_v10, 0.0 }
 0x1cc   :  { %v2406_v16 = vadd.f32 %v4559_v40, %v2146_v11  ;;  %v2470_v22 = vadd.f32 %v4559_v40, %v2210_v13  ;;  %v1197_v24 = vpop.f32.mrf.mxu0  ;;  %v1389_v18 = vpop.f32.mrf.mxu1 }
 0x1cd   :  { %2853 = vst [vmem:[%s5292_s5 + $0x128] sm:$0xff] %v2789_v17  ;;  %v2274_v27 = vmul.f32 %v4544_v32, %v2014_v19  ;;  %v2338_v29 = vmul.f32 %v4544_v32, %v2078_v20  ;;  %3068 = vmatmul.msk.f32.gmra.mxu2 %vm290_vm1, %v203_v14  ;;  %3132 = vmatmul.msk.f32.gmra.mxu3 %vm290_vm1, %v267_v15  ;;  %v77_v17 = vld [vmem:[%s5288_s0 + $0x1c8] sm:$0xff] }
 0x1ce   :  { %v1198_v28 = vadd.f32 %v4533_v23, %v1197_v24  ;;  %v1390_v30 = vadd.f32 %v4533_v23, %v1389_v18  ;;  %v2662_v21 = vmax.f32 %v2406_v16, %v2470_v22  ;;  %v141_v16 = vld [vmem:[%s5288_s0 + $0x3c8] sm:$0xff] }
 0x1cf   :  { %v2534_v31 = vadd.f32 %v4559_v40, %v2274_v27  ;;  %v2598_v33 = vadd.f32 %v4559_v40, %v2338_v29  ;;  %2940 = vmatmul.msk.f32.gmra.mxu0 %vm290_vm1, %v75_v25  ;;  %3004 = vmatmul.msk.f32.gmra.mxu1 %vm290_vm1, %v139_v26 }
 0x1d0   :  { %v1887_v34 = vmax.f32 %v1198_v28, 0.0  ;;  %v1951_v35 = vmax.f32 %v1390_v30, 0.0  ;;  %v1581_v36 = vpop.f32.mrf.mxu2  ;;  %v1773_v37 = vpop.f32.mrf.mxu3 }
 0x1d1   :  { %v2726_v38 = vmax.f32 %v2534_v31, %v2598_v33  ;;  %v1582_v41 = vadd.f32 %v4533_v23, %v1581_v36  ;;  %v1774_v42 = vadd.f32 %v4533_v23, %v1773_v37  ;;  %v206_v36 = vld [vmem:[%s5288_s0 + $0x5d0] sm:$0xff] }
 0x1d2   :  { %v2147_v39 = vmul.f32 %v4544_v32, %v1887_v34  ;;  %v2211_v43 = vmul.f32 %v4544_v32, %v1951_v35  ;;  %v270_v37 = vld [vmem:[%s5288_s0 + $0x7d0] sm:$0xff] }
 0x1d3   :  { %v2790_v46 = vmax.f32 %v2662_v21, %v2726_v38  ;;  %v2015_v48 = vmax.f32 %v1582_v41, 0.0  ;;  %v2079_v49 = vmax.f32 %v1774_v42, 0.0 }
 0x1d4   :  { %v2407_v47 = vadd.f32 %v4559_v40, %v2147_v39  ;;  %v2471_v50 = vadd.f32 %v4559_v40, %v2211_v43  ;;  %v1200_v51 = vpop.f32.mrf.mxu0  ;;  %v1392_v52 = vpop.f32.mrf.mxu1 }
 0x1d5   :  { %2854 = vst [vmem:[%s5292_s5 + $0x130] sm:$0xff] %v2790_v46  ;;  %v2275_v55 = vmul.f32 %v4544_v32, %v2015_v48  ;;  %v2339_v56 = vmul.f32 %v4544_v32, %v2079_v49  ;;  %3069 = vmatmul.msk.f32.gmra.mxu2 %vm290_vm1, %v204_v44  ;;  %3133 = vmatmul.msk.f32.gmra.mxu3 %vm290_vm1, %v268_v45  ;;  %v78_v46 = vld [vmem:[%s5288_s0 + $0x1d0] sm:$0xff] }
 0x1d6   :  { %v1201_v57 = vadd.f32 %v4533_v23, %v1200_v51  ;;  %v1393_v58 = vadd.f32 %v4533_v23, %v1392_v52  ;;  %v2663_v59 = vmax.f32 %v2407_v47, %v2471_v50  ;;  %v142_v47 = vld [vmem:[%s5288_s0 + $0x3d0] sm:$0xff] }
 0x1d7   :  { %v2535_v60 = vadd.f32 %v4559_v40, %v2275_v55  ;;  %v2599_v61 = vadd.f32 %v4559_v40, %v2339_v56  ;;  %2941 = vmatmul.msk.f32.gmra.mxu0 %vm290_vm1, %v76_v53  ;;  %3005 = vmatmul.msk.f32.gmra.mxu1 %vm290_vm1, %v140_v54 }
 0x1d8   :  { %v1888_v62 = vmax.f32 %v1201_v57, 0.0  ;;  %v1952_v63 = vmax.f32 %v1393_v58, 0.0  ;;  %v1584_v0 = vpop.f32.mrf.mxu2  ;;  %v1776_v1 = vpop.f32.mrf.mxu3 }
 0x1d9   :  { %v2727_v2 = vmax.f32 %v2535_v60, %v2599_v61  ;;  %v1585_v4 = vadd.f32 %v4533_v23, %v1584_v0  ;;  %v1777_v5 = vadd.f32 %v4533_v23, %v1776_v1  ;;  %v207_v0 = vld [vmem:[%s5288_s0 + $0x5d8] sm:$0xff] }
 0x1da   :  { %v2148_v3 = vmul.f32 %v4544_v32, %v1888_v62  ;;  %v2212_v6 = vmul.f32 %v4544_v32, %v1952_v63  ;;  %v271_v1 = vld [vmem:[%s5288_s0 + $0x7d8] sm:$0xff] }
 0x1db   :  { %v2791_v9 = vmax.f32 %v2663_v59, %v2727_v2  ;;  %v2016_v12 = vmax.f32 %v1585_v4, 0.0  ;;  %v2080_v10 = vmax.f32 %v1777_v5, 0.0 }
 0x1dc   :  { %v2408_v11 = vadd.f32 %v4559_v40, %v2148_v3  ;;  %v2472_v13 = vadd.f32 %v4559_v40, %v2212_v6  ;;  %v1203_v14 = vpop.f32.mrf.mxu0  ;;  %v1395_v15 = vpop.f32.mrf.mxu1 }
 0x1dd   :  { %2855 = vst [vmem:[%s5292_s5 + $0x138] sm:$0xff] %v2791_v9  ;;  %v2276_v19 = vmul.f32 %v4544_v32, %v2016_v12  ;;  %v2340_v20 = vmul.f32 %v4544_v32, %v2080_v10  ;;  %3070 = vmatmul.msk.f32.gmra.mxu2 %vm290_vm1, %v205_v7  ;;  %3134 = vmatmul.msk.f32.gmra.mxu3 %vm290_vm1, %v269_v8  ;;  %v79_v9 = vld [vmem:[%s5288_s0 + $0x1d8] sm:$0xff] }
 0x1de   :  { %v1204_v22 = vadd.f32 %v4533_v23, %v1203_v14  ;;  %v1396_v24 = vadd.f32 %v4533_v23, %v1395_v15  ;;  %v2664_v18 = vmax.f32 %v2408_v11, %v2472_v13  ;;  %v143_v11 = vld [vmem:[%s5288_s0 + $0x3d8] sm:$0xff] }
 0x1df   :  { %v2536_v25 = vadd.f32 %v4559_v40, %v2276_v19  ;;  %v2600_v26 = vadd.f32 %v4559_v40, %v2340_v20  ;;  %2942 = vmatmul.msk.f32.gmra.mxu0 %vm290_vm1, %v77_v17  ;;  %3006 = vmatmul.msk.f32.gmra.mxu1 %vm290_vm1, %v141_v16 }
 0x1e0   :  { %v1889_v27 = vmax.f32 %v1204_v22, 0.0  ;;  %v1953_v29 = vmax.f32 %v1396_v24, 0.0  ;;  %v1587_v28 = vpop.f32.mrf.mxu2  ;;  %v1779_v30 = vpop.f32.mrf.mxu3 }
 0x1e1   :  { %v2728_v21 = vmax.f32 %v2536_v25, %v2600_v26  ;;  %v1588_v33 = vadd.f32 %v4533_v23, %v1587_v28  ;;  %v1780_v34 = vadd.f32 %v4533_v23, %v1779_v30  ;;  %v208_v28 = vld [vmem:[%s5288_s0 + $0x5e0] sm:$0xff] }
 0x1e2   :  { %v2149_v31 = vmul.f32 %v4544_v32, %v1889_v27  ;;  %v2213_v35 = vmul.f32 %v4544_v32, %v1953_v29  ;;  %v272_v30 = vld [vmem:[%s5288_s0 + $0x7e0] sm:$0xff] }
 0x1e3   :  { %v2792_v38 = vmax.f32 %v2664_v18, %v2728_v21  ;;  %v2017_v41 = vmax.f32 %v1588_v33, 0.0  ;;  %v2081_v42 = vmax.f32 %v1780_v34, 0.0 }
 0x1e4   :  { %v2409_v39 = vadd.f32 %v4559_v40, %v2149_v31  ;;  %v2473_v43 = vadd.f32 %v4559_v40, %v2213_v35  ;;  %v1206_v44 = vpop.f32.mrf.mxu0  ;;  %v1398_v45 = vpop.f32.mrf.mxu1 }
 0x1e5   :  { %2856 = vst [vmem:[%s5292_s5 + $0x140] sm:$0xff] %v2792_v38  ;;  %v2277_v48 = vmul.f32 %v4544_v32, %v2017_v41  ;;  %v2341_v49 = vmul.f32 %v4544_v32, %v2081_v42  ;;  %3071 = vmatmul.msk.f32.gmra.mxu2 %vm290_vm1, %v206_v36  ;;  %3135 = vmatmul.msk.f32.gmra.mxu3 %vm290_vm1, %v270_v37  ;;  %v80_v38 = vld [vmem:[%s5288_s0 + $0x1e0] sm:$0xff] }
 0x1e6   :  { %v1207_v50 = vadd.f32 %v4533_v23, %v1206_v44  ;;  %v1399_v51 = vadd.f32 %v4533_v23, %v1398_v45  ;;  %v2665_v52 = vmax.f32 %v2409_v39, %v2473_v43  ;;  %v144_v39 = vld [vmem:[%s5288_s0 + $0x3e0] sm:$0xff] }
 0x1e7   :  { %v2537_v53 = vadd.f32 %v4559_v40, %v2277_v48  ;;  %v2601_v54 = vadd.f32 %v4559_v40, %v2341_v49  ;;  %2943 = vmatmul.msk.f32.gmra.mxu0 %vm290_vm1, %v78_v46  ;;  %3007 = vmatmul.msk.f32.gmra.mxu1 %vm290_vm1, %v142_v47 }
 0x1e8   :  { %v1890_v55 = vmax.f32 %v1207_v50, 0.0  ;;  %v1954_v56 = vmax.f32 %v1399_v51, 0.0  ;;  %v1590_v57 = vpop.f32.mrf.mxu2  ;;  %v1782_v58 = vpop.f32.mrf.mxu3 }
 0x1e9   :  { %v2729_v59 = vmax.f32 %v2537_v53, %v2601_v54  ;;  %v1591_v61 = vadd.f32 %v4533_v23, %v1590_v57  ;;  %v1783_v62 = vadd.f32 %v4533_v23, %v1782_v58  ;;  %v209_v57 = vld [vmem:[%s5288_s0 + $0x5e8] sm:$0xff] }
 0x1ea   :  { %v2150_v60 = vmul.f32 %v4544_v32, %v1890_v55  ;;  %v2214_v63 = vmul.f32 %v4544_v32, %v1954_v56  ;;  %v273_v58 = vld [vmem:[%s5288_s0 + $0x7e8] sm:$0xff] }
 0x1eb   :  { %v2793_v2 = vmax.f32 %v2665_v52, %v2729_v59  ;;  %v2018_v4 = vmax.f32 %v1591_v61, 0.0  ;;  %v2082_v5 = vmax.f32 %v1783_v62, 0.0 }
 0x1ec   :  { %v2410_v3 = vadd.f32 %v4559_v40, %v2150_v60  ;;  %v2474_v6 = vadd.f32 %v4559_v40, %v2214_v63  ;;  %v1209_v7 = vpop.f32.mrf.mxu0  ;;  %v1401_v8 = vpop.f32.mrf.mxu1 }
 0x1ed   :  { %2857 = vst [vmem:[%s5292_s5 + $0x148] sm:$0xff] %v2793_v2  ;;  %v2278_v12 = vmul.f32 %v4544_v32, %v2018_v4  ;;  %v2342_v10 = vmul.f32 %v4544_v32, %v2082_v5  ;;  %3072 = vmatmul.msk.f32.gmra.mxu2 %vm290_vm1, %v207_v0  ;;  %3136 = vmatmul.msk.f32.gmra.mxu3 %vm290_vm1, %v271_v1  ;;  %v81_v2 = vld [vmem:[%s5288_s0 + $0x1e8] sm:$0xff] }
 0x1ee   :  { %v1210_v13 = vadd.f32 %v4533_v23, %v1209_v7  ;;  %v1402_v14 = vadd.f32 %v4533_v23, %v1401_v8  ;;  %v2666_v15 = vmax.f32 %v2410_v3, %v2474_v6  ;;  %v145_v3 = vld [vmem:[%s5288_s0 + $0x3e8] sm:$0xff] }
 0x1ef   :  { %v2538_v17 = vadd.f32 %v4559_v40, %v2278_v12  ;;  %v2602_v16 = vadd.f32 %v4559_v40, %v2342_v10  ;;  %2944 = vmatmul.msk.f32.gmra.mxu0 %vm290_vm1, %v79_v9  ;;  %3008 = vmatmul.msk.f32.gmra.mxu1 %vm290_vm1, %v143_v11 }
 0x1f0   :  { %v1891_v19 = vmax.f32 %v1210_v13, 0.0  ;;  %v1955_v20 = vmax.f32 %v1402_v14, 0.0  ;;  %v1593_v22 = vpop.f32.mrf.mxu2  ;;  %v1785_v24 = vpop.f32.mrf.mxu3 }
 0x1f1   :  { %v2730_v18 = vmax.f32 %v2538_v17, %v2602_v16  ;;  %v1594_v26 = vadd.f32 %v4533_v23, %v1593_v22  ;;  %v1786_v27 = vadd.f32 %v4533_v23, %v1785_v24  ;;  %v210_v22 = vld [vmem:[%s5288_s0 + $0x5f0] sm:$0xff] }
 0x1f2   :  { %v2151_v25 = vmul.f32 %v4544_v32, %v1891_v19  ;;  %v2215_v29 = vmul.f32 %v4544_v32, %v1955_v20  ;;  %v274_v24 = vld [vmem:[%s5288_s0 + $0x7f0] sm:$0xff] }
 0x1f3   :  { %v2794_v21 = vmax.f32 %v2666_v15, %v2730_v18  ;;  %v2019_v33 = vmax.f32 %v1594_v26, 0.0  ;;  %v2083_v34 = vmax.f32 %v1786_v27, 0.0 }
 0x1f4   :  { %v2411_v31 = vadd.f32 %v4559_v40, %v2151_v25  ;;  %v2475_v35 = vadd.f32 %v4559_v40, %v2215_v29  ;;  %v1212_v36 = vpop.f32.mrf.mxu0  ;;  %v1404_v37 = vpop.f32.mrf.mxu1 }
 0x1f5   :  { %2858 = vst [vmem:[%s5292_s5 + $0x150] sm:$0xff] %v2794_v21  ;;  %v2279_v41 = vmul.f32 %v4544_v32, %v2019_v33  ;;  %v2343_v42 = vmul.f32 %v4544_v32, %v2083_v34  ;;  %3073 = vmatmul.msk.f32.gmra.mxu2 %vm290_vm1, %v208_v28  ;;  %3137 = vmatmul.msk.f32.gmra.mxu3 %vm290_vm1, %v272_v30  ;;  %v82_v21 = vld [vmem:[%s5288_s0 + $0x1f0] sm:$0xff] }
 0x1f6   :  { %v1213_v43 = vadd.f32 %v4533_v23, %v1212_v36  ;;  %v1405_v44 = vadd.f32 %v4533_v23, %v1404_v37  ;;  %v2667_v45 = vmax.f32 %v2411_v31, %v2475_v35  ;;  %v146_v31 = vld [vmem:[%s5288_s0 + $0x3f0] sm:$0xff] }
 0x1f7   :  { %v2539_v46 = vadd.f32 %v4559_v40, %v2279_v41  ;;  %v2603_v47 = vadd.f32 %v4559_v40, %v2343_v42  ;;  %2945 = vmatmul.msk.f32.gmra.mxu0 %vm290_vm1, %v80_v38  ;;  %3009 = vmatmul.msk.f32.gmra.mxu1 %vm290_vm1, %v144_v39 }
 0x1f8   :  { %v1892_v48 = vmax.f32 %v1213_v43, 0.0  ;;  %v1956_v49 = vmax.f32 %v1405_v44, 0.0  ;;  %v1596_v50 = vpop.f32.mrf.mxu2  ;;  %v1788_v51 = vpop.f32.mrf.mxu3 }
 0x1f9   :  { %v2731_v52 = vmax.f32 %v2539_v46, %v2603_v47  ;;  %v1597_v54 = vadd.f32 %v4533_v23, %v1596_v50  ;;  %v1789_v55 = vadd.f32 %v4533_v23, %v1788_v51  ;;  %v211_v50 = vld [vmem:[%s5288_s0 + $0x5f8] sm:$0xff] }
 0x1fa   :  { %v2152_v53 = vmul.f32 %v4544_v32, %v1892_v48  ;;  %v2216_v56 = vmul.f32 %v4544_v32, %v1956_v49  ;;  %v275_v51 = vld [vmem:[%s5288_s0 + $0x7f8] sm:$0xff] }
 0x1fb   :  { %v2795_v59 = vmax.f32 %v2667_v45, %v2731_v52  ;;  %v2020_v61 = vmax.f32 %v1597_v54, 0.0  ;;  %v2084_v62 = vmax.f32 %v1789_v55, 0.0 }
 0x1fc   :  { %v2412_v60 = vadd.f32 %v4559_v40, %v2152_v53  ;;  %v2476_v63 = vadd.f32 %v4559_v40, %v2216_v56  ;;  %v1215_v0 = vpop.f32.mrf.mxu0  ;;  %v1407_v1 = vpop.f32.mrf.mxu1 }
 0x1fd   :  { %2859 = vst [vmem:[%s5292_s5 + $0x158] sm:$0xff] %v2795_v59  ;;  %v2280_v4 = vmul.f32 %v4544_v32, %v2020_v61  ;;  %v2344_v5 = vmul.f32 %v4544_v32, %v2084_v62  ;;  %3074 = vmatmul.msk.f32.gmra.mxu2 %vm290_vm1, %v209_v57  ;;  %3138 = vmatmul.msk.f32.gmra.mxu3 %vm290_vm1, %v273_v58  ;;  %v83_v59 = vld [vmem:[%s5288_s0 + $0x1f8] sm:$0xff] }
 0x1fe   :  { %v1216_v6 = vadd.f32 %v4533_v23, %v1215_v0  ;;  %v1408_v7 = vadd.f32 %v4533_v23, %v1407_v1  ;;  %v2668_v8 = vmax.f32 %v2412_v60, %v2476_v63  ;;  %v147_v60 = vld [vmem:[%s5288_s0 + $0x3f8] sm:$0xff] }
 0x1ff   :  { %v2540_v9 = vadd.f32 %v4559_v40, %v2280_v4  ;;  %v2604_v11 = vadd.f32 %v4559_v40, %v2344_v5  ;;  %2946 = vmatmul.msk.f32.gmra.mxu0 %vm290_vm1, %v81_v2  ;;  %3010 = vmatmul.msk.f32.gmra.mxu1 %vm290_vm1, %v145_v3 }
 0x200   :  { %v1893_v12 = vmax.f32 %v1216_v6, 0.0  ;;  %v1957_v10 = vmax.f32 %v1408_v7, 0.0  ;;  %v1599_v13 = vpop.f32.mrf.mxu2  ;;  %v1791_v14 = vpop.f32.mrf.mxu3 }
 0x201   :  { %v2732_v15 = vmax.f32 %v2540_v9, %v2604_v11  ;;  %v1600_v16 = vadd.f32 %v4533_v23, %v1599_v13  ;;  %v1792_v19 = vadd.f32 %v4533_v23, %v1791_v14 }
 0x202   :  { %v2153_v17 = vmul.f32 %v4544_v32, %v1893_v12  ;;  %v2217_v20 = vmul.f32 %v4544_v32, %v1957_v10 }
 0x203   :  { %v2796_v18 = vmax.f32 %v2668_v8, %v2732_v15  ;;  %v2021_v26 = vmax.f32 %v1600_v16, 0.0  ;;  %v2085_v27 = vmax.f32 %v1792_v19, 0.0 }
 0x204   :  { %v2413_v25 = vadd.f32 %v4559_v40, %v2153_v17  ;;  %v2477_v29 = vadd.f32 %v4559_v40, %v2217_v20  ;;  %v1218_v28 = vpop.f32.mrf.mxu0  ;;  %v1410_v30 = vpop.f32.mrf.mxu1 }
 0x205   :  { %2860 = vst [vmem:[%s5292_s5 + $0x160] sm:$0xff] %v2796_v18  ;;  %v2281_v33 = vmul.f32 %v4544_v32, %v2021_v26  ;;  %v2345_v34 = vmul.f32 %v4544_v32, %v2085_v27  ;;  %3075 = vmatmul.msk.f32.gmra.mxu2 %vm290_vm1, %v210_v22  ;;  %3139 = vmatmul.msk.f32.gmra.mxu3 %vm290_vm1, %v274_v24 }
 0x206   :  { %v1219_v35 = vadd.f32 %v4533_v23, %v1218_v28  ;;  %v1411_v36 = vadd.f32 %v4533_v23, %v1410_v30  ;;  %v2669_v37 = vmax.f32 %v2413_v25, %v2477_v29 }
 0x207   :  { %v2541_v38 = vadd.f32 %v4559_v40, %v2281_v33  ;;  %v2605_v39 = vadd.f32 %v4559_v40, %v2345_v34  ;;  %2947 = vmatmul.msk.f32.gmra.mxu0 %vm290_vm1, %v82_v21  ;;  %3011 = vmatmul.msk.f32.gmra.mxu1 %vm290_vm1, %v146_v31 }
 0x208   :  { %v1894_v41 = vmax.f32 %v1219_v35, 0.0  ;;  %v1958_v42 = vmax.f32 %v1411_v36, 0.0  ;;  %v1602_v43 = vpop.f32.mrf.mxu2  ;;  %v1794_v44 = vpop.f32.mrf.mxu3  ;;  %v5036_v36 = vld [vmem:[%s5289_s2] ss:$0 sm:$0xff] }
 0x209   :  { %v2733_v45 = vmax.f32 %v2541_v38, %v2605_v39  ;;  %v1603_v47 = vadd.f32 %v4533_v23, %v1602_v43  ;;  %v1795_v48 = vadd.f32 %v4533_v23, %v1794_v44 }
 0x20a   :  { %v2154_v46 = vmul.f32 %v4544_v32, %v1894_v41  ;;  %v2218_v49 = vmul.f32 %v4544_v32, %v1958_v42 }
 0x20b   :  { %v2797_v52 = vmax.f32 %v2669_v37, %v2733_v45  ;;  %v2022_v54 = vmax.f32 %v1603_v47, 0.0  ;;  %v2086_v55 = vmax.f32 %v1795_v48, 0.0 }
 0x20c   :  { %v2414_v53 = vadd.f32 %v4559_v40, %v2154_v46  ;;  %v2478_v56 = vadd.f32 %v4559_v40, %v2218_v49  ;;  %v1221_v57 = vpop.f32.mrf.mxu0  ;;  %v1413_v58 = vpop.f32.mrf.mxu1  ;;  %v5057_v49 = vld [vmem:[%s5291_s4] ss:$0 sm:$0xff] }
 0x20d   :  { %2861 = vst [vmem:[%s5292_s5 + $0x168] sm:$0xff] %v2797_v52  ;;  %v2282_v61 = vmul.f32 %v4544_v32, %v2022_v54  ;;  %v2346_v62 = vmul.f32 %v4544_v32, %v2086_v55  ;;  %3076 = vmatmul.msk.f32.gmra.mxu2 %vm290_vm1, %v211_v50  ;;  %3140 = vmatmul.msk.f32.gmra.mxu3 %vm290_vm1, %v275_v51 }
 0x20e   :  { %v1222_v63 = vadd.f32 %v4533_v23, %v1221_v57  ;;  %v1414_v0 = vadd.f32 %v4533_v23, %v1413_v58  ;;  %v2670_v1 = vmax.f32 %v2414_v53, %v2478_v56 }
 0x20f   :  { %v2542_v2 = vadd.f32 %v4559_v40, %v2282_v61  ;;  %v2606_v3 = vadd.f32 %v4559_v40, %v2346_v62  ;;  %2948 = vmatmul.msk.f32.gmra.mxu0 %vm290_vm1, %v83_v59  ;;  %3012 = vmatmul.msk.f32.gmra.mxu1 %vm290_vm1, %v147_v60 }
 0x210   :  { %v1895_v4 = vmax.f32 %v1222_v63, 0.0  ;;  %v1959_v5 = vmax.f32 %v1414_v0, 0.0  ;;  %v1605_v6 = vpop.f32.mrf.mxu2  ;;  %v1797_v7 = vpop.f32.mrf.mxu3 }
 0x211   :  { %v2734_v8 = vmax.f32 %v2542_v2, %v2606_v3  ;;  %v1606_v11 = vadd.f32 %v4533_v23, %v1605_v6  ;;  %v1798_v12 = vadd.f32 %v4533_v23, %v1797_v7 }
 0x212   :  { %v2155_v9 = vmul.f32 %v4544_v32, %v1895_v4  ;;  %v2219_v10 = vmul.f32 %v4544_v32, %v1959_v5 }
 0x213   :  { %v2798_v13 = vmax.f32 %v2670_v1, %v2734_v8  ;;  %v2023_v15 = vmax.f32 %v1606_v11, 0.0  ;;  %v2087_v17 = vmax.f32 %v1798_v12, 0.0 }
 0x214   :  { %v2415_v14 = vadd.f32 %v4559_v40, %v2155_v9  ;;  %v2479_v16 = vadd.f32 %v4559_v40, %v2219_v10  ;;  %v1224_v19 = vpop.f32.mrf.mxu0  ;;  %v1416_v20 = vpop.f32.mrf.mxu1 }
 0x215   :  { %2862 = vst [vmem:[%s5292_s5 + $0x170] sm:$0xff] %v2798_v13  ;;  %v2283_v22 = vmul.f32 %v4544_v32, %v2023_v15  ;;  %v2347_v24 = vmul.f32 %v4544_v32, %v2087_v17  ;;  %v1225_v18 = vadd.f32 %v4533_v23, %v1224_v19  ;;  %v1417_v25 = vadd.f32 %v4533_v23, %v1416_v20 }
 0x216   :  { %v2671_v26 = vmax.f32 %v2415_v14, %v2479_v16 }
 0x217   :  { %v2543_v27 = vadd.f32 %v4559_v40, %v2283_v22  ;;  %v2607_v29 = vadd.f32 %v4559_v40, %v2347_v24  ;;  %v1896_v28 = vmax.f32 %v1225_v18, 0.0  ;;  %v1960_v30 = vmax.f32 %v1417_v25, 0.0 }
 0x218   :  { %v1608_v21 = vpop.f32.mrf.mxu2  ;;  %v1800_v31 = vpop.f32.mrf.mxu3 }
 0x219   :  { %v2735_v33 = vmax.f32 %v2543_v27, %v2607_v29  ;;  %v2156_v34 = vmul.f32 %v4544_v32, %v1896_v28  ;;  %v2220_v35 = vmul.f32 %v4544_v32, %v1960_v30  ;;  %v1609_v23 = vadd.f32 %v5036_v36, %v1608_v21  ;;  %v5048_v32 = vld [vmem:[%s5290_s3] ss:$0 sm:$0xff] }
 0x21a   :  { %v1801_v37 = vadd.f32 %v5036_v36, %v1800_v31 }
 0x21b   :  { %v2799_v38 = vmax.f32 %v2671_v26, %v2735_v33  ;;  %v2024_v39 = vmax.f32 %v1609_v23, 0.0  ;;  %v2416_v41 = vadd.f32 %v4559_v40, %v2156_v34  ;;  %v2480_v42 = vadd.f32 %v4559_v40, %v2220_v35 }
 0x21c   :  { %v2088_v43 = vmax.f32 %v1801_v37, 0.0  ;;  %v1227_v44 = vpop.f32.mrf.mxu0  ;;  %v1419_v45 = vpop.f32.mrf.mxu1 }
 0x21d   :  { %2863 = vst [vmem:[%s5292_s5 + $0x178] sm:$0xff] %v2799_v38  ;;  %v2284_v46 = vmul.f32 %v5048_v32, %v2024_v39  ;;  %v1228_v47 = vadd.f32 %v5036_v36, %v1227_v44  ;;  %v1420_v48 = vadd.f32 %v5036_v36, %v1419_v45  ;;  %v2672_v53 = vmax.f32 %v2416_v41, %v2480_v42 }
 0x21e   :  { %v2348_v40 = vmul.f32 %v5048_v32, %v2088_v43 }
 0x21f   :  { %v2544_v50 = vadd.f32 %v5057_v49, %v2284_v46  ;;  %v1897_v51 = vmax.f32 %v1228_v47, 0.0  ;;  %v1961_v52 = vmax.f32 %v1420_v48, 0.0 }
 0x220   :  { %v2608_v54 = vadd.f32 %v5057_v49, %v2348_v40  ;;  %v1611_v55 = vpop.f32.mrf.mxu2  ;;  %v1803_v56 = vpop.f32.mrf.mxu3 }
 0x221   :  { %v2157_v57 = vmul.f32 %v5048_v32, %v1897_v51  ;;  %v2221_v58 = vmul.f32 %v5048_v32, %v1961_v52  ;;  %v1612_v59 = vadd.f32 %v5036_v36, %v1611_v55  ;;  %v1804_v60 = vadd.f32 %v5036_v36, %v1803_v56 }
 0x222   :  { %v2736_v61 = vmax.f32 %v2544_v50, %v2608_v54 }
 0x223   :  { %v2417_v62 = vadd.f32 %v5057_v49, %v2157_v57  ;;  %v2481_v63 = vadd.f32 %v5057_v49, %v2221_v58  ;;  %v2025_v0 = vmax.f32 %v1612_v59, 0.0  ;;  %v2089_v1 = vmax.f32 %v1804_v60, 0.0 }
 0x224   :  { %v2800_v2 = vmax.f32 %v2672_v53, %v2736_v61  ;;  %v1230_v3 = vpop.f32.mrf.mxu0  ;;  %v1422_v4 = vpop.f32.mrf.mxu1 }
 0x225   :  { %v2285_v5 = vmul.f32 %v5048_v32, %v2025_v0  ;;  %v2349_v6 = vmul.f32 %v5048_v32, %v2089_v1  ;;  %v1231_v7 = vadd.f32 %v5036_v36, %v1230_v3  ;;  %v1423_v8 = vadd.f32 %v5036_v36, %v1422_v4 }
 0x226   :  { %2864 = vst [vmem:[%s5292_s5 + $0x180] sm:$0xff] %v2800_v2  ;;  %v2673_v9 = vmax.f32 %v2417_v62, %v2481_v63 }
 0x227   :  { %v2545_v11 = vadd.f32 %v5057_v49, %v2285_v5  ;;  %v2609_v12 = vadd.f32 %v5057_v49, %v2349_v6  ;;  %v1898_v10 = vmax.f32 %v1231_v7, 0.0  ;;  %v1962_v13 = vmax.f32 %v1423_v8, 0.0 }
 0x228   :  { %v1614_v14 = vpop.f32.mrf.mxu2  ;;  %v1806_v15 = vpop.f32.mrf.mxu3 }
 0x229   :  { %v2737_v17 = vmax.f32 %v2545_v11, %v2609_v12  ;;  %v2158_v16 = vmul.f32 %v5048_v32, %v1898_v10  ;;  %v1615_v19 = vadd.f32 %v5036_v36, %v1614_v14  ;;  %v1807_v20 = vadd.f32 %v5036_v36, %v1806_v15 }
 0x22a   :  { %v2222_v22 = vmul.f32 %v5048_v32, %v1962_v13 }
 0x22b   :  { %v2801_v24 = vmax.f32 %v2673_v9, %v2737_v17  ;;  %v2418_v18 = vadd.f32 %v5057_v49, %v2158_v16  ;;  %v2026_v25 = vmax.f32 %v1615_v19, 0.0  ;;  %v2090_v26 = vmax.f32 %v1807_v20, 0.0 }
 0x22c   :  { %v2482_v27 = vadd.f32 %v5057_v49, %v2222_v22  ;;  %v1233_v29 = vpop.f32.mrf.mxu0  ;;  %v1425_v28 = vpop.f32.mrf.mxu1 }
 0x22d   :  { %2865 = vst [vmem:[%s5292_s5 + $0x188] sm:$0xff] %v2801_v24  ;;  %v2286_v30 = vmul.f32 %v5048_v32, %v2026_v25  ;;  %v2350_v21 = vmul.f32 %v5048_v32, %v2090_v26  ;;  %v1234_v31 = vadd.f32 %v5036_v36, %v1233_v29  ;;  %v1426_v33 = vadd.f32 %v5036_v36, %v1425_v28 }
 0x22e   :  { %v2674_v34 = vmax.f32 %v2418_v18, %v2482_v27 }
 0x22f   :  { %v2546_v35 = vadd.f32 %v5057_v49, %v2286_v30  ;;  %v2610_v23 = vadd.f32 %v5057_v49, %v2350_v21  ;;  %v1899_v37 = vmax.f32 %v1234_v31, 0.0  ;;  %v1963_v38 = vmax.f32 %v1426_v33, 0.0 }
 0x230   :  { %v1617_v39 = vpop.f32.mrf.mxu2  ;;  %v1809_v41 = vpop.f32.mrf.mxu3 }
 0x231   :  { %v2738_v42 = vmax.f32 %v2546_v35, %v2610_v23  ;;  %v2159_v43 = vmul.f32 %v5048_v32, %v1899_v37  ;;  %v2223_v44 = vmul.f32 %v5048_v32, %v1963_v38  ;;  %v1618_v45 = vadd.f32 %v5036_v36, %v1617_v39 }
 0x232   :  { %v1810_v46 = vadd.f32 %v5036_v36, %v1809_v41 }
 0x233   :  { %v2802_v47 = vmax.f32 %v2674_v34, %v2738_v42  ;;  %v2027_v48 = vmax.f32 %v1618_v45, 0.0  ;;  %v2419_v40 = vadd.f32 %v5057_v49, %v2159_v43  ;;  %v2483_v50 = vadd.f32 %v5057_v49, %v2223_v44 }
 0x234   :  { %v2091_v51 = vmax.f32 %v1810_v46, 0.0  ;;  %v1236_v52 = vpop.f32.mrf.mxu0  ;;  %v1428_v53 = vpop.f32.mrf.mxu1 }
 0x235   :  { %2866 = vst [vmem:[%s5292_s5 + $0x190] sm:$0xff] %v2802_v47  ;;  %v2287_v54 = vmul.f32 %v5048_v32, %v2027_v48  ;;  %v1237_v55 = vadd.f32 %v5036_v36, %v1236_v52  ;;  %v1429_v56 = vadd.f32 %v5036_v36, %v1428_v53  ;;  %v2675_v61 = vmax.f32 %v2419_v40, %v2483_v50 }
 0x236   :  { %v2351_v57 = vmul.f32 %v5048_v32, %v2091_v51 }
 0x237   :  { %v2547_v58 = vadd.f32 %v5057_v49, %v2287_v54  ;;  %v1900_v59 = vmax.f32 %v1237_v55, 0.0  ;;  %v1964_v60 = vmax.f32 %v1429_v56, 0.0 }
 0x238   :  { %v2611_v62 = vadd.f32 %v5057_v49, %v2351_v57  ;;  %v1620_v63 = vpop.f32.mrf.mxu2  ;;  %v1812_v0 = vpop.f32.mrf.mxu3 }
 0x239   :  { %v2160_v1 = vmul.f32 %v5048_v32, %v1900_v59  ;;  %v2224_v2 = vmul.f32 %v5048_v32, %v1964_v60  ;;  %v1621_v3 = vadd.f32 %v5036_v36, %v1620_v63  ;;  %v1813_v4 = vadd.f32 %v5036_v36, %v1812_v0 }
 0x23a   :  { %v2739_v5 = vmax.f32 %v2547_v58, %v2611_v62 }
 0x23b   :  { %v2420_v6 = vadd.f32 %v5057_v49, %v2160_v1  ;;  %v2484_v7 = vadd.f32 %v5057_v49, %v2224_v2  ;;  %v2028_v8 = vmax.f32 %v1621_v3, 0.0  ;;  %v2092_v9 = vmax.f32 %v1813_v4, 0.0 }
 0x23c   :  { %v2803_v11 = vmax.f32 %v2675_v61, %v2739_v5  ;;  %v1239_v12 = vpop.f32.mrf.mxu0  ;;  %v1431_v10 = vpop.f32.mrf.mxu1 }
 0x23d   :  { %v2288_v13 = vmul.f32 %v5048_v32, %v2028_v8  ;;  %v2352_v14 = vmul.f32 %v5048_v32, %v2092_v9  ;;  %v1240_v15 = vadd.f32 %v5036_v36, %v1239_v12  ;;  %v1432_v17 = vadd.f32 %v5036_v36, %v1431_v10 }
 0x23e   :  { %2867 = vst [vmem:[%s5292_s5 + $0x198] sm:$0xff] %v2803_v11  ;;  %v2676_v16 = vmax.f32 %v2420_v6, %v2484_v7 }
 0x23f   :  { %v2548_v19 = vadd.f32 %v5057_v49, %v2288_v13  ;;  %v2612_v20 = vadd.f32 %v5057_v49, %v2352_v14  ;;  %v1901_v22 = vmax.f32 %v1240_v15, 0.0  ;;  %v1965_v24 = vmax.f32 %v1432_v17, 0.0 }
 0x240   :  { %v1623_v18 = vpop.f32.mrf.mxu2  ;;  %v1815_v25 = vpop.f32.mrf.mxu3 }
 0x241   :  { %v2740_v26 = vmax.f32 %v2548_v19, %v2612_v20  ;;  %v2161_v27 = vmul.f32 %v5048_v32, %v1901_v22  ;;  %v1624_v29 = vadd.f32 %v5036_v36, %v1623_v18  ;;  %v1816_v28 = vadd.f32 %v5036_v36, %v1815_v25 }
 0x242   :  { %v2225_v30 = vmul.f32 %v5048_v32, %v1965_v24 }
 0x243   :  { %v2804_v21 = vmax.f32 %v2676_v16, %v2740_v26  ;;  %v2421_v31 = vadd.f32 %v5057_v49, %v2161_v27  ;;  %v2029_v33 = vmax.f32 %v1624_v29, 0.0  ;;  %v2093_v34 = vmax.f32 %v1816_v28, 0.0 }
 0x244   :  { %v2485_v35 = vadd.f32 %v5057_v49, %v2225_v30  ;;  %v1242_v23 = vpop.f32.mrf.mxu0  ;;  %v1434_v37 = vpop.f32.mrf.mxu1 }
 0x245   :  { %2868 = vst [vmem:[%s5292_s5 + $0x1a0] sm:$0xff] %v2804_v21  ;;  %v2289_v38 = vmul.f32 %v5048_v32, %v2029_v33  ;;  %v2353_v39 = vmul.f32 %v5048_v32, %v2093_v34  ;;  %v1243_v41 = vadd.f32 %v5036_v36, %v1242_v23  ;;  %v1435_v42 = vadd.f32 %v5036_v36, %v1434_v37 }
 0x246   :  { %v2677_v43 = vmax.f32 %v2421_v31, %v2485_v35 }
 0x247   :  { %v2549_v44 = vadd.f32 %v5057_v49, %v2289_v38  ;;  %v2613_v45 = vadd.f32 %v5057_v49, %v2353_v39  ;;  %v1902_v46 = vmax.f32 %v1243_v41, 0.0  ;;  %v1966_v47 = vmax.f32 %v1435_v42, 0.0 }
 0x248   :  { %v1626_v48 = vpop.f32.mrf.mxu2  ;;  %v1818_v40 = vpop.f32.mrf.mxu3 }
 0x249   :  { %v2741_v50 = vmax.f32 %v2549_v44, %v2613_v45  ;;  %v2162_v51 = vmul.f32 %v5048_v32, %v1902_v46  ;;  %v2226_v52 = vmul.f32 %v5048_v32, %v1966_v47  ;;  %v1627_v53 = vadd.f32 %v5036_v36, %v1626_v48 }
 0x24a   :  { %v1819_v54 = vadd.f32 %v5036_v36, %v1818_v40 }
 0x24b   :  { %v2805_v55 = vmax.f32 %v2677_v43, %v2741_v50  ;;  %v2030_v56 = vmax.f32 %v1627_v53, 0.0  ;;  %v2422_v57 = vadd.f32 %v5057_v49, %v2162_v51  ;;  %v2486_v58 = vadd.f32 %v5057_v49, %v2226_v52 }
 0x24c   :  { %v2094_v59 = vmax.f32 %v1819_v54, 0.0  ;;  %v1245_v60 = vpop.f32.mrf.mxu0  ;;  %v1437_v61 = vpop.f32.mrf.mxu1 }
 0x24d   :  { %2869 = vst [vmem:[%s5292_s5 + $0x1a8] sm:$0xff] %v2805_v55  ;;  %v2290_v62 = vmul.f32 %v5048_v32, %v2030_v56  ;;  %v1246_v63 = vadd.f32 %v5036_v36, %v1245_v60  ;;  %v1438_v0 = vadd.f32 %v5036_v36, %v1437_v61  ;;  %v2678_v5 = vmax.f32 %v2422_v57, %v2486_v58 }
 0x24e   :  { %v2354_v1 = vmul.f32 %v5048_v32, %v2094_v59 }
 0x24f   :  { %v2550_v2 = vadd.f32 %v5057_v49, %v2290_v62  ;;  %v1903_v3 = vmax.f32 %v1246_v63, 0.0  ;;  %v1967_v4 = vmax.f32 %v1438_v0, 0.0 }
 0x250   :  { %v2614_v6 = vadd.f32 %v5057_v49, %v2354_v1  ;;  %v1629_v7 = vpop.f32.mrf.mxu2  ;;  %v1821_v8 = vpop.f32.mrf.mxu3 }
 0x251   :  { %v2163_v9 = vmul.f32 %v5048_v32, %v1903_v3  ;;  %v2227_v11 = vmul.f32 %v5048_v32, %v1967_v4  ;;  %v1630_v12 = vadd.f32 %v5036_v36, %v1629_v7  ;;  %v1822_v10 = vadd.f32 %v5036_v36, %v1821_v8 }
 0x252   :  { %v2742_v13 = vmax.f32 %v2550_v2, %v2614_v6 }
 0x253   :  { %v2423_v14 = vadd.f32 %v5057_v49, %v2163_v9  ;;  %v2487_v15 = vadd.f32 %v5057_v49, %v2227_v11  ;;  %v2031_v17 = vmax.f32 %v1630_v12, 0.0  ;;  %v2095_v16 = vmax.f32 %v1822_v10, 0.0 }
 0x254   :  { %v2806_v19 = vmax.f32 %v2678_v5, %v2742_v13  ;;  %v1248_v20 = vpop.f32.mrf.mxu0  ;;  %v1440_v22 = vpop.f32.mrf.mxu1 }
 0x255   :  { %v2291_v24 = vmul.f32 %v5048_v32, %v2031_v17  ;;  %v2355_v18 = vmul.f32 %v5048_v32, %v2095_v16  ;;  %v1249_v25 = vadd.f32 %v5036_v36, %v1248_v20  ;;  %v1441_v26 = vadd.f32 %v5036_v36, %v1440_v22 }
 0x256   :  { %2870 = vst [vmem:[%s5292_s5 + $0x1b0] sm:$0xff] %v2806_v19  ;;  %v2679_v27 = vmax.f32 %v2423_v14, %v2487_v15 }
 0x257   :  { %v2551_v29 = vadd.f32 %v5057_v49, %v2291_v24  ;;  %v2615_v28 = vadd.f32 %v5057_v49, %v2355_v18  ;;  %v1904_v30 = vmax.f32 %v1249_v25, 0.0  ;;  %v1968_v21 = vmax.f32 %v1441_v26, 0.0 }
 0x258   :  { %v1632_v31 = vpop.f32.mrf.mxu2  ;;  %v1824_v33 = vpop.f32.mrf.mxu3 }
 0x259   :  { %v2743_v34 = vmax.f32 %v2551_v29, %v2615_v28  ;;  %v2164_v35 = vmul.f32 %v5048_v32, %v1904_v30  ;;  %v1633_v23 = vadd.f32 %v5036_v36, %v1632_v31  ;;  %v1825_v37 = vadd.f32 %v5036_v36, %v1824_v33 }
 0x25a   :  { %v2228_v38 = vmul.f32 %v5048_v32, %v1968_v21 }
 0x25b   :  { %v2807_v39 = vmax.f32 %v2679_v27, %v2743_v34  ;;  %v2424_v41 = vadd.f32 %v5057_v49, %v2164_v35  ;;  %v2032_v42 = vmax.f32 %v1633_v23, 0.0  ;;  %v2096_v43 = vmax.f32 %v1825_v37, 0.0 }
 0x25c   :  { %v2488_v44 = vadd.f32 %v5057_v49, %v2228_v38  ;;  %v1251_v45 = vpop.f32.mrf.mxu0  ;;  %v1443_v46 = vpop.f32.mrf.mxu1 }
 0x25d   :  { %2871 = vst [vmem:[%s5292_s5 + $0x1b8] sm:$0xff] %v2807_v39  ;;  %v2292_v47 = vmul.f32 %v5048_v32, %v2032_v42  ;;  %v2356_v48 = vmul.f32 %v5048_v32, %v2096_v43  ;;  %v1252_v40 = vadd.f32 %v5036_v36, %v1251_v45  ;;  %v1444_v50 = vadd.f32 %v5036_v36, %v1443_v46 }
 0x25e   :  { %v2680_v51 = vmax.f32 %v2424_v41, %v2488_v44 }
 0x25f   :  { %v2552_v52 = vadd.f32 %v5057_v49, %v2292_v47  ;;  %v2616_v53 = vadd.f32 %v5057_v49, %v2356_v48  ;;  %v1905_v54 = vmax.f32 %v1252_v40, 0.0  ;;  %v1969_v55 = vmax.f32 %v1444_v50, 0.0 }
 0x260   :  { %v1635_v56 = vpop.f32.mrf.mxu2  ;;  %v1827_v57 = vpop.f32.mrf.mxu3 }
 0x261   :  { %v2744_v58 = vmax.f32 %v2552_v52, %v2616_v53  ;;  %v2165_v59 = vmul.f32 %v5048_v32, %v1905_v54  ;;  %v2229_v60 = vmul.f32 %v5048_v32, %v1969_v55  ;;  %v1636_v61 = vadd.f32 %v5036_v36, %v1635_v56 }
 0x262   :  { %v1828_v62 = vadd.f32 %v5036_v36, %v1827_v57 }
 0x263   :  { %v2808_v63 = vmax.f32 %v2680_v51, %v2744_v58  ;;  %v2033_v0 = vmax.f32 %v1636_v61, 0.0  ;;  %v2425_v1 = vadd.f32 %v5057_v49, %v2165_v59  ;;  %v2489_v2 = vadd.f32 %v5057_v49, %v2229_v60 }
 0x264   :  { %v2097_v3 = vmax.f32 %v1828_v62, 0.0  ;;  %v1254_v4 = vpop.f32.mrf.mxu0  ;;  %v1446_v5 = vpop.f32.mrf.mxu1 }
 0x265   :  { %2872 = vst [vmem:[%s5292_s5 + $0x1c0] sm:$0xff] %v2808_v63  ;;  %v2293_v6 = vmul.f32 %v5048_v32, %v2033_v0  ;;  %v1255_v7 = vadd.f32 %v5036_v36, %v1254_v4  ;;  %v1447_v8 = vadd.f32 %v5036_v36, %v1446_v5  ;;  %v2681_v13 = vmax.f32 %v2425_v1, %v2489_v2 }
 0x266   :  { %v2357_v9 = vmul.f32 %v5048_v32, %v2097_v3 }
 0x267   :  { %v2553_v11 = vadd.f32 %v5057_v49, %v2293_v6  ;;  %v1906_v12 = vmax.f32 %v1255_v7, 0.0  ;;  %v1970_v10 = vmax.f32 %v1447_v8, 0.0 }
 0x268   :  { %v2617_v14 = vadd.f32 %v5057_v49, %v2357_v9  ;;  %v1638_v15 = vpop.f32.mrf.mxu2  ;;  %v1830_v17 = vpop.f32.mrf.mxu3 }
 0x269   :  { %v2166_v16 = vmul.f32 %v5048_v32, %v1906_v12  ;;  %v2230_v19 = vmul.f32 %v5048_v32, %v1970_v10  ;;  %v1639_v20 = vadd.f32 %v5036_v36, %v1638_v15  ;;  %v1831_v22 = vadd.f32 %v5036_v36, %v1830_v17 }
 0x26a   :  { %v2745_v24 = vmax.f32 %v2553_v11, %v2617_v14 }
 0x26b   :  { %v2426_v18 = vadd.f32 %v5057_v49, %v2166_v16  ;;  %v2490_v25 = vadd.f32 %v5057_v49, %v2230_v19  ;;  %v2034_v26 = vmax.f32 %v1639_v20, 0.0  ;;  %v2098_v27 = vmax.f32 %v1831_v22, 0.0 }
 0x26c   :  { %v2809_v29 = vmax.f32 %v2681_v13, %v2745_v24  ;;  %v1257_v28 = vpop.f32.mrf.mxu0  ;;  %v1449_v30 = vpop.f32.mrf.mxu1 }
 0x26d   :  { %v2294_v21 = vmul.f32 %v5048_v32, %v2034_v26  ;;  %v2358_v31 = vmul.f32 %v5048_v32, %v2098_v27  ;;  %v1258_v33 = vadd.f32 %v5036_v36, %v1257_v28  ;;  %v1450_v34 = vadd.f32 %v5036_v36, %v1449_v30 }
 0x26e   :  { %2873 = vst [vmem:[%s5292_s5 + $0x1c8] sm:$0xff] %v2809_v29  ;;  %v2682_v35 = vmax.f32 %v2426_v18, %v2490_v25 }
 0x26f   :  { %v2554_v23 = vadd.f32 %v5057_v49, %v2294_v21  ;;  %v2618_v37 = vadd.f32 %v5057_v49, %v2358_v31  ;;  %v1907_v38 = vmax.f32 %v1258_v33, 0.0  ;;  %v1971_v39 = vmax.f32 %v1450_v34, 0.0 }
 0x270   :  { %v1641_v41 = vpop.f32.mrf.mxu2  ;;  %v1833_v42 = vpop.f32.mrf.mxu3 }
 0x271   :  { %v2746_v43 = vmax.f32 %v2554_v23, %v2618_v37  ;;  %v2167_v44 = vmul.f32 %v5048_v32, %v1907_v38  ;;  %v1642_v45 = vadd.f32 %v5036_v36, %v1641_v41  ;;  %v1834_v46 = vadd.f32 %v5036_v36, %v1833_v42 }
 0x272   :  { %v2231_v47 = vmul.f32 %v5048_v32, %v1971_v39 }
 0x273   :  { %v2810_v48 = vmax.f32 %v2682_v35, %v2746_v43  ;;  %v2427_v40 = vadd.f32 %v5057_v49, %v2167_v44  ;;  %v2035_v50 = vmax.f32 %v1642_v45, 0.0  ;;  %v2099_v51 = vmax.f32 %v1834_v46, 0.0 }
 0x274   :  { %v2491_v52 = vadd.f32 %v5057_v49, %v2231_v47  ;;  %v1260_v53 = vpop.f32.mrf.mxu0  ;;  %v1452_v54 = vpop.f32.mrf.mxu1 }
 0x275   :  { %2874 = vst [vmem:[%s5292_s5 + $0x1d0] sm:$0xff] %v2810_v48  ;;  %v2295_v55 = vmul.f32 %v5048_v32, %v2035_v50  ;;  %v2359_v56 = vmul.f32 %v5048_v32, %v2099_v51  ;;  %v1261_v57 = vadd.f32 %v5036_v36, %v1260_v53  ;;  %v1453_v58 = vadd.f32 %v5036_v36, %v1452_v54 }
 0x276   :  { %v2683_v59 = vmax.f32 %v2427_v40, %v2491_v52 }
 0x277   :  { %v2555_v60 = vadd.f32 %v5057_v49, %v2295_v55  ;;  %v2619_v61 = vadd.f32 %v5057_v49, %v2359_v56  ;;  %v1908_v62 = vmax.f32 %v1261_v57, 0.0  ;;  %v1972_v63 = vmax.f32 %v1453_v58, 0.0 }
 0x278   :  { %v1644_v0 = vpop.f32.mrf.mxu2  ;;  %v1836_v1 = vpop.f32.mrf.mxu3 }
 0x279   :  { %v2747_v2 = vmax.f32 %v2555_v60, %v2619_v61  ;;  %v2168_v3 = vmul.f32 %v5048_v32, %v1908_v62  ;;  %v2232_v4 = vmul.f32 %v5048_v32, %v1972_v63  ;;  %v1645_v5 = vadd.f32 %v5036_v36, %v1644_v0 }
 0x27a   :  { %v1837_v6 = vadd.f32 %v5036_v36, %v1836_v1 }
 0x27b   :  { %v2811_v7 = vmax.f32 %v2683_v59, %v2747_v2  ;;  %v2036_v8 = vmax.f32 %v1645_v5, 0.0  ;;  %v2428_v9 = vadd.f32 %v5057_v49, %v2168_v3  ;;  %v2492_v11 = vadd.f32 %v5057_v49, %v2232_v4 }
 0x27c   :  { %v2100_v12 = vmax.f32 %v1837_v6, 0.0  ;;  %v1263_v10 = vpop.f32.mrf.mxu0  ;;  %v1455_v13 = vpop.f32.mrf.mxu1 }
 0x27d   :  { %2875 = vst [vmem:[%s5292_s5 + $0x1d8] sm:$0xff] %v2811_v7  ;;  %v2296_v14 = vmul.f32 %v5048_v32, %v2036_v8  ;;  %v1264_v15 = vadd.f32 %v5036_v36, %v1263_v10  ;;  %v1456_v17 = vadd.f32 %v5036_v36, %v1455_v13  ;;  %v2684_v24 = vmax.f32 %v2428_v9, %v2492_v11 }
 0x27e   :  { %v2360_v16 = vmul.f32 %v5048_v32, %v2100_v12 }
 0x27f   :  { %v2556_v19 = vadd.f32 %v5057_v49, %v2296_v14  ;;  %v1909_v20 = vmax.f32 %v1264_v15, 0.0  ;;  %v1973_v22 = vmax.f32 %v1456_v17, 0.0 }
 0x280   :  { %v2620_v18 = vadd.f32 %v5057_v49, %v2360_v16  ;;  %v1647_v25 = vpop.f32.mrf.mxu2  ;;  %v1839_v26 = vpop.f32.mrf.mxu3 }
 0x281   :  { %v2169_v27 = vmul.f32 %v5048_v32, %v1909_v20  ;;  %v2233_v29 = vmul.f32 %v5048_v32, %v1973_v22  ;;  %v1648_v28 = vadd.f32 %v5036_v36, %v1647_v25  ;;  %v1840_v30 = vadd.f32 %v5036_v36, %v1839_v26 }
 0x282   :  { %v2748_v21 = vmax.f32 %v2556_v19, %v2620_v18 }
 0x283   :  { %v2429_v31 = vadd.f32 %v5057_v49, %v2169_v27  ;;  %v2493_v33 = vadd.f32 %v5057_v49, %v2233_v29  ;;  %v2037_v34 = vmax.f32 %v1648_v28, 0.0  ;;  %v2101_v35 = vmax.f32 %v1840_v30, 0.0 }
 0x284   :  { %v2812_v23 = vmax.f32 %v2684_v24, %v2748_v21  ;;  %v1266_v37 = vpop.f32.mrf.mxu0  ;;  %v1458_v38 = vpop.f32.mrf.mxu1 }
 0x285   :  { %v2297_v39 = vmul.f32 %v5048_v32, %v2037_v34  ;;  %v2361_v41 = vmul.f32 %v5048_v32, %v2101_v35  ;;  %v1267_v42 = vadd.f32 %v5036_v36, %v1266_v37  ;;  %v1459_v43 = vadd.f32 %v5036_v36, %v1458_v38 }
 0x286   :  { %2876 = vst [vmem:[%s5292_s5 + $0x1e0] sm:$0xff] %v2812_v23  ;;  %v2685_v44 = vmax.f32 %v2429_v31, %v2493_v33 }
 0x287   :  { %v2557_v45 = vadd.f32 %v5057_v49, %v2297_v39  ;;  %v2621_v46 = vadd.f32 %v5057_v49, %v2361_v41  ;;  %v1910_v47 = vmax.f32 %v1267_v42, 0.0  ;;  %v1974_v48 = vmax.f32 %v1459_v43, 0.0 }
 0x288   :  { %v1650_v40 = vpop.f32.mrf.mxu2  ;;  %v1842_v50 = vpop.f32.mrf.mxu3 }
 0x289   :  { %v2749_v51 = vmax.f32 %v2557_v45, %v2621_v46  ;;  %v2170_v52 = vmul.f32 %v5048_v32, %v1910_v47  ;;  %v1651_v53 = vadd.f32 %v5036_v36, %v1650_v40  ;;  %v1843_v54 = vadd.f32 %v5036_v36, %v1842_v50 }
 0x28a   :  { %v2234_v55 = vmul.f32 %v5048_v32, %v1974_v48 }
 0x28b   :  { %v2813_v56 = vmax.f32 %v2685_v44, %v2749_v51  ;;  %v2430_v57 = vadd.f32 %v5057_v49, %v2170_v52  ;;  %v2038_v58 = vmax.f32 %v1651_v53, 0.0  ;;  %v2102_v59 = vmax.f32 %v1843_v54, 0.0 }
 0x28c   :  { %v2494_v60 = vadd.f32 %v5057_v49, %v2234_v55  ;;  %v1269_v61 = vpop.f32.mrf.mxu0  ;;  %v1461_v62 = vpop.f32.mrf.mxu1 }
 0x28d   :  { %2877 = vst [vmem:[%s5292_s5 + $0x1e8] sm:$0xff] %v2813_v56  ;;  %v2298_v63 = vmul.f32 %v5048_v32, %v2038_v58  ;;  %v2362_v0 = vmul.f32 %v5048_v32, %v2102_v59  ;;  %v1270_v1 = vadd.f32 %v5036_v36, %v1269_v61  ;;  %v1462_v2 = vadd.f32 %v5036_v36, %v1461_v62 }
 0x28e   :  { %v2686_v3 = vmax.f32 %v2430_v57, %v2494_v60 }
 0x28f   :  { %v2558_v4 = vadd.f32 %v5057_v49, %v2298_v63  ;;  %v2622_v5 = vadd.f32 %v5057_v49, %v2362_v0  ;;  %v1911_v6 = vmax.f32 %v1270_v1, 0.0  ;;  %v1975_v7 = vmax.f32 %v1462_v2, 0.0 }
 0x290   :  { %v1653_v8 = vpop.f32.mrf.mxu2  ;;  %v1845_v9 = vpop.f32.mrf.mxu3 }
 0x291   :  { %v2750_v11 = vmax.f32 %v2558_v4, %v2622_v5  ;;  %v2171_v12 = vmul.f32 %v5048_v32, %v1911_v6  ;;  %v2235_v10 = vmul.f32 %v5048_v32, %v1975_v7  ;;  %v1654_v13 = vadd.f32 %v5036_v36, %v1653_v8 }
 0x292   :  { %v1846_v14 = vadd.f32 %v5036_v36, %v1845_v9 }
 0x293   :  { %v2814_v15 = vmax.f32 %v2686_v3, %v2750_v11  ;;  %v2039_v17 = vmax.f32 %v1654_v13, 0.0  ;;  %v2431_v16 = vadd.f32 %v5057_v49, %v2171_v12  ;;  %v2495_v19 = vadd.f32 %v5057_v49, %v2235_v10 }
 0x294   :  { %v2103_v20 = vmax.f32 %v1846_v14, 0.0 }
 0x295   :  { %2878 = vst [vmem:[%s5292_s5 + $0x1f0] sm:$0xff] %v2814_v15  ;;  %v2299_v22 = vmul.f32 %v5048_v32, %v2039_v17  ;;  %v2687_v25 = vmax.f32 %v2431_v16, %v2495_v19 }
 0x296   :  { %v2363_v24 = vmul.f32 %v5048_v32, %v2103_v20 }
 0x297   :  { %v2559_v18 = vadd.f32 %v5057_v49, %v2299_v22 }
 0x298   :  { %v2623_v36 = vadd.f32 %v5057_v49, %v2363_v24 }
 0x29a   :  { %v2751_v26 = vmax.f32 %v2559_v18, %v2623_v36 }
 0x29c   :  { %v2815_v27 = vmax.f32 %v2687_v25, %v2751_v26 }
 0x29e   :  { %2879 = vst [vmem:[%s5292_s5 + $0x1f8] sm:$0xff] %v2815_v27 }

// kernel: smallcnn_multitask_forward.4
= control target key start
LH: loop header
LB: loop body
LE: loop exit
PB: predicated region body
PF: predicated region fallthrough
CT: control target
= control target key end

     0   :  { %vm364_vm0 = vcmask 1045504   ;;  %vm171_vm1 = vcmask 179200   ;;  %s2162_s1 = inlined_call_operand.vmem [shape: f32[150,128], index: 1, kind: input, shape index: {}]   ;;  %s2163_s0 = inlined_call_operand.vmem [shape: f32[4,128,150], index: 0, kind: input, shape index: {}]   ;;  %s2164_s2 = inlined_call_operand.vmem [shape: f32[1,128], index: 2, kind: input, shape index: {}]   ;;  %s2165_s3 = inlined_call_operand.vmem [shape: f32[1,128], index: 3, kind: input, shape index: {}]   ;;  %s2166_s4 = inlined_call_operand.vmem [shape: f32[1,128], index: 4, kind: input, shape index: {}]   ;;  %s2167_s5 = inlined_call_operand.vmem [shape: f32[128,128], index: 5, kind: output, shape index: {}]  }
   0x1   :  { %v163_v0 = vld [vmem:[%s2162_s1 + $0x78] sm:$0xff]  ;;  %v1194_v1 = vld [vmem:[%s2162_s1 + $0x90] sm:$0x3f]  ;;  %v1202_v3 = vld [vmem:[%s2162_s1 + $0x88] sm:$0xff] }
   0x2   :  { %v162_v2 = vld [vmem:[%s2162_s1 + $0x70] sm:$0xff]  ;;  %368 = vmatpush.msra.mxu0 %v163_v0  ;;  %1119 = vmatpush.msra.mxu2 %v163_v0  ;;  %v161_v4 = vld [vmem:[%s2162_s1 + $0x68] sm:$0xff]  ;;  %v1212_v5 = vld [vmem:[%s2162_s1 + $0x80] sm:$0xff] }
   0x3   :  { %1120 = vmatpush.msra.mxu3 %v163_v0  ;;  %1054 = vmatpush.msk.msra.mxu1 %vm364_vm0, %v1194_v1  ;;  %v21_v6 = vld [vmem:[%s2163_s0 + $0x8] sm:$0xff]  ;;  %v160_v7 = vld [vmem:[%s2162_s1 + $0x60] sm:$0xff]  ;;  %v159_v8 = vld [vmem:[%s2162_s1 + $0x58] sm:$0xff] }
   0x4   :  { %369 = vmatpush.msra.mxu0 %v162_v2  ;;  %1121 = vmatpush.msra.mxu2 %v162_v2  ;;  %v158_v9 = vld [vmem:[%s2162_s1 + $0x50] sm:$0xff]  ;;  %v157_v10 = vld [vmem:[%s2162_s1 + $0x48] sm:$0xff]  ;;  %v23_v11 = vld [vmem:[%s2163_s0 + $0x18] sm:$0xff] }
   0x5   :  { %1122 = vmatpush.msra.mxu3 %v162_v2  ;;  %591 = vmatpush.msra.mxu1 %v1202_v3  ;;  %v156_v12 = vld [vmem:[%s2162_s1 + $0x40] sm:$0xff]  ;;  %v155_v13 = vld [vmem:[%s2162_s1 + $0x38] sm:$0xff]  ;;  %v154_v14 = vld [vmem:[%s2162_s1 + $0x30] sm:$0xff] }
   0x6   :  { %370 = vmatpush.msra.mxu0 %v161_v4  ;;  %1123 = vmatpush.msra.mxu2 %v161_v4  ;;  %v153_v15 = vld [vmem:[%s2162_s1 + $0x28] sm:$0xff]  ;;  %v152_v17 = vld [vmem:[%s2162_s1 + $0x20] sm:$0xff]  ;;  %v151_v18 = vld [vmem:[%s2162_s1 + $0x18] sm:$0xff] }
   0x7   :  { %1124 = vmatpush.msra.mxu3 %v161_v4  ;;  %592 = vmatpush.msra.mxu1 %v1212_v5  ;;  %v25_v16 = vld [vmem:[%s2163_s0 + $0x28] sm:$0xff]  ;;  %v150_v19 = vld [vmem:[%s2162_s1 + $0x10] sm:$0xff]  ;;  %v27_v21 = vld [vmem:[%s2163_s0 + $0x38] sm:$0xff] }
   0x8   :  { %1055 = vmatmul.msk.f32.vlgmr.msra.gmra.mxu1 %vm171_vm1, %v21_v6  ;;  %371 = vmatpush.msra.mxu0 %v160_v7  ;;  %v149_v20 = vld [vmem:[%s2162_s1 + $0x8] sm:$0xff]  ;;  %v148_v22 = vld [vmem:[%s2162_s1] sm:$0xff]  ;;  %v82_v24 = vld [vmem:[%s2163_s0 + $0x1f0] sm:$0xff] }
   0x9   :  { %1125 = vmatpush.msra.mxu2 %v160_v7  ;;  %1126 = vmatpush.msra.mxu3 %v160_v7  ;;  %v20_v23 = vld [vmem:[%s2163_s0] sm:$0xff]  ;;  %v146_v25 = vld [vmem:[%s2163_s0 + $0x3f0] sm:$0xff]  ;;  %v29_v26 = vld [vmem:[%s2163_s0 + $0x48] sm:$0xff] }
   0xa   :  { %372 = vmatpush.msra.mxu0 %v159_v8  ;;  %v22_v27 = vld [vmem:[%s2163_s0 + $0x10] sm:$0xff]  ;;  %v84_v28 = vld [vmem:[%s2163_s0 + $0x200] sm:$0xff]  ;;  %v89_v29 = vld [vmem:[%s2163_s0 + $0x228] sm:$0xff] }
   0xb   :  { %1127 = vmatpush.msra.mxu2 %v159_v8  ;;  %1128 = vmatpush.msra.mxu3 %v159_v8  ;;  %v31_v30 = vld [vmem:[%s2163_s0 + $0x58] sm:$0xff]  ;;  %v24_v31 = vld [vmem:[%s2163_s0 + $0x20] sm:$0xff]  ;;  %v86_v32 = vld [vmem:[%s2163_s0 + $0x210] sm:$0xff] }
   0xc   :  { %373 = vmatpush.msra.mxu0 %v158_v9  ;;  %v91_v33 = vld [vmem:[%s2163_s0 + $0x238] sm:$0xff]  ;;  %v33_v34 = vld [vmem:[%s2163_s0 + $0x68] sm:$0xff]  ;;  %v26_v35 = vld [vmem:[%s2163_s0 + $0x30] sm:$0xff] }
   0xd   :  { %1129 = vmatpush.msra.mxu2 %v158_v9  ;;  %1130 = vmatpush.msra.mxu3 %v158_v9  ;;  %v88_v36 = vld [vmem:[%s2163_s0 + $0x220] sm:$0xff]  ;;  %v93_v37 = vld [vmem:[%s2163_s0 + $0x248] sm:$0xff]  ;;  %v35_v38 = vld [vmem:[%s2163_s0 + $0x78] sm:$0xff] }
   0xe   :  { %374 = vmatpush.msra.mxu0 %v157_v10  ;;  %v28_v39 = vld [vmem:[%s2163_s0 + $0x40] sm:$0xff]  ;;  %v90_v40 = vld [vmem:[%s2163_s0 + $0x230] sm:$0xff]  ;;  %v95_v41 = vld [vmem:[%s2163_s0 + $0x258] sm:$0xff] }
   0xf   :  { %1131 = vmatpush.msra.mxu2 %v157_v10  ;;  %1132 = vmatpush.msra.mxu3 %v157_v10  ;;  %v37_v42 = vld [vmem:[%s2163_s0 + $0x88] sm:$0xff]  ;;  %v30_v43 = vld [vmem:[%s2163_s0 + $0x50] sm:$0xff]  ;;  %v92_v44 = vld [vmem:[%s2163_s0 + $0x240] sm:$0xff] }
  0x10   :  { %1056 = vmatmul.msk.f32.gmra.mxu1 %vm171_vm1, %v23_v11  ;;  %375 = vmatpush.msra.mxu0 %v156_v12  ;;  %v97_v45 = vld [vmem:[%s2163_s0 + $0x268] sm:$0xff]  ;;  %v39_v46 = vld [vmem:[%s2163_s0 + $0x98] sm:$0xff]  ;;  %v32_v47 = vld [vmem:[%s2163_s0 + $0x60] sm:$0xff] }
  0x11   :  { %1133 = vmatpush.msra.mxu2 %v156_v12  ;;  %1134 = vmatpush.msra.mxu3 %v156_v12  ;;  %v94_v48 = vld [vmem:[%s2163_s0 + $0x250] sm:$0xff]  ;;  %v99_v49 = vld [vmem:[%s2163_s0 + $0x278] sm:$0xff]  ;;  %v41_v50 = vld [vmem:[%s2163_s0 + $0xa8] sm:$0xff] }
  0x12   :  { %376 = vmatpush.msra.mxu0 %v155_v13  ;;  %v34_v51 = vld [vmem:[%s2163_s0 + $0x70] sm:$0xff]  ;;  %v96_v52 = vld [vmem:[%s2163_s0 + $0x260] sm:$0xff]  ;;  %v101_v53 = vld [vmem:[%s2163_s0 + $0x288] sm:$0xff] }
  0x13   :  { %1135 = vmatpush.msra.mxu2 %v155_v13  ;;  %1136 = vmatpush.msra.mxu3 %v155_v13  ;;  %v43_v54 = vld [vmem:[%s2163_s0 + $0xb8] sm:$0xff]  ;;  %v36_v55 = vld [vmem:[%s2163_s0 + $0x80] sm:$0xff]  ;;  %v98_v56 = vld [vmem:[%s2163_s0 + $0x270] sm:$0xff] }
  0x14   :  { %377 = vmatpush.msra.mxu0 %v154_v14  ;;  %v103_v57 = vld [vmem:[%s2163_s0 + $0x298] sm:$0xff]  ;;  %v45_v58 = vld [vmem:[%s2163_s0 + $0xc8] sm:$0xff]  ;;  %v38_v59 = vld [vmem:[%s2163_s0 + $0x90] sm:$0xff] }
  0x15   :  { %1137 = vmatpush.msra.mxu2 %v154_v14  ;;  %1138 = vmatpush.msra.mxu3 %v154_v14  ;;  %v100_v60 = vld [vmem:[%s2163_s0 + $0x280] sm:$0xff]  ;;  %v105_v61 = vld [vmem:[%s2163_s0 + $0x2a8] sm:$0xff]  ;;  %v47_v62 = vld [vmem:[%s2163_s0 + $0xd8] sm:$0xff] }
  0x16   :  { %378 = vmatpush.msra.mxu0 %v153_v15  ;;  %v40_v63 = vld [vmem:[%s2163_s0 + $0xa0] sm:$0xff]  ;;  %v102_v0 = vld [vmem:[%s2163_s0 + $0x290] sm:$0xff]  ;;  %v49_v2 = vld [vmem:[%s2163_s0 + $0xe8] sm:$0xff] }
  0x17   :  { %1139 = vmatpush.msra.mxu2 %v153_v15  ;;  %1140 = vmatpush.msra.mxu3 %v153_v15  ;;  %v104_v4 = vld [vmem:[%s2163_s0 + $0x2a0] sm:$0xff]  ;;  %v51_v6 = vld [vmem:[%s2163_s0 + $0xf8] sm:$0xff]  ;;  %v106_v8 = vld [vmem:[%s2163_s0 + $0x2b0] sm:$0xff] }
  0x18   :  { %1057 = vmatmul.msk.f32.gmra.mxu1 %vm171_vm1, %v25_v16  ;;  %379 = vmatpush.msra.mxu0 %v152_v17  ;;  %v44_v7 = vld [vmem:[%s2163_s0 + $0xc0] sm:$0xff]  ;;  %v111_v9 = vld [vmem:[%s2163_s0 + $0x2d8] sm:$0xff]  ;;  %v53_v11 = vld [vmem:[%s2163_s0 + $0x108] sm:$0xff] }
  0x19   :  { %1141 = vmatpush.msra.mxu2 %v152_v17  ;;  %1142 = vmatpush.msra.mxu3 %v152_v17  ;;  %v46_v12 = vld [vmem:[%s2163_s0 + $0xd0] sm:$0xff]  ;;  %v108_v13 = vld [vmem:[%s2163_s0 + $0x2c0] sm:$0xff]  ;;  %v113_v14 = vld [vmem:[%s2163_s0 + $0x2e8] sm:$0xff] }
  0x1a   :  { %380 = vmatpush.msra.mxu0 %v151_v18  ;;  %v55_v16 = vld [vmem:[%s2163_s0 + $0x118] sm:$0xff]  ;;  %v48_v17 = vld [vmem:[%s2163_s0 + $0xe0] sm:$0xff] }
  0x1b   :  { %1143 = vmatpush.msra.mxu2 %v151_v18  ;;  %1144 = vmatpush.msra.mxu3 %v151_v18  ;;  %v110_v18 = vld [vmem:[%s2163_s0 + $0x2d0] sm:$0xff] }
  0x1c   :  { %381 = vmatpush.msra.mxu0 %v150_v19 }
  0x1d   :  { %1145 = vmatpush.msra.mxu2 %v150_v19  ;;  %1146 = vmatpush.msra.mxu3 %v150_v19  ;;  %v115_v19 = vld [vmem:[%s2163_s0 + $0x2f8] sm:$0xff] }
  0x1e   :  { %382 = vmatpush.msra.mxu0 %v149_v20 }
  0x1f   :  { %1147 = vmatpush.msra.mxu2 %v149_v20  ;;  %1148 = vmatpush.msra.mxu3 %v149_v20 }
  0x20   :  { %1058 = vmatmul.msk.f32.gmra.mxu1 %vm171_vm1, %v27_v21  ;;  %383 = vmatpush.msra.mxu0 %v148_v22  ;;  %v57_v21 = vld [vmem:[%s2163_s0 + $0x128] sm:$0xff] }
  0x21   :  { %1149 = vmatpush.msra.mxu2 %v148_v22  ;;  %1150 = vmatpush.msra.mxu3 %v148_v22  ;;  %v50_v22 = vld [vmem:[%s2163_s0 + $0xf0] sm:$0xff] }
  0x22   :  { %384 = vmatmul.f32.vlgmr.msra.gmra.mxu0 %v20_v23  ;;  %477 = vmatmul.f32.vlgmr.msra.gmra.mxu2 %v82_v24  ;;  %v112_v23 = vld [vmem:[%s2163_s0 + $0x2e0] sm:$0xff]  ;;  %v117_v24 = vld [vmem:[%s2163_s0 + $0x308] sm:$0xff] }
  0x23   :  { %573 = vmatmul.f32.vlgmr.msra.gmra.mxu3 %v146_v25 }
  0x24   :  { %1151 = vmatpush.msk.msrb.mxu3 %vm364_vm0, %v1194_v1  ;;  %v107_v1 = vld [vmem:[%s2163_s0 + $0x2b8] sm:$0xff] }
  0x26   :  { %1152 = vmatpush.msrb.mxu3 %v1202_v3  ;;  %v42_v3 = vld [vmem:[%s2163_s0 + $0xb0] sm:$0xff] }
  0x28   :  { %1059 = vmatmul.msk.f32.gmra.mxu1 %vm171_vm1, %v29_v26  ;;  %1153 = vmatpush.msrb.mxu3 %v1212_v5  ;;  %v109_v5 = vld [vmem:[%s2163_s0 + $0x2c8] sm:$0xff]  ;;  %v59_v26 = vld [vmem:[%s2163_s0 + $0x138] sm:$0xff] }
  0x2a   :  { %387 = vmatmul.f32.gmra.mxu0 %v22_v27  ;;  %480 = vmatmul.f32.gmra.mxu2 %v84_v28  ;;  %v52_v28 = vld [vmem:[%s2163_s0 + $0x100] sm:$0xff] }
  0x2b   :  { %1089 = vmatmul.msk.f32.vlgmr.msrb.gmra.mxu3 %vm171_vm1, %v89_v29  ;;  %v114_v29 = vld [vmem:[%s2163_s0 + $0x2f0] sm:$0xff] }
  0x30   :  { %1060 = vmatmul.msk.f32.gmra.mxu1 %vm171_vm1, %v31_v30  ;;  %v119_v30 = vld [vmem:[%s2163_s0 + $0x318] sm:$0xff] }
  0x32   :  { %390 = vmatmul.f32.gmra.mxu0 %v24_v31  ;;  %483 = vmatmul.f32.gmra.mxu2 %v86_v32 }
  0x33   :  { %1090 = vmatmul.msk.f32.gmra.mxu3 %vm171_vm1, %v91_v33  ;;  %v61_v33 = vld [vmem:[%s2163_s0 + $0x148] sm:$0xff] }
  0x38   :  { %1061 = vmatmul.msk.f32.gmra.mxu1 %vm171_vm1, %v33_v34 }
  0x3a   :  { %393 = vmatmul.f32.gmra.mxu0 %v26_v35  ;;  %486 = vmatmul.f32.gmra.mxu2 %v88_v36  ;;  %v54_v36 = vld [vmem:[%s2163_s0 + $0x110] sm:$0xff] }
  0x3b   :  { %1091 = vmatmul.msk.f32.gmra.mxu3 %vm171_vm1, %v93_v37  ;;  %v116_v37 = vld [vmem:[%s2163_s0 + $0x300] sm:$0xff] }
  0x40   :  { %1062 = vmatmul.msk.f32.gmra.mxu1 %vm171_vm1, %v35_v38  ;;  %v121_v38 = vld [vmem:[%s2163_s0 + $0x328] sm:$0xff] }
  0x42   :  { %396 = vmatmul.f32.gmra.mxu0 %v28_v39  ;;  %489 = vmatmul.f32.gmra.mxu2 %v90_v40 }
  0x43   :  { %1092 = vmatmul.msk.f32.gmra.mxu3 %vm171_vm1, %v95_v41  ;;  %v63_v41 = vld [vmem:[%s2163_s0 + $0x158] sm:$0xff] }
  0x48   :  { %1063 = vmatmul.msk.f32.gmra.mxu1 %vm171_vm1, %v37_v42 }
  0x4a   :  { %399 = vmatmul.f32.gmra.mxu0 %v30_v43  ;;  %492 = vmatmul.f32.gmra.mxu2 %v92_v44  ;;  %v56_v44 = vld [vmem:[%s2163_s0 + $0x120] sm:$0xff] }
  0x4b   :  { %1093 = vmatmul.msk.f32.gmra.mxu3 %vm171_vm1, %v97_v45  ;;  %v118_v45 = vld [vmem:[%s2163_s0 + $0x310] sm:$0xff] }
  0x50   :  { %1064 = vmatmul.msk.f32.gmra.mxu1 %vm171_vm1, %v39_v46  ;;  %v123_v46 = vld [vmem:[%s2163_s0 + $0x338] sm:$0xff] }
  0x52   :  { %402 = vmatmul.f32.gmra.mxu0 %v32_v47  ;;  %495 = vmatmul.f32.gmra.mxu2 %v94_v48 }
  0x53   :  { %1094 = vmatmul.msk.f32.gmra.mxu3 %vm171_vm1, %v99_v49  ;;  %v65_v49 = vld [vmem:[%s2163_s0 + $0x168] sm:$0xff] }
  0x58   :  { %1065 = vmatmul.msk.f32.gmra.mxu1 %vm171_vm1, %v41_v50 }
  0x5a   :  { %405 = vmatmul.f32.gmra.mxu0 %v34_v51  ;;  %498 = vmatmul.f32.gmra.mxu2 %v96_v52  ;;  %v58_v52 = vld [vmem:[%s2163_s0 + $0x130] sm:$0xff] }
  0x5b   :  { %1095 = vmatmul.msk.f32.gmra.mxu3 %vm171_vm1, %v101_v53  ;;  %v120_v53 = vld [vmem:[%s2163_s0 + $0x320] sm:$0xff] }
  0x60   :  { %1066 = vmatmul.msk.f32.gmra.mxu1 %vm171_vm1, %v43_v54  ;;  %v125_v54 = vld [vmem:[%s2163_s0 + $0x348] sm:$0xff] }
  0x62   :  { %408 = vmatmul.f32.gmra.mxu0 %v36_v55  ;;  %501 = vmatmul.f32.gmra.mxu2 %v98_v56  ;;  %v1583_v55 = vld [vmem:[%s2164_s2] ss:$0 sm:$0xff] }
  0x63   :  { %1096 = vmatmul.msk.f32.gmra.mxu3 %vm171_vm1, %v103_v57 }
  0x68   :  { %1067 = vmatmul.msk.f32.gmra.mxu1 %vm171_vm1, %v45_v58  ;;  %v67_v58 = vld [vmem:[%s2163_s0 + $0x178] sm:$0xff] }
  0x6a   :  { %411 = vmatmul.f32.gmra.mxu0 %v38_v59  ;;  %504 = vmatmul.f32.gmra.mxu2 %v100_v60 }
  0x6b   :  { %1097 = vmatmul.msk.f32.gmra.mxu3 %vm171_vm1, %v105_v61 }
  0x70   :  { %1068 = vmatmul.msk.f32.gmra.mxu1 %vm171_vm1, %v47_v62  ;;  %v60_v62 = vld [vmem:[%s2163_s0 + $0x140] sm:$0xff] }
  0x72   :  { %414 = vmatmul.f32.gmra.mxu0 %v40_v63  ;;  %507 = vmatmul.f32.gmra.mxu2 %v102_v0  ;;  %v122_v63 = vld [vmem:[%s2163_s0 + $0x330] sm:$0xff] }
  0x73   :  { %1098 = vmatmul.msk.f32.gmra.mxu3 %vm171_vm1, %v107_v1  ;;  %v127_v1 = vld [vmem:[%s2163_s0 + $0x358] sm:$0xff] }
  0x78   :  { %1069 = vmatmul.msk.f32.gmra.mxu1 %vm171_vm1, %v49_v2 }
  0x7a   :  { %417 = vmatmul.f32.gmra.mxu0 %v42_v3  ;;  %510 = vmatmul.f32.gmra.mxu2 %v104_v4  ;;  %v69_v4 = vld [vmem:[%s2163_s0 + $0x188] sm:$0xff] }
  0x7b   :  { %1099 = vmatmul.msk.f32.gmra.mxu3 %vm171_vm1, %v109_v5 }
  0x80   :  { %1070 = vmatmul.msk.f32.gmra.mxu1 %vm171_vm1, %v51_v6 }
  0x82   :  { %420 = vmatmul.f32.gmra.mxu0 %v44_v7  ;;  %513 = vmatmul.f32.gmra.mxu2 %v106_v8  ;;  %v62_v8 = vld [vmem:[%s2163_s0 + $0x150] sm:$0xff] }
  0x83   :  { %1100 = vmatmul.msk.f32.gmra.mxu3 %vm171_vm1, %v111_v9  ;;  %v124_v9 = vld [vmem:[%s2163_s0 + $0x340] sm:$0xff] }
  0x85   :  { %v1452_v10 = vpop.f32.mrf.mxu1 }
  0x88   :  { %1071 = vmatmul.msk.f32.gmra.mxu1 %vm171_vm1, %v53_v11 }
  0x8a   :  { %423 = vmatmul.f32.gmra.mxu0 %v46_v12  ;;  %516 = vmatmul.f32.gmra.mxu2 %v108_v13  ;;  %v129_v12 = vld [vmem:[%s2163_s0 + $0x368] sm:$0xff] }
  0x8b   :  { %1101 = vmatmul.msk.f32.gmra.mxu3 %vm171_vm1, %v113_v14 }
  0x8d   :  { %v1468_v15 = vpop.f32.mrf.mxu1 }
  0x90   :  { %1072 = vmatmul.msk.f32.gmra.mxu1 %vm171_vm1, %v55_v16  ;;  %v71_v16 = vld [vmem:[%s2163_s0 + $0x198] sm:$0xff] }
  0x92   :  { %426 = vmatmul.f32.gmra.mxu0 %v48_v17  ;;  %519 = vmatmul.f32.gmra.mxu2 %v110_v18 }
  0x93   :  { %1102 = vmatmul.msk.f32.gmra.mxu3 %vm171_vm1, %v115_v19 }
  0x95   :  { %v1484_v20 = vpop.f32.mrf.mxu1 }
  0x98   :  { %1073 = vmatmul.msk.f32.gmra.mxu1 %vm171_vm1, %v57_v21  ;;  %v64_v21 = vld [vmem:[%s2163_s0 + $0x160] sm:$0xff] }
  0x9a   :  { %429 = vmatmul.f32.gmra.mxu0 %v50_v22  ;;  %522 = vmatmul.f32.gmra.mxu2 %v112_v23  ;;  %v126_v22 = vld [vmem:[%s2163_s0 + $0x350] sm:$0xff] }
  0x9b   :  { %1103 = vmatmul.msk.f32.gmra.mxu3 %vm171_vm1, %v117_v24  ;;  %v131_v24 = vld [vmem:[%s2163_s0 + $0x378] sm:$0xff] }
  0x9d   :  { %v1500_v25 = vpop.f32.mrf.mxu1 }
  0x9f   :  { %v1505_v27 = vpop.f32.mrf.mxu0 }
  0xa0   :  { %1074 = vmatmul.msk.f32.gmra.mxu1 %vm171_vm1, %v59_v26 }
  0xa2   :  { %432 = vmatmul.f32.gmra.mxu0 %v52_v28  ;;  %525 = vmatmul.f32.gmra.mxu2 %v114_v29  ;;  %v73_v29 = vld [vmem:[%s2163_s0 + $0x1a8] sm:$0xff] }
  0xa3   :  { %1104 = vmatmul.msk.f32.gmra.mxu3 %vm171_vm1, %v119_v30 }
  0xa5   :  { %v1518_v31 = vpop.f32.mrf.mxu2  ;;  %v1520_v32 = vpop.f32.mrf.mxu1 }
  0xa6   :  { %v1525_v34 = vpop.f32.mrf.mxu3 }
  0xa7   :  { %v1527_v35 = vpop.f32.mrf.mxu0 }
  0xa8   :  { %1075 = vmatmul.msk.f32.gmra.mxu1 %vm171_vm1, %v61_v33 }
  0xaa   :  { %435 = vmatmul.f32.gmra.mxu0 %v54_v36  ;;  %528 = vmatmul.f32.gmra.mxu2 %v116_v37  ;;  %v66_v37 = vld [vmem:[%s2163_s0 + $0x170] sm:$0xff] }
  0xab   :  { %1105 = vmatmul.msk.f32.gmra.mxu3 %vm171_vm1, %v121_v38  ;;  %v128_v38 = vld [vmem:[%s2163_s0 + $0x360] sm:$0xff] }
  0xad   :  { %v1540_v39 = vpop.f32.mrf.mxu2  ;;  %v1542_v40 = vpop.f32.mrf.mxu1 }
  0xae   :  { %v696_v42 = vpop.f32.mrf.mxu3 }
  0xaf   :  { %v1547_v43 = vpop.f32.mrf.mxu0 }
  0xb0   :  { %1076 = vmatmul.msk.f32.gmra.mxu1 %vm171_vm1, %v63_v41 }
  0xb2   :  { %438 = vmatmul.f32.gmra.mxu0 %v56_v44  ;;  %531 = vmatmul.f32.gmra.mxu2 %v118_v45  ;;  %v133_v44 = vld [vmem:[%s2163_s0 + $0x388] sm:$0xff] }
  0xb3   :  { %1106 = vmatmul.msk.f32.gmra.mxu3 %vm171_vm1, %v123_v46 }
  0xb5   :  { %v1560_v47 = vpop.f32.mrf.mxu2  ;;  %v1562_v48 = vpop.f32.mrf.mxu1 }
  0xb6   :  { %v699_v50 = vpop.f32.mrf.mxu3 }
  0xb7   :  { %v1567_v51 = vpop.f32.mrf.mxu0 }
  0xb8   :  { %1077 = vmatmul.msk.f32.gmra.mxu1 %vm171_vm1, %v65_v49 }
  0xba   :  { %441 = vmatmul.f32.gmra.mxu0 %v58_v52  ;;  %534 = vmatmul.f32.gmra.mxu2 %v120_v53 }
  0xbb   :  { %1107 = vmatmul.msk.f32.gmra.mxu3 %vm171_vm1, %v125_v54 }
  0xbd   :  { %v487_v56 = vpop.f32.mrf.mxu2  ;;  %v615_v57 = vpop.f32.mrf.mxu1 }
  0xbe   :  { %v488_v59 = vadd.f32 %v1583_v55, %v487_v56  ;;  %v702_v60 = vpop.f32.mrf.mxu3  ;;  %v68_v56 = vld [vmem:[%s2163_s0 + $0x180] sm:$0xff] }
  0xbf   :  { %v1589_v61 = vpop.f32.mrf.mxu0 }
  0xc0   :  { %v1597_v0 = vadd.f32 %v696_v42, %v488_v59  ;;  %1078 = vmatmul.msk.f32.gmra.mxu1 %vm171_vm1, %v67_v58 }
  0xc2   :  { %444 = vmatmul.f32.gmra.mxu0 %v60_v62  ;;  %537 = vmatmul.f32.gmra.mxu2 %v122_v63 }
  0xc3   :  { %1108 = vmatmul.msk.f32.gmra.mxu3 %vm171_vm1, %v127_v1 }
  0xc5   :  { %v490_v2 = vpop.f32.mrf.mxu2  ;;  %v618_v3 = vpop.f32.mrf.mxu1 }
  0xc6   :  { %v491_v5 = vadd.f32 %v1583_v55, %v490_v2  ;;  %v705_v6 = vpop.f32.mrf.mxu3  ;;  %v77_v2 = vld [vmem:[%s2163_s0 + $0x1c8] sm:$0xff] }
  0xc7   :  { %v1608_v7 = vpop.f32.mrf.mxu0 }
  0xc8   :  { %v1616_v11 = vadd.f32 %v699_v50, %v491_v5  ;;  %1079 = vmatmul.msk.f32.gmra.mxu1 %vm171_vm1, %v69_v4  ;;  %v75_v50 = vld [vmem:[%s2163_s0 + $0x1b8] sm:$0xff] }
  0xca   :  { %447 = vmatmul.f32.gmra.mxu0 %v62_v8  ;;  %540 = vmatmul.f32.gmra.mxu2 %v124_v9  ;;  %v70_v8 = vld [vmem:[%s2163_s0 + $0x190] sm:$0xff] }
  0xcb   :  { %1109 = vmatmul.msk.f32.gmra.mxu3 %vm171_vm1, %v129_v12 }
  0xcd   :  { %v493_v13 = vpop.f32.mrf.mxu2  ;;  %v621_v14 = vpop.f32.mrf.mxu1 }
  0xce   :  { %v494_v17 = vadd.f32 %v1583_v55, %v493_v13  ;;  %v708_v18 = vpop.f32.mrf.mxu3  ;;  %v137_v13 = vld [vmem:[%s2163_s0 + $0x3a8] sm:$0xff] }
  0xcf   :  { %v1627_v19 = vpop.f32.mrf.mxu0 }
  0xd0   :  { %v1635_v23 = vadd.f32 %v702_v60, %v494_v17  ;;  %1080 = vmatmul.msk.f32.gmra.mxu1 %vm171_vm1, %v71_v16  ;;  %v135_v60 = vld [vmem:[%s2163_s0 + $0x398] sm:$0xff] }
  0xd2   :  { %450 = vmatmul.f32.gmra.mxu0 %v64_v21  ;;  %543 = vmatmul.f32.gmra.mxu2 %v126_v22  ;;  %v79_v21 = vld [vmem:[%s2163_s0 + $0x1d8] sm:$0xff] }
  0xd3   :  { %1110 = vmatmul.msk.f32.gmra.mxu3 %vm171_vm1, %v131_v24 }
  0xd5   :  { %v496_v26 = vpop.f32.mrf.mxu2  ;;  %v624_v28 = vpop.f32.mrf.mxu1 }
  0xd6   :  { %v497_v30 = vadd.f32 %v1583_v55, %v496_v26  ;;  %v711_v33 = vpop.f32.mrf.mxu3 }
  0xd7   :  { %v406_v36 = vpop.f32.mrf.mxu0 }
  0xd8   :  { %v1652_v41 = vadd.f32 %v705_v6, %v497_v30  ;;  %v407_v42 = vadd.f32 %v1583_v55, %v406_v36  ;;  %1081 = vmatmul.msk.f32.gmra.mxu1 %vm171_vm1, %v73_v29  ;;  %v72_v29 = vld [vmem:[%s2163_s0 + $0x1a0] sm:$0xff]  ;;  %v139_v36 = vld [vmem:[%s2163_s0 + $0x3b8] sm:$0xff] }
  0xda   :  { %v1659_v45 = vadd.f32 %v615_v57, %v407_v42  ;;  %453 = vmatmul.f32.gmra.mxu0 %v66_v37  ;;  %546 = vmatmul.f32.gmra.mxu2 %v128_v38  ;;  %v130_v57 = vld [vmem:[%s2163_s0 + $0x370] sm:$0xff] }
  0xdb   :  { %1111 = vmatmul.msk.f32.gmra.mxu3 %vm171_vm1, %v133_v44  ;;  %v81_v44 = vld [vmem:[%s2163_s0 + $0x1e8] sm:$0xff] }
  0xdd   :  { %v499_v46 = vpop.f32.mrf.mxu2  ;;  %v627_v49 = vpop.f32.mrf.mxu1 }
  0xde   :  { %v500_v52 = vadd.f32 %v1583_v55, %v499_v46  ;;  %v714_v53 = vpop.f32.mrf.mxu3 }
  0xdf   :  { %v409_v54 = vpop.f32.mrf.mxu0 }
  0xe0   :  { %v1672_v58 = vadd.f32 %v708_v18, %v500_v52  ;;  %v410_v59 = vadd.f32 %v1583_v55, %v409_v54  ;;  %1082 = vmatmul.msk.f32.gmra.mxu1 %vm171_vm1, %v75_v50 }
  0xe2   :  { %v1679_v62 = vadd.f32 %v618_v3, %v410_v59  ;;  %456 = vmatmul.f32.gmra.mxu0 %v68_v56  ;;  %549 = vmatmul.f32.gmra.mxu2 %v130_v57  ;;  %v132_v3 = vld [vmem:[%s2163_s0 + $0x380] sm:$0xff]  ;;  %v141_v57 = vld [vmem:[%s2163_s0 + $0x3c8] sm:$0xff] }
  0xe3   :  { %1112 = vmatmul.msk.f32.gmra.mxu3 %vm171_vm1, %v135_v60 }
  0xe5   :  { %v502_v63 = vpop.f32.mrf.mxu2  ;;  %v630_v1 = vpop.f32.mrf.mxu1 }
  0xe6   :  { %v503_v4 = vadd.f32 %v1583_v55, %v502_v63  ;;  %v717_v5 = vpop.f32.mrf.mxu3 }
  0xe7   :  { %v412_v6 = vpop.f32.mrf.mxu0 }
  0xe8   :  { %v1692_v9 = vadd.f32 %v711_v33, %v503_v4  ;;  %v413_v12 = vadd.f32 %v1583_v55, %v412_v6  ;;  %1083 = vmatmul.msk.f32.gmra.mxu1 %vm171_vm1, %v77_v2  ;;  %v83_v2 = vld [vmem:[%s2163_s0 + $0x1f8] sm:$0xff] }
  0xea   :  { %v1699_v16 = vadd.f32 %v621_v14, %v413_v12  ;;  %459 = vmatmul.f32.gmra.mxu0 %v70_v8  ;;  %552 = vmatmul.f32.gmra.mxu2 %v132_v3  ;;  %v134_v14 = vld [vmem:[%s2163_s0 + $0x390] sm:$0xff]  ;;  %v76_v8 = vld [vmem:[%s2163_s0 + $0x1c0] sm:$0xff] }
  0xeb   :  { %1113 = vmatmul.msk.f32.gmra.mxu3 %vm171_vm1, %v137_v13  ;;  %v143_v13 = vld [vmem:[%s2163_s0 + $0x3d8] sm:$0xff] }
  0xed   :  { %v505_v17 = vpop.f32.mrf.mxu2  ;;  %v633_v18 = vpop.f32.mrf.mxu1 }
  0xee   :  { %v506_v22 = vadd.f32 %v1583_v55, %v505_v17  ;;  %v720_v24 = vpop.f32.mrf.mxu3 }
  0xef   :  { %v415_v26 = vpop.f32.mrf.mxu0 }
  0xf0   :  { %v1712_v30 = vadd.f32 %v714_v53, %v506_v22  ;;  %v416_v33 = vadd.f32 %v1583_v55, %v415_v26  ;;  %1084 = vmatmul.msk.f32.gmra.mxu1 %vm171_vm1, %v79_v21  ;;  %v74_v53 = vld [vmem:[%s2163_s0 + $0x1b0] sm:$0xff] }
  0xf2   :  { %v1719_v37 = vadd.f32 %v624_v28, %v416_v33  ;;  %462 = vmatmul.f32.gmra.mxu0 %v72_v29  ;;  %555 = vmatmul.f32.gmra.mxu2 %v134_v14  ;;  %v136_v28 = vld [vmem:[%s2163_s0 + $0x3a0] sm:$0xff]  ;;  %v78_v33 = vld [vmem:[%s2163_s0 + $0x1d0] sm:$0xff] }
  0xf3   :  { %1114 = vmatmul.msk.f32.gmra.mxu3 %vm171_vm1, %v139_v36 }
  0xf5   :  { %v508_v38 = vpop.f32.mrf.mxu2  ;;  %v636_v42 = vpop.f32.mrf.mxu1 }
  0xf6   :  { %v509_v46 = vadd.f32 %v1583_v55, %v508_v38  ;;  %v723_v50 = vpop.f32.mrf.mxu3 }
  0xf7   :  { %v418_v52 = vpop.f32.mrf.mxu0 }
  0xf8   :  { %v1732_v54 = vadd.f32 %v717_v5, %v509_v46  ;;  %v419_v56 = vadd.f32 %v1583_v55, %v418_v52  ;;  %1085 = vmatmul.msk.f32.gmra.mxu1 %vm171_vm1, %v81_v44  ;;  %v145_v44 = vld [vmem:[%s2163_s0 + $0x3e8] sm:$0xff] }
  0xfa   :  { %v1739_v59 = vadd.f32 %v627_v49, %v419_v56  ;;  %465 = vmatmul.f32.gmra.mxu0 %v74_v53  ;;  %558 = vmatmul.f32.gmra.mxu2 %v136_v28  ;;  %v138_v49 = vld [vmem:[%s2163_s0 + $0x3b0] sm:$0xff] }
  0xfb   :  { %1115 = vmatmul.msk.f32.gmra.mxu3 %vm171_vm1, %v141_v57 }
  0xfd   :  { %v511_v60 = vpop.f32.mrf.mxu2  ;;  %v639_v63 = vpop.f32.mrf.mxu1 }
  0xfe   :  { %v512_v4 = vadd.f32 %v1583_v55, %v511_v60  ;;  %v726_v5 = vpop.f32.mrf.mxu3  ;;  %v80_v60 = vld [vmem:[%s2163_s0 + $0x1e0] sm:$0xff] }
  0xff   :  { %v421_v6 = vpop.f32.mrf.mxu0 }
 0x100   :  { %v1752_v3 = vadd.f32 %v720_v24, %v512_v4  ;;  %v422_v12 = vadd.f32 %v1583_v55, %v421_v6  ;;  %1086 = vmatmul.msk.f32.gmra.mxu1 %vm171_vm1, %v83_v2  ;;  %v85_v24 = vld [vmem:[%s2163_s0 + $0x208] sm:$0xff]  ;;  %v147_v6 = vld [vmem:[%s2163_s0 + $0x3f8] sm:$0xff] }
 0x102   :  { %v1759_v17 = vadd.f32 %v630_v1, %v422_v12  ;;  %468 = vmatmul.f32.gmra.mxu0 %v76_v8  ;;  %561 = vmatmul.f32.gmra.mxu2 %v138_v49  ;;  %v140_v1 = vld [vmem:[%s2163_s0 + $0x3c0] sm:$0xff] }
 0x103   :  { %1116 = vmatmul.msk.f32.gmra.mxu3 %vm171_vm1, %v143_v13 }
 0x105   :  { %v514_v21 = vpop.f32.mrf.mxu2  ;;  %v642_v22 = vpop.f32.mrf.mxu1 }
 0x106   :  { %v515_v26 = vadd.f32 %v1583_v55, %v514_v21  ;;  %v729_v29 = vpop.f32.mrf.mxu3  ;;  %v386_v21 = vadd.f32 %v1583_v55, %v1505_v27 }
 0x107   :  { %v424_v14 = vpop.f32.mrf.mxu0 }
 0x108   :  { %v1772_v36 = vadd.f32 %v723_v50, %v515_v26  ;;  %v425_v38 = vadd.f32 %v1583_v55, %v424_v14  ;;  %1087 = vmatmul.msk.f32.gmra.mxu1 %vm171_vm1, %v85_v24  ;;  %v87_v50 = vld [vmem:[%s2163_s0 + $0x218] sm:$0xff]  ;;  %v144_v26 = vld [vmem:[%s2163_s0 + $0x3e0] sm:$0xff] }
 0x10a   :  { %v1779_v46 = vadd.f32 %v633_v18, %v425_v38  ;;  %471 = vmatmul.f32.gmra.mxu0 %v78_v33  ;;  %564 = vmatmul.f32.gmra.mxu2 %v140_v1  ;;  %v142_v18 = vld [vmem:[%s2163_s0 + $0x3d0] sm:$0xff]  ;;  %v595_v1 = vadd.f32 %v1452_v10, %v386_v21 }
 0x10b   :  { %1117 = vmatmul.msk.f32.gmra.mxu3 %vm171_vm1, %v145_v44 }
 0x10c   :  { %v786_v27 = vmax.f32 %v595_v1, 0.0 }
 0x10d   :  { %v517_v52 = vpop.f32.mrf.mxu2  ;;  %v645_v53 = vpop.f32.mrf.mxu1 }
 0x10e   :  { %v518_v28 = vadd.f32 %v1583_v55, %v517_v52  ;;  %v732_v56 = vpop.f32.mrf.mxu3 }
 0x10f   :  { %v427_v57 = vpop.f32.mrf.mxu0 }
 0x110   :  { %v1792_v2 = vadd.f32 %v726_v5, %v518_v28  ;;  %v428_v4 = vadd.f32 %v1583_v55, %v427_v57  ;;  %1088 = vmatmul.msk.f32.gmra.mxu1 %vm171_vm1, %v87_v50  ;;  %v1818_v28 = vld [vmem:[%s2165_s3] ss:$0 sm:$0xff]  ;;  %v389_v57 = vadd.f32 %v1583_v55, %v1527_v35 }
 0x112   :  { %v1799_v8 = vadd.f32 %v636_v42, %v428_v4  ;;  %474 = vmatmul.f32.gmra.mxu0 %v80_v60  ;;  %567 = vmatmul.f32.gmra.mxu2 %v142_v18  ;;  %v854_v18 = vmul.f32 %v1818_v28, %v786_v27  ;;  %v1829_v4 = vld [vmem:[%s2166_s4] ss:$0 sm:$0xff] }
 0x113   :  { %1118 = vmatmul.msk.f32.gmra.mxu3 %vm171_vm1, %v147_v6  ;;  %v598_v6 = vadd.f32 %v1468_v15, %v389_v57 }
 0x114   :  { %2170 = vst [vmem:[#allocation2_spill] sm:$0xff] %v1799_v8 }
 0x115   :  { %v520_v49 = vpop.f32.mrf.mxu2  ;;  %v648_v12 = vpop.f32.mrf.mxu1 }
 0x116   :  { %v521_v13 = vadd.f32 %v1583_v55, %v520_v49  ;;  %v735_v5 = vpop.f32.mrf.mxu3 }
 0x117   :  { %v430_v24 = vpop.f32.mrf.mxu0 }
 0x118   :  { %v1808_v14 = vadd.f32 %v729_v29, %v521_v13  ;;  %v431_v42 = vadd.f32 %v1583_v55, %v430_v24 }
 0x11a   :  { %2171 = vst [vmem:[#allocation3_spill] sm:$0xff] %v1808_v14  ;;  %v1811_v33 = vadd.f32 %v639_v63, %v431_v42  ;;  %570 = vmatmul.f32.gmra.mxu2 %v144_v26  ;;  %v787_v42 = vmax.f32 %v598_v6, 0.0 }
 0x11d   :  { %v523_v38 = vpop.f32.mrf.mxu2  ;;  %v651_v44 = vpop.f32.mrf.mxu1 }
 0x11e   :  { %v524_v52 = vadd.f32 %v1583_v55, %v523_v38  ;;  %v738_v50 = vpop.f32.mrf.mxu3 }
 0x11f   :  { %v433_v29 = vpop.f32.mrf.mxu0 }
 0x120   :  { %v1822_v63 = vadd.f32 %v732_v56, %v524_v52  ;;  %v434_v60 = vadd.f32 %v1583_v55, %v433_v29  ;;  %v855_v29 = vmul.f32 %v1818_v28, %v787_v42  ;;  %v392_v42 = vadd.f32 %v1583_v55, %v1547_v43 }
 0x122   :  { %2172 = vst [vmem:[#allocation4_spill] sm:$0xff] %v1822_v63  ;;  %v643_v10 = vadd.f32 %v642_v22, %v434_v60  ;;  %v1837_v22 = vadd.f32 %v1829_v4, %v854_v18 }
 0x124   :  { %v802_v49 = vmax.f32 %v643_v10, 0.0 }
 0x125   :  { %v526_v13 = vpop.f32.mrf.mxu2  ;;  %v1832_v21 = vpop.f32.mrf.mxu1 }
 0x126   :  { %v870_v35 = vmul.f32 %v1818_v28, %v802_v49  ;;  %v527_v56 = vadd.f32 %v1583_v55, %v526_v13  ;;  %v741_v24 = vpop.f32.mrf.mxu3 }
 0x127   :  { %v436_v26 = vpop.f32.mrf.mxu0 }
 0x128   :  { %v1840_v1 = vadd.f32 %v1829_v4, %v870_v35  ;;  %v1842_v38 = vadd.f32 %v735_v5, %v527_v56  ;;  %v437_v15 = vadd.f32 %v1583_v55, %v436_v26  ;;  %v1853_v5 = vadd.f32 %v1829_v4, %v855_v29 }
 0x12a   :  { %2173 = vst [vmem:[#allocation5_spill] sm:$0xff] %v1842_v38  ;;  %v646_v27 = vadd.f32 %v645_v53, %v437_v15 }
 0x12b   :  { %2174 = vst [vmem:[#allocation6_spill] sm:$0xff] %v1853_v5 }
 0x12c   :  { %v803_v57 = vmax.f32 %v646_v27, 0.0 }
 0x12d   :  { %v529_v60 = vpop.f32.mrf.mxu2  ;;  %v1848_v10 = vpop.f32.mrf.mxu1 }
 0x12e   :  { %v871_v18 = vmul.f32 %v1818_v28, %v803_v57  ;;  %v530_v6 = vadd.f32 %v1583_v55, %v529_v60  ;;  %v744_v49 = vpop.f32.mrf.mxu3 }
 0x12f   :  { %v439_v13 = vpop.f32.mrf.mxu0 }
 0x130   :  { %v1856_v35 = vadd.f32 %v1829_v4, %v871_v18  ;;  %v1858_v56 = vadd.f32 %v738_v50, %v530_v6  ;;  %v440_v26 = vadd.f32 %v1583_v55, %v439_v13  ;;  %v601_v50 = vadd.f32 %v1484_v20, %v392_v42 }
 0x131   :  { %v395_v13 = vadd.f32 %v1583_v55, %v1567_v51 }
 0x132   :  { %2175 = vst [vmem:[#allocation7_spill] sm:$0xff] %v1856_v35  ;;  %v649_v52 = vadd.f32 %v648_v12, %v440_v26  ;;  %v788_v63 = vmax.f32 %v601_v50, 0.0  ;;  %v820_v35 = vmax.f32 %v1597_v0, 0.0 }
 0x134   :  { %v804_v53 = vmax.f32 %v649_v52, 0.0  ;;  %v856_v42 = vmul.f32 %v1818_v28, %v788_v63  ;;  %v604_v52 = vadd.f32 %v1500_v25, %v395_v13 }
 0x135   :  { %v532_v15 = vpop.f32.mrf.mxu2  ;;  %v1865_v27 = vpop.f32.mrf.mxu1 }
 0x136   :  { %v533_v57 = vadd.f32 %v1583_v55, %v532_v15  ;;  %v747_v29 = vpop.f32.mrf.mxu3  ;;  %v872_v26 = vmul.f32 %v1818_v28, %v804_v53 }
 0x137   :  { %v442_v60 = vpop.f32.mrf.mxu0 }
 0x138   :  { %v1868_v18 = vadd.f32 %v741_v24, %v533_v57  ;;  %v443_v6 = vadd.f32 %v1583_v55, %v442_v60  ;;  %v888_v57 = vmul.f32 %v1818_v28, %v820_v35  ;;  %v940_v50 = vadd.f32 %v1829_v4, %v872_v26 }
 0x139   :  { %v821_v35 = vmax.f32 %v1616_v11, 0.0 }
 0x13a   :  { %v652_v12 = vadd.f32 %v651_v44, %v443_v6  ;;  %v924_v44 = vadd.f32 %v1829_v4, %v856_v42  ;;  %v789_v6 = vmax.f32 %v604_v52, 0.0  ;;  %v956_v25 = vadd.f32 %v1829_v4, %v888_v57 }
 0x13b   :  { %v889_v57 = vmul.f32 %v1818_v28, %v821_v35 }
 0x13c   :  { %v805_v60 = vmax.f32 %v652_v12, 0.0 }
 0x13d   :  { %v535_v43 = vpop.f32.mrf.mxu2  ;;  %v1874_v8 = vpop.f32.mrf.mxu1 }
 0x13e   :  { %v536_v15 = vadd.f32 %v1583_v55, %v535_v43  ;;  %v750_v5 = vpop.f32.mrf.mxu3 }
 0x13f   :  { %v445_v24 = vpop.f32.mrf.mxu0 }
 0x140   :  { %v745_v20 = vadd.f32 %v744_v49, %v536_v15  ;;  %v446_v43 = vadd.f32 %v1583_v55, %v445_v24  ;;  %v398_v49 = vadd.f32 %v1583_v55, %v1589_v61  ;;  %v873_v24 = vmul.f32 %v1818_v28, %v805_v60 }
 0x142   :  { %v836_v51 = vmax.f32 %v745_v20, 0.0  ;;  %v988_v20 = vmax.f32 %v924_v44, %v940_v50  ;;  %v655_v52 = vadd.f32 %v1832_v21, %v446_v43  ;;  %v607_v14 = vadd.f32 %v1520_v32, %v398_v49 }
 0x143   :  { %v401_v32 = vadd.f32 %v1583_v55, %v1608_v7  ;;  %v957_v49 = vadd.f32 %v1829_v4, %v889_v57 }
 0x144   :  { %v904_v0 = vmul.f32 %v1818_v28, %v836_v51  ;;  %v857_v51 = vmul.f32 %v1818_v28, %v789_v6  ;;  %v806_v60 = vmax.f32 %v655_v52, 0.0  ;;  %v790_v43 = vmax.f32 %v607_v14, 0.0 }
 0x145   :  { %v538_v53 = vpop.f32.mrf.mxu2  ;;  %v1888_v63 = vpop.f32.mrf.mxu1 }
 0x146   :  { %v972_v13 = vadd.f32 %v1829_v4, %v904_v0  ;;  %v539_v15 = vadd.f32 %v1583_v55, %v538_v53  ;;  %v753_v12 = vpop.f32.mrf.mxu3  ;;  %v941_v0 = vadd.f32 %v1829_v4, %v873_v24  ;;  %v822_v53 = vmax.f32 %v1635_v23, 0.0 }
 0x147   :  { %v448_v26 = vpop.f32.mrf.mxu0  ;;  %v874_v24 = vmul.f32 %v1818_v28, %v806_v60 }
 0x148   :  { %v1004_v42 = vmax.f32 %v956_v25, %v972_v13  ;;  %v748_v61 = vadd.f32 %v747_v29, %v539_v15  ;;  %v449_v21 = vadd.f32 %v1583_v55, %v448_v26  ;;  %v925_v29 = vadd.f32 %v1829_v4, %v857_v51 }
 0x149   :  { %v890_v52 = vmul.f32 %v1818_v28, %v822_v53  ;;  %v942_v57 = vadd.f32 %v1829_v4, %v874_v24 }
 0x14a   :  { %v1020_v11 = vmax.f32 %v988_v20, %v1004_v42  ;;  %v837_v38 = vmax.f32 %v748_v61, 0.0  ;;  %v989_v13 = vmax.f32 %v925_v29, %v941_v0  ;;  %v658_v26 = vadd.f32 %v1848_v10, %v449_v21 }
 0x14b   :  { %v858_v20 = vmul.f32 %v1818_v28, %v790_v43  ;;  %v610_v42 = vadd.f32 %v1542_v40, %v401_v32  ;;  %v404_v40 = vadd.f32 %v1583_v55, %v1627_v19  ;;  %v958_v21 = vadd.f32 %v1829_v4, %v890_v52 }
 0x14c   :  { %1036 = vst [vmem:[%s2167_s5 + $0x10] sm:$0xff] %v1020_v11  ;;  %v905_v50 = vmul.f32 %v1818_v28, %v837_v38  ;;  %v807_v11 = vmax.f32 %v658_v26, 0.0  ;;  %v823_v29 = vmax.f32 %v1652_v41, 0.0 }
 0x14d   :  { %v541_v44 = vpop.f32.mrf.mxu2  ;;  %v1908_v6 = vpop.f32.mrf.mxu1  ;;  %v791_v0 = vmax.f32 %v610_v42, 0.0  ;;  %v613_v24 = vadd.f32 %v1562_v48, %v404_v40 }
 0x14e   :  { %v973_v25 = vadd.f32 %v1829_v4, %v905_v50  ;;  %v542_v35 = vadd.f32 %v1583_v55, %v541_v44  ;;  %v756_v38 = vpop.f32.mrf.mxu3 }
 0x14f   :  { %v451_v15 = vpop.f32.mrf.mxu0  ;;  %v792_v52 = vmax.f32 %v613_v24, 0.0 }
 0x150   :  { %v1005_v14 = vmax.f32 %v957_v49, %v973_v25  ;;  %v751_v7 = vadd.f32 %v750_v5, %v542_v35  ;;  %v452_v51 = vadd.f32 %v1583_v55, %v451_v15  ;;  %v926_v5 = vadd.f32 %v1829_v4, %v858_v20 }
 0x151   :  { %v875_v35 = vmul.f32 %v1818_v28, %v807_v11  ;;  %v859_v15 = vmul.f32 %v1818_v28, %v791_v0 }
 0x152   :  { %v1021_v23 = vmax.f32 %v989_v13, %v1005_v14  ;;  %v838_v61 = vmax.f32 %v751_v7, 0.0  ;;  %v661_v49 = vadd.f32 %v1865_v27, %v452_v51  ;;  %v990_v25 = vmax.f32 %v926_v5, %v942_v57 }
 0x153   :  { %v891_v14 = vmul.f32 %v1818_v28, %v823_v29  ;;  %v943_v20 = vadd.f32 %v1829_v4, %v875_v35  ;;  %v824_v51 = vmax.f32 %v1672_v58, 0.0 }
 0x154   :  { %1037 = vst [vmem:[%s2167_s5 + $0x18] sm:$0xff] %v1021_v23  ;;  %v906_v10 = vmul.f32 %v1818_v28, %v838_v61  ;;  %v808_v7 = vmax.f32 %v661_v49, 0.0 }
 0x155   :  { %v544_v60 = vpop.f32.mrf.mxu2  ;;  %v1928_v50 = vpop.f32.mrf.mxu1  ;;  %v959_v61 = vadd.f32 %v1829_v4, %v891_v14  ;;  %v825_v14 = vmax.f32 %v1692_v9, 0.0 }
 0x156   :  { %v974_v43 = vadd.f32 %v1829_v4, %v906_v10  ;;  %v545_v32 = vadd.f32 %v1583_v55, %v544_v60  ;;  %v759_v44 = vpop.f32.mrf.mxu3  ;;  %v876_v5 = vmul.f32 %v1818_v28, %v808_v7 }
 0x157   :  { %v454_v53 = vpop.f32.mrf.mxu0 }
 0x158   :  { %v1006_v13 = vmax.f32 %v958_v21, %v974_v43  ;;  %v754_v19 = vadd.f32 %v753_v12, %v545_v32  ;;  %v455_v42 = vadd.f32 %v1583_v55, %v454_v53  ;;  %v927_v12 = vadd.f32 %v1829_v4, %v859_v15 }
 0x159   :  { %v860_v43 = vmul.f32 %v1818_v28, %v792_v52  ;;  %v892_v32 = vmul.f32 %v1818_v28, %v824_v51  ;;  %v944_v58 = vadd.f32 %v1829_v4, %v876_v5 }
 0x15a   :  { %v1022_v41 = vmax.f32 %v990_v25, %v1006_v13  ;;  %v839_v26 = vmax.f32 %v754_v19, 0.0  ;;  %v991_v40 = vmax.f32 %v927_v12, %v943_v20  ;;  %v664_v21 = vadd.f32 %v1874_v8, %v455_v42 }
 0x15b   :  { %v928_v8 = vadd.f32 %v1829_v4, %v860_v43  ;;  %v960_v24 = vadd.f32 %v1829_v4, %v892_v32 }
 0x15c   :  { %1038 = vst [vmem:[%s2167_s5 + $0x20] sm:$0xff] %v1022_v41  ;;  %v907_v27 = vmul.f32 %v1818_v28, %v839_v26  ;;  %v809_v25 = vmax.f32 %v664_v21, 0.0 }
 0x15d   :  { %v547_v23 = vpop.f32.mrf.mxu2  ;;  %v1946_v48 = vpop.f32.mrf.mxu1  ;;  %v992_v20 = vmax.f32 %v928_v8, %v944_v58 }
 0x15e   :  { %v975_v57 = vadd.f32 %v1829_v4, %v907_v27  ;;  %v548_v11 = vadd.f32 %v1583_v55, %v547_v23  ;;  %v762_v10 = vpop.f32.mrf.mxu3  ;;  %v877_v42 = vmul.f32 %v1818_v28, %v809_v25 }
 0x15f   :  { %v457_v0 = vpop.f32.mrf.mxu0 }
 0x160   :  { %v1007_v60 = vmax.f32 %v959_v61, %v975_v57  ;;  %v757_v29 = vadd.f32 %v756_v38, %v548_v11  ;;  %v458_v13 = vadd.f32 %v1583_v55, %v457_v0  ;;  %v793_v38 = vmax.f32 %v1659_v45, 0.0 }
 0x161   :  { %v893_v61 = vmul.f32 %v1818_v28, %v825_v14  ;;  %v945_v11 = vadd.f32 %v1829_v4, %v877_v42 }
 0x162   :  { %v1023_v49 = vmax.f32 %v991_v40, %v1007_v60  ;;  %v840_v53 = vmax.f32 %v757_v29, 0.0  ;;  %v667_v52 = vadd.f32 %v1888_v63, %v458_v13  ;;  %v861_v23 = vmul.f32 %v1818_v28, %v793_v38 }
 0x163   :  { %v961_v21 = vadd.f32 %v1829_v4, %v893_v61  ;;  %v826_v29 = vmax.f32 %v1712_v30, 0.0 }
 0x164   :  { %1039 = vst [vmem:[%s2167_s5 + $0x28] sm:$0xff] %v1023_v49  ;;  %v908_v35 = vmul.f32 %v1818_v28, %v840_v53  ;;  %v810_v5 = vmax.f32 %v667_v52, 0.0  ;;  %v929_v63 = vadd.f32 %v1829_v4, %v861_v23 }
 0x165   :  { %v550_v19 = vpop.f32.mrf.mxu2  ;;  %v1964_v15 = vpop.f32.mrf.mxu1  ;;  %v894_v38 = vmul.f32 %v1818_v28, %v826_v29  ;;  %v479_v29 = vadd.f32 %v1583_v55, %v1518_v31 }
 0x166   :  { %v976_v41 = vadd.f32 %v1829_v4, %v908_v35  ;;  %v551_v26 = vadd.f32 %v1583_v55, %v550_v19  ;;  %v765_v7 = vpop.f32.mrf.mxu3  ;;  %v993_v25 = vmax.f32 %v929_v63, %v945_v11  ;;  %v878_v35 = vmul.f32 %v1818_v28, %v810_v5 }
 0x167   :  { %v460_v27 = vpop.f32.mrf.mxu0  ;;  %v962_v42 = vadd.f32 %v1829_v4, %v894_v38 }
 0x168   :  { %v1008_v12 = vmax.f32 %v960_v24, %v976_v41  ;;  %v760_v45 = vadd.f32 %v759_v44, %v551_v26  ;;  %v461_v9 = vadd.f32 %v1583_v55, %v460_v27  ;;  %v794_v44 = vmax.f32 %v1679_v62, 0.0 }
 0x169   :  { %v946_v14 = vadd.f32 %v1829_v4, %v878_v35 }
 0x16a   :  { %v1024_v51 = vmax.f32 %v992_v20, %v1008_v12  ;;  %v841_v57 = vmax.f32 %v760_v45, 0.0  ;;  %v670_v53 = vadd.f32 %v1908_v6, %v461_v9  ;;  %v862_v8 = vmul.f32 %v1818_v28, %v794_v44 }
 0x16b   :  { %v827_v12 = vmax.f32 %v1732_v54, 0.0  ;;  %v801_v44 = vmax.f32 %v1811_v33, 0.0  ;;  %v828_v33 = vmax.f32 %v1752_v3, 0.0 }
 0x16c   :  { %1040 = vst [vmem:[%s2167_s5 + $0x30] sm:$0xff] %v1024_v51  ;;  %v909_v0 = vmul.f32 %v1818_v28, %v841_v57  ;;  %v811_v30 = vmax.f32 %v670_v53, 0.0  ;;  %v930_v26 = vadd.f32 %v1829_v4, %v862_v8 }
 0x16d   :  { %v553_v40 = vpop.f32.mrf.mxu2  ;;  %v1982_v60 = vpop.f32.mrf.mxu1  ;;  %v869_v8 = vmul.f32 %v1818_v28, %v801_v44 }
 0x16e   :  { %v977_v43 = vadd.f32 %v1829_v4, %v909_v0  ;;  %v554_v32 = vadd.f32 %v1583_v55, %v553_v40  ;;  %v768_v49 = vpop.f32.mrf.mxu3  ;;  %v879_v61 = vmul.f32 %v1818_v28, %v811_v30  ;;  %v994_v57 = vmax.f32 %v930_v26, %v946_v14 }
 0x16f   :  { %v463_v58 = vpop.f32.mrf.mxu0  ;;  %v895_v0 = vmul.f32 %v1818_v28, %v827_v12  ;;  %v834_v12 = vmax.f32 %v1858_v56, 0.0  ;;  %v797_v56 = vmax.f32 %v1739_v59, 0.0 }
 0x170   :  { %v1009_v13 = vmax.f32 %v961_v21, %v977_v43  ;;  %v763_v62 = vadd.f32 %v762_v10, %v554_v32  ;;  %v464_v41 = vadd.f32 %v1583_v55, %v463_v58  ;;  %v795_v10 = vmax.f32 %v1699_v16, 0.0 }
 0x171   :  { %v947_v40 = vadd.f32 %v1829_v4, %v879_v61  ;;  %v796_v32 = vmax.f32 %v1719_v37, 0.0 }
 0x172   :  { %v1025_v19 = vmax.f32 %v993_v25, %v1009_v13  ;;  %v842_v24 = vmax.f32 %v763_v62, 0.0  ;;  %v673_v16 = vadd.f32 %v1928_v50, %v464_v41  ;;  %v863_v5 = vmul.f32 %v1818_v28, %v795_v10 }
 0x173   :  { %v963_v25 = vadd.f32 %v1829_v4, %v895_v0  ;;  %v896_v41 = vmul.f32 %v1818_v28, %v828_v33 }
 0x174   :  { %1041 = vst [vmem:[%s2167_s5 + $0x38] sm:$0xff] %v1025_v19  ;;  %v910_v6 = vmul.f32 %v1818_v28, %v842_v24  ;;  %v812_v50 = vmax.f32 %v673_v16, 0.0  ;;  %v931_v43 = vadd.f32 %v1829_v4, %v863_v5 }
 0x175   :  { %v556_v20 = vpop.f32.mrf.mxu2  ;;  %v2000_v27 = vpop.f32.mrf.mxu1 }
 0x176   :  { %v978_v52 = vadd.f32 %v1829_v4, %v910_v6  ;;  %v557_v45 = vadd.f32 %v1583_v55, %v556_v20  ;;  %v2006_v23 = vpop.f32.mrf.mxu3  ;;  %v995_v38 = vmax.f32 %v931_v43, %v947_v40  ;;  %v880_v37 = vmul.f32 %v1818_v28, %v812_v50 }
 0x177   :  { %v466_v51 = vpop.f32.mrf.mxu0  ;;  %v864_v6 = vmul.f32 %v1818_v28, %v796_v32  ;;  %v902_v40 = vmul.f32 %v1818_v28, %v834_v12  ;;  %v865_v32 = vmul.f32 %v1818_v28, %v797_v56 }
 0x178   :  { %v1010_v9 = vmax.f32 %v962_v42, %v978_v52  ;;  %v766_v11 = vadd.f32 %v765_v7, %v557_v45  ;;  %v467_v21 = vadd.f32 %v1583_v55, %v466_v51  ;;  %v482_v42 = vadd.f32 %v1583_v55, %v1540_v39 }
 0x179   :  { %v2040_v45 = vadd.f32 %v1829_v4, %v869_v8  ;;  %v932_v39 = vadd.f32 %v1829_v4, %v864_v6 }
 0x17a   :  { %v1026_v63 = vmax.f32 %v994_v57, %v1010_v9  ;;  %v843_v54 = vmax.f32 %v766_v11, 0.0  ;;  %v676_v19 = vadd.f32 %v1946_v48, %v467_v21  ;;  %v964_v57 = vadd.f32 %v1829_v4, %v896_v41 }
 0x17b   :  { %v829_v9 = vmax.f32 %v1772_v36, 0.0 }
 0x17c   :  { %1042 = vst [vmem:[%s2167_s5 + $0x40] sm:$0xff] %v1026_v63  ;;  %v911_v7 = vmul.f32 %v1818_v28, %v843_v54  ;;  %v813_v48 = vmax.f32 %v676_v19, 0.0  ;;  %v485_v19 = vadd.f32 %v1583_v55, %v1560_v47 }
 0x17d   :  { %v559_v53 = vpop.f32.mrf.mxu2  ;;  %v687_v58 = vpop.f32.mrf.mxu1  ;;  %v897_v33 = vmul.f32 %v1818_v28, %v829_v9 }
 0x17e   :  { %v979_v35 = vadd.f32 %v1829_v4, %v911_v7  ;;  %v560_v31 = vadd.f32 %v1583_v55, %v559_v53  ;;  %v688_v13 = vadd.f32 %v687_v58, %v479_v29  ;;  %v2027_v62 = vpop.f32.mrf.mxu3  ;;  %v881_v59 = vmul.f32 %v1818_v28, %v813_v48 }
 0x17f   :  { %v469_v24 = vpop.f32.mrf.mxu0 }
 0x180   :  { %v1011_v3 = vmax.f32 %v963_v25, %v979_v35  ;;  %v769_v30 = vadd.f32 %v768_v49, %v560_v31  ;;  %v817_v14 = vmax.f32 %v688_v13, 0.0  ;;  %v470_v52 = vadd.f32 %v1583_v55, %v469_v24 }
 0x181   :  { %v948_v49 = vadd.f32 %v1829_v4, %v880_v37  ;;  %v798_v35 = vmax.f32 %v1759_v17, 0.0  ;;  %v949_v31 = vadd.f32 %v1829_v4, %v881_v59  ;;  %v933_v17 = vadd.f32 %v1829_v4, %v865_v32 }
 0x182   :  { %v1027_v26 = vmax.f32 %v995_v38, %v1011_v3  ;;  %v844_v10 = vmax.f32 %v769_v30, 0.0  ;;  %v885_v20 = vmul.f32 %v1818_v28, %v817_v14  ;;  %v679_v21 = vadd.f32 %v1964_v15, %v470_v52 }
 0x183   :  { %v996_v36 = vmax.f32 %v932_v39, %v948_v49  ;;  %v970_v15 = vadd.f32 %v1829_v4, %v902_v40  ;;  %v965_v24 = vadd.f32 %v1829_v4, %v897_v33  ;;  %v835_v37 = vmax.f32 %v1868_v18, 0.0  ;;  %v2177_v40 = vld [vmem:[#allocation5_spill] sm:$0xff] }
 0x184   :  { %1043 = vst [vmem:[%s2167_s5 + $0x48] sm:$0xff] %v1027_v26  ;;  %v912_v61 = vmul.f32 %v1818_v28, %v844_v10  ;;  %v2048_v51 = vadd.f32 %v1829_v4, %v885_v20  ;;  %v814_v13 = vmax.f32 %v679_v21, 0.0  ;;  %v830_v14 = vmax.f32 %v1792_v2, 0.0 }
 0x185   :  { %v562_v16 = vpop.f32.mrf.mxu2  ;;  %v690_v11 = vpop.f32.mrf.mxu1  ;;  %v866_v20 = vmul.f32 %v1818_v28, %v798_v35  ;;  %v997_v47 = vmax.f32 %v933_v17, %v949_v31  ;;  %v2176_v18 = vmax.f32 %v1837_v22, %v1840_v1  ;;  %v1157_v22 = vld [vmem:[%s2164_s2] ss:$0 sm:$0xff]  ;;  %v833_v59 = vmax.f32 %v2177_v40, 0.0 }
 0x186   :  { %v980_v5 = vadd.f32 %v1829_v4, %v912_v61  ;;  %v1001_v0 = vmax.f32 %v2040_v45, %v2048_v51  ;;  %v563_v63 = vadd.f32 %v1583_v55, %v562_v16  ;;  %v691_v54 = vadd.f32 %v690_v11, %v482_v42  ;;  %v2058_v44 = vpop.f32.mrf.mxu3 }
 0x187   :  { %v472_v29 = vpop.f32.mrf.mxu0  ;;  %v882_v42 = vmul.f32 %v1818_v28, %v814_v13  ;;  %v903_v61 = vmul.f32 %v1818_v28, %v835_v37  ;;  %v898_v56 = vmul.f32 %v1818_v28, %v830_v14  ;;  %v575_v1 = vadd.f32 %v1157_v22, %v1525_v34 }
 0x188   :  { %v1012_v50 = vmax.f32 %v964_v57, %v980_v5  ;;  %v772_v7 = vadd.f32 %v2006_v23, %v563_v63  ;;  %v818_v43 = vmax.f32 %v691_v54, 0.0  ;;  %v473_v38 = vadd.f32 %v1583_v55, %v472_v29 }
 0x189   :  { %v934_v16 = vadd.f32 %v1829_v4, %v866_v20  ;;  %v799_v54 = vmax.f32 %v1779_v46, 0.0  ;;  %v971_v34 = vadd.f32 %v1829_v4, %v903_v61 }
 0x18a   :  { %v1028_v53 = vmax.f32 %v996_v36, %v1012_v50  ;;  %v845_v58 = vmax.f32 %v772_v7, 0.0  ;;  %v886_v25 = vmul.f32 %v1818_v28, %v818_v43  ;;  %v682_v2 = vadd.f32 %v1982_v60, %v473_v38  ;;  %v2178_v50 = vld [vmem:[#allocation3_spill] sm:$0xff] }
 0x18b   :  { %v950_v60 = vadd.f32 %v1829_v4, %v882_v42  ;;  %v966_v36 = vadd.f32 %v1829_v4, %v898_v56  ;;  %v831_v7 = vmax.f32 %v2178_v50, 0.0  ;;  %v2180_v38 = vld [vmem:[#allocation7_spill] sm:$0xff] }
 0x18c   :  { %1044 = vst [vmem:[%s2167_s5 + $0x50] sm:$0xff] %v1028_v53  ;;  %v913_v23 = vmul.f32 %v1818_v28, %v845_v58  ;;  %v954_v8 = vadd.f32 %v1829_v4, %v886_v25  ;;  %v815_v11 = vmax.f32 %v682_v2, 0.0 }
 0x18d   :  { %v565_v3 = vpop.f32.mrf.mxu2  ;;  %v693_v30 = vpop.f32.mrf.mxu1  ;;  %v998_v53 = vmax.f32 %v934_v16, %v950_v60  ;;  %v899_v37 = vmul.f32 %v1818_v28, %v831_v7 }
 0x18e   :  { %v981_v6 = vadd.f32 %v1829_v4, %v913_v23  ;;  %v1002_v41 = vmax.f32 %v954_v8, %v970_v15  ;;  %v566_v26 = vadd.f32 %v1583_v55, %v565_v3  ;;  %v2084_v10 = vpop.f32.mrf.mxu3  ;;  %v694_v12 = vadd.f32 %v693_v30, %v485_v19  ;;  %v2179_v8 = vld [vmem:[#allocation6_spill] sm:$0xff] }
 0x18f   :  { %v475_v39 = vpop.f32.mrf.mxu0  ;;  %v883_v46 = vmul.f32 %v1818_v28, %v815_v11  ;;  %v867_v15 = vmul.f32 %v1818_v28, %v799_v54  ;;  %v901_v23 = vmul.f32 %v1818_v28, %v833_v59  ;;  %v2181_v19 = vmax.f32 %v2179_v8, %v2180_v38 }
 0x190   :  { %v1013_v48 = vmax.f32 %v965_v24, %v981_v6  ;;  %v1018_v52 = vmax.f32 %v2176_v18, %v1002_v41  ;;  %v775_v49 = vadd.f32 %v2027_v62, %v566_v26  ;;  %v819_v55 = vmax.f32 %v694_v12, 0.0  ;;  %v2182_v26 = vld [vmem:[#allocation2_spill] sm:$0xff]  ;;  %v2183_v18 = vld [vmem:[#allocation4_spill] sm:$0xff] }
 0x191   :  { %v476_v63 = vadd.f32 %v1157_v22, %v475_v39  ;;  %v935_v41 = vadd.f32 %v1829_v4, %v867_v15  ;;  %v800_v20 = vmax.f32 %v2182_v26, 0.0 }
 0x192   :  { %v1029_v57 = vmax.f32 %v997_v47, %v1013_v48  ;;  %1034 = vst [vmem:[%s2167_s5] sm:$0xff] %v1018_v52  ;;  %v846_v9 = vmax.f32 %v775_v49, 0.0  ;;  %v887_v62 = vmul.f32 %v1818_v28, %v819_v55  ;;  %v969_v47 = vadd.f32 %v1829_v4, %v901_v23 }
 0x193   :  { %v685_v31 = vadd.f32 %v2000_v27, %v476_v63  ;;  %v967_v48 = vadd.f32 %v1829_v4, %v899_v37  ;;  %v832_v52 = vmax.f32 %v2183_v18, 0.0 }
 0x194   :  { %1045 = vst [vmem:[%s2167_s5 + $0x58] sm:$0xff] %v1029_v57  ;;  %v914_v5 = vmul.f32 %v1818_v28, %v846_v9  ;;  %v955_v21 = vadd.f32 %v1829_v4, %v887_v62 }
 0x195   :  { %v568_v29 = vpop.f32.mrf.mxu2  ;;  %v816_v14 = vmax.f32 %v685_v31, 0.0  ;;  %v900_v60 = vmul.f32 %v1818_v28, %v832_v52 }
 0x196   :  { %v982_v43 = vadd.f32 %v1829_v4, %v914_v5  ;;  %v569_v32 = vadd.f32 %v1157_v22, %v568_v29  ;;  %v783_v33 = vpop.f32.mrf.mxu3  ;;  %v1003_v58 = vmax.f32 %v955_v21, %v971_v34 }
 0x197   :  { %v784_v25 = vadd.f32 %v783_v33, %v575_v1  ;;  %v884_v39 = vmul.f32 %v1818_v28, %v816_v14  ;;  %v868_v1 = vmul.f32 %v1818_v28, %v800_v20  ;;  %v968_v51 = vadd.f32 %v1829_v4, %v900_v60 }
 0x198   :  { %v1014_v35 = vmax.f32 %v966_v36, %v982_v43  ;;  %v778_v13 = vadd.f32 %v2058_v44, %v569_v32  ;;  %v1019_v17 = vmax.f32 %v2181_v19, %v1003_v58  ;;  %v951_v44 = vadd.f32 %v1829_v4, %v883_v46 }
 0x199   :  { %v849_v24 = vmax.f32 %v784_v25, 0.0  ;;  %v936_v45 = vadd.f32 %v1829_v4, %v868_v1 }
 0x19a   :  { %v1030_v3 = vmax.f32 %v998_v53, %v1014_v35  ;;  %v847_v30 = vmax.f32 %v778_v13, 0.0  ;;  %1035 = vst [vmem:[%s2167_s5 + $0x8] sm:$0xff] %v1019_v17  ;;  %v999_v55 = vmax.f32 %v935_v41, %v951_v44 }
 0x19b   :  { %v917_v27 = vmul.f32 %v1818_v28, %v849_v24 }
 0x19c   :  { %1046 = vst [vmem:[%s2167_s5 + $0x60] sm:$0xff] %v1030_v3  ;;  %v915_v6 = vmul.f32 %v1818_v28, %v847_v30 }
 0x19d   :  { %v985_v42 = vadd.f32 %v1829_v4, %v917_v27  ;;  %v571_v12 = vpop.f32.mrf.mxu2 }
 0x19e   :  { %v983_v2 = vadd.f32 %v1829_v4, %v915_v6  ;;  %v572_v49 = vadd.f32 %v1157_v22, %v571_v12  ;;  %v952_v22 = vadd.f32 %v1829_v4, %v884_v39 }
 0x19f   :  { %v1017_v61 = vmax.f32 %v969_v47, %v985_v42 }
 0x1a0   :  { %v1015_v56 = vmax.f32 %v967_v48, %v983_v2  ;;  %v781_v57 = vadd.f32 %v2084_v10, %v572_v49  ;;  %v1000_v11 = vmax.f32 %v936_v45, %v952_v22 }
 0x1a1   :  { %v1033_v9 = vmax.f32 %v1001_v0, %v1017_v61 }
 0x1a2   :  { %v1031_v62 = vmax.f32 %v999_v55, %v1015_v56  ;;  %v848_v16 = vmax.f32 %v781_v57, 0.0 }
 0x1a3   :  { %1049 = vst [vmem:[%s2167_s5 + $0x78] sm:$0xff] %v1033_v9 }
 0x1a4   :  { %1047 = vst [vmem:[%s2167_s5 + $0x68] sm:$0xff] %v1031_v62  ;;  %v916_v10 = vmul.f32 %v1818_v28, %v848_v16 }
 0x1a6   :  { %v984_v0 = vadd.f32 %v1829_v4, %v916_v10 }
 0x1a8   :  { %v1016_v5 = vmax.f32 %v968_v51, %v984_v0 }
 0x1aa   :  { %v1032_v63 = vmax.f32 %v1000_v11, %v1016_v5 }
 0x1ac   :  { %1048 = vst [vmem:[%s2167_s5 + $0x70] sm:$0xff] %v1032_v63 }

// kernel: smallcnn_multitask_forward.5
= control target key start
LH: loop header
LB: loop body
LE: loop exit
PB: predicated region body
PF: predicated region fallthrough
CT: control target
= control target key end

     0   :  { %s620_s0 = inlined_call_operand.vmem [shape: f32[2,768], index: 0, kind: input, shape index: {}]   ;;  %s621_s1 = inlined_call_operand.vmem [shape: f32[768,128], index: 1, kind: input, shape index: {}]   ;;  %s622_s2 = inlined_call_operand.vmem [shape: f32[1,128], index: 2, kind: input, shape index: {}]   ;;  %s623_s3 = inlined_call_operand.hbm [shape: f32[2,128], index: 3, kind: output, shape index: {}]  }
   0x1   :  { %v32_v0 = vld [vmem:[%s621_s1 + $0x78] sm:$0xff]  ;;  %v31_v1 = vld [vmem:[%s621_s1 + $0x70] sm:$0xff]  ;;  %v30_v4 = vld [vmem:[%s621_s1 + $0x68] sm:$0xff] }
   0x2   :  { %v48_v2 = vld [vmem:[%s621_s1 + $0xf8] sm:$0xff]  ;;  %134 = vmatpush.msra.mxu0 %v32_v0  ;;  %v47_v3 = vld [vmem:[%s621_s1 + $0xf0] sm:$0xff]  ;;  %v46_v5 = vld [vmem:[%s621_s1 + $0xe8] sm:$0xff] }
   0x3   :  { %154 = vmatpush.msra.mxu1 %v48_v2  ;;  %v29_v6 = vld [vmem:[%s621_s1 + $0x60] sm:$0xff]  ;;  %v28_v8 = vld [vmem:[%s621_s1 + $0x58] sm:$0xff]  ;;  %v27_v10 = vld [vmem:[%s621_s1 + $0x50] sm:$0xff] }
   0x4   :  { %135 = vmatpush.msra.mxu0 %v31_v1  ;;  %v45_v7 = vld [vmem:[%s621_s1 + $0xe0] sm:$0xff]  ;;  %v44_v9 = vld [vmem:[%s621_s1 + $0xd8] sm:$0xff]  ;;  %v43_v12 = vld [vmem:[%s621_s1 + $0xd0] sm:$0xff] }
   0x5   :  { %155 = vmatpush.msra.mxu1 %v47_v3  ;;  %v64_v11 = vld [vmem:[%s621_s1 + $0x178] sm:$0xff]  ;;  %v63_v13 = vld [vmem:[%s621_s1 + $0x170] sm:$0xff]  ;;  %v62_v15 = vld [vmem:[%s621_s1 + $0x168] sm:$0xff] }
   0x6   :  { %136 = vmatpush.msra.mxu0 %v30_v4  ;;  %174 = vmatpush.msra.mxu2 %v64_v11  ;;  %v80_v14 = vld [vmem:[%s621_s1 + $0x1f8] sm:$0xff]  ;;  %v79_v16 = vld [vmem:[%s621_s1 + $0x1f0] sm:$0xff]  ;;  %v26_v17 = vld [vmem:[%s621_s1 + $0x48] sm:$0xff] }
   0x7   :  { %156 = vmatpush.msra.mxu1 %v46_v5  ;;  %v42_v18 = vld [vmem:[%s621_s1 + $0xc8] sm:$0xff]  ;;  %194 = vmatpush.msra.mxu3 %v80_v14  ;;  %v61_v19 = vld [vmem:[%s621_s1 + $0x160] sm:$0xff]  ;;  %v60_v23 = vld [vmem:[%s621_s1 + $0x158] sm:$0xff] }
   0x8   :  { %137 = vmatpush.msra.mxu0 %v29_v6  ;;  %175 = vmatpush.msra.mxu2 %v63_v13  ;;  %v78_v20 = vld [vmem:[%s621_s1 + $0x1e8] sm:$0xff]  ;;  %v25_v21 = vld [vmem:[%s621_s1 + $0x40] sm:$0xff]  ;;  %v24_v25 = vld [vmem:[%s621_s1 + $0x38] sm:$0xff] }
   0x9   :  { %157 = vmatpush.msra.mxu1 %v45_v7  ;;  %v41_v22 = vld [vmem:[%s621_s1 + $0xc0] sm:$0xff]  ;;  %195 = vmatpush.msra.mxu3 %v79_v16  ;;  %v40_v26 = vld [vmem:[%s621_s1 + $0xb8] sm:$0xff]  ;;  %v59_v27 = vld [vmem:[%s621_s1 + $0x150] sm:$0xff] }
   0xa   :  { %138 = vmatpush.msra.mxu0 %v28_v8  ;;  %176 = vmatpush.msra.mxu2 %v62_v15  ;;  %v77_v24 = vld [vmem:[%s621_s1 + $0x1e0] sm:$0xff]  ;;  %v76_v28 = vld [vmem:[%s621_s1 + $0x1d8] sm:$0xff]  ;;  %v23_v29 = vld [vmem:[%s621_s1 + $0x30] sm:$0xff] }
   0xb   :  { %158 = vmatpush.msra.mxu1 %v44_v9  ;;  %196 = vmatpush.msra.mxu3 %v78_v20  ;;  %v39_v30 = vld [vmem:[%s621_s1 + $0xb0] sm:$0xff]  ;;  %v58_v31 = vld [vmem:[%s621_s1 + $0x148] sm:$0xff]  ;;  %v57_v35 = vld [vmem:[%s621_s1 + $0x140] sm:$0xff] }
   0xc   :  { %139 = vmatpush.msra.mxu0 %v27_v10  ;;  %177 = vmatpush.msra.mxu2 %v61_v19  ;;  %v75_v32 = vld [vmem:[%s621_s1 + $0x1d0] sm:$0xff]  ;;  %v22_v33 = vld [vmem:[%s621_s1 + $0x28] sm:$0xff]  ;;  %v21_v37 = vld [vmem:[%s621_s1 + $0x20] sm:$0xff] }
   0xd   :  { %159 = vmatpush.msra.mxu1 %v43_v12  ;;  %197 = vmatpush.msra.mxu3 %v77_v24  ;;  %v38_v34 = vld [vmem:[%s621_s1 + $0xa8] sm:$0xff]  ;;  %v37_v38 = vld [vmem:[%s621_s1 + $0xa0] sm:$0xff]  ;;  %v56_v39 = vld [vmem:[%s621_s1 + $0x138] sm:$0xff] }
   0xe   :  { %140 = vmatpush.msra.mxu0 %v26_v17  ;;  %178 = vmatpush.msra.mxu2 %v60_v23  ;;  %v74_v36 = vld [vmem:[%s621_s1 + $0x1c8] sm:$0xff]  ;;  %v73_v40 = vld [vmem:[%s621_s1 + $0x1c0] sm:$0xff]  ;;  %v20_v41 = vld [vmem:[%s621_s1 + $0x18] sm:$0xff] }
   0xf   :  { %160 = vmatpush.msra.mxu1 %v42_v18  ;;  %198 = vmatpush.msra.mxu3 %v76_v28  ;;  %v36_v42 = vld [vmem:[%s621_s1 + $0x98] sm:$0xff]  ;;  %v55_v43 = vld [vmem:[%s621_s1 + $0x130] sm:$0xff]  ;;  %v54_v47 = vld [vmem:[%s621_s1 + $0x128] sm:$0xff] }
  0x10   :  { %141 = vmatpush.msra.mxu0 %v25_v21  ;;  %179 = vmatpush.msra.mxu2 %v59_v27  ;;  %v72_v44 = vld [vmem:[%s621_s1 + $0x1b8] sm:$0xff]  ;;  %v19_v45 = vld [vmem:[%s621_s1 + $0x10] sm:$0xff]  ;;  %v18_v49 = vld [vmem:[%s621_s1 + $0x8] sm:$0xff] }
  0x11   :  { %161 = vmatpush.msra.mxu1 %v41_v22  ;;  %199 = vmatpush.msra.mxu3 %v75_v32  ;;  %v35_v46 = vld [vmem:[%s621_s1 + $0x90] sm:$0xff]  ;;  %v34_v50 = vld [vmem:[%s621_s1 + $0x88] sm:$0xff]  ;;  %v53_v51 = vld [vmem:[%s621_s1 + $0x120] sm:$0xff] }
  0x12   :  { %142 = vmatpush.msra.mxu0 %v24_v25  ;;  %180 = vmatpush.msra.mxu2 %v58_v31  ;;  %v71_v48 = vld [vmem:[%s621_s1 + $0x1b0] sm:$0xff]  ;;  %v70_v52 = vld [vmem:[%s621_s1 + $0x1a8] sm:$0xff]  ;;  %v17_v53 = vld [vmem:[%s621_s1] sm:$0xff] }
  0x13   :  { %162 = vmatpush.msra.mxu1 %v40_v26  ;;  %200 = vmatpush.msra.mxu3 %v74_v36  ;;  %v33_v54 = vld [vmem:[%s621_s1 + $0x80] sm:$0xff]  ;;  %v96_v56 = vld [vmem:[%s621_s1 + $0x278] sm:$0xff]  ;;  %v95_v60 = vld [vmem:[%s621_s1 + $0x270] sm:$0xff] }
  0x14   :  { %143 = vmatpush.msra.mxu0 %v23_v29  ;;  %181 = vmatpush.msra.mxu2 %v57_v35  ;;  %v15_v55 = vld [vmem:[%s620_s0] sm:$0xff]  ;;  %v112_v57 = vld [vmem:[%s621_s1 + $0x2f8] sm:$0xff]  ;;  %v111_v61 = vld [vmem:[%s621_s1 + $0x2f0] sm:$0xff] }
  0x15   :  { %163 = vmatpush.msra.mxu1 %v39_v30  ;;  %201 = vmatpush.msra.mxu3 %v73_v40  ;;  %119 = vst [vmem:[#allocation1] ss:$4 sm:$0xff] %v15_v55  ;;  %v52_v58 = vld [vmem:[%s621_s1 + $0x118] sm:$0xff]  ;;  %v69_v59 = vld [vmem:[%s621_s1 + $0x1a0] sm:$0xff]  ;;  %v51_v62 = vld [vmem:[%s621_s1 + $0x110] sm:$0xff] }
  0x16   :  { %144 = vmatpush.msra.mxu0 %v22_v33  ;;  %182 = vmatpush.msra.mxu2 %v56_v39  ;;  %v68_v63 = vld [vmem:[%s621_s1 + $0x198] sm:$0xff]  ;;  %v16_v0 = vld [vmem:[%s620_s0 + $0x8] sm:$0xf] }
  0x17   :  { %164 = vmatpush.msra.mxu1 %v38_v34  ;;  %202 = vmatpush.msra.mxu3 %v72_v44  ;;  %v94_v1 = vld [vmem:[%s621_s1 + $0x268] sm:$0xff]  ;;  %121 = vst [vmem:[#allocation1 + $0x20] ss:$4 sm:$0xff] %v16_v0 }
  0x18   :  { %145 = vmatpush.msra.mxu0 %v21_v37  ;;  %183 = vmatpush.msra.mxu2 %v55_v43  ;;  %v110_v2 = vld [vmem:[%s621_s1 + $0x2e8] sm:$0xff] }
  0x19   :  { %165 = vmatpush.msra.mxu1 %v37_v38  ;;  %203 = vmatpush.msra.mxu3 %v71_v48 }
  0x1a   :  { %146 = vmatpush.msra.mxu0 %v20_v41  ;;  %184 = vmatpush.msra.mxu2 %v54_v47 }
  0x1b   :  { %166 = vmatpush.msra.mxu1 %v36_v42  ;;  %204 = vmatpush.msra.mxu3 %v70_v52 }
  0x1c   :  { %147 = vmatpush.msra.mxu0 %v19_v45  ;;  %185 = vmatpush.msra.mxu2 %v53_v51 }
  0x1d   :  { %167 = vmatpush.msra.mxu1 %v35_v46  ;;  %205 = vmatpush.msra.mxu3 %v69_v59 }
  0x1e   :  { %148 = vmatpush.msra.mxu0 %v18_v49  ;;  %186 = vmatpush.msra.mxu2 %v52_v58 }
  0x1f   :  { %168 = vmatpush.msra.mxu1 %v34_v50 }
  0x20   :  { %149 = vmatpush.msra.mxu0 %v17_v53 }
  0x21   :  { %169 = vmatpush.msra.mxu1 %v33_v54 }
  0x22   :  { %214 = vmatpush.msrb.mxu0 %v96_v56 }
  0x23   :  { %234 = vmatpush.msrb.mxu1 %v112_v57 }
  0x24   :  { %8 = vsyncpa [#allocation3], 0  ;;  %215 = vmatpush.msrb.mxu0 %v95_v60  ;;  %v50_v3 = vld [vmem:[%s621_s1 + $0x108] sm:$0xff]  ;;  %v67_v4 = vld [vmem:[%s621_s1 + $0x190] sm:$0xff]  ;;  %187 = vmatpush.msra.mxu2 %v51_v62  ;;  %s262_s21 = sshll.u32 %s623_s3, 4  ;;  %s263_s21 = int_to_ptr.hbm [resolvable:$true] %s262_s21 }
  0x25   :  { %235 = vmatpush.msrb.mxu1 %v111_v61  ;;  %v93_v5 = vld [vmem:[%s621_s1 + $0x260] sm:$0xff]  ;;  %206 = vmatpush.msra.mxu3 %v68_v63  ;;  %v66_v8 = vld [vmem:[%s621_s1 + $0x188] sm:$0xff]  ;;  %v92_v9 = vld [vmem:[%s621_s1 + $0x258] sm:$0xff] }
  0x26   :  { %v109_v6 = vld [vmem:[%s621_s1 + $0x2e0] sm:$0xff]  ;;  %216 = vmatpush.msrb.mxu0 %v94_v1  ;;  %v108_v10 = vld [vmem:[%s621_s1 + $0x2d8] sm:$0xff]  ;;  %188 = vmatpush.msra.mxu2 %v50_v3  ;;  %v124_v11 = vld.sshfl [vmem:[#allocation1 + $0x10] sm:$0xff pattern:$0x73625140] }
  0x27   :  { %236 = vmatpush.msrb.mxu1 %v110_v2  ;;  %v49_v7 = vld [vmem:[%s621_s1 + $0x100] sm:$0xff]  ;;  %207 = vmatpush.msra.mxu3 %v67_v4  ;;  %v91_v13 = vld [vmem:[%s621_s1 + $0x250] sm:$0xff]  ;;  %v125_v16 = vld.sshfl [vmem:[#allocation1 + $0x18] sm:$0xff pattern:$0x73625140] }
  0x28   :  { %217 = vmatpush.msrb.mxu0 %v93_v5  ;;  %v65_v12 = vld [vmem:[%s621_s1 + $0x180] sm:$0xff]  ;;  %v107_v14 = vld [vmem:[%s621_s1 + $0x2d0] sm:$0xff]  ;;  %189 = vmatpush.msra.mxu2 %v49_v7  ;;  %v90_v17 = vld [vmem:[%s621_s1 + $0x248] sm:$0xff] }
  0x29   :  { %237 = vmatpush.msrb.mxu1 %v109_v6  ;;  %208 = vmatpush.msra.mxu3 %v66_v8  ;;  %v122_v15 = vld.sshfl [vmem:[#allocation1] sm:$0xff pattern:$0x73625140]  ;;  %v106_v18 = vld [vmem:[%s621_s1 + $0x2c8] sm:$0xff]  ;;  %v88_v22 = vld [vmem:[%s621_s1 + $0x238] sm:$0xff] }
  0x2a   :  { %218 = vmatpush.msrb.mxu0 %v92_v9  ;;  %190 = vmatmul.f32.vlgmr.msra.gmra.mxu2 %v124_v11  ;;  %v123_v19 = vld.sshfl [vmem:[#allocation1 + $0x8] sm:$0xff pattern:$0x73625140]  ;;  %v89_v20 = vld [vmem:[%s621_s1 + $0x240] sm:$0xff]  ;;  %v104_v23 = vld [vmem:[%s621_s1 + $0x2b8] sm:$0xff] }
  0x2b   :  { %238 = vmatpush.msrb.mxu1 %v108_v10  ;;  %209 = vmatpush.msra.mxu3 %v65_v12  ;;  %v105_v21 = vld [vmem:[%s621_s1 + $0x2c0] sm:$0xff]  ;;  %v87_v24 = vld [vmem:[%s621_s1 + $0x230] sm:$0xff]  ;;  %v86_v26 = vld [vmem:[%s621_s1 + $0x228] sm:$0xff] }
  0x2c   :  { %219 = vmatpush.msrb.mxu0 %v91_v13  ;;  %210 = vmatmul.f32.vlgmr.msra.gmra.mxu3 %v125_v16  ;;  %v103_v25 = vld [vmem:[%s621_s1 + $0x2b0] sm:$0xff]  ;;  %v102_v27 = vld [vmem:[%s621_s1 + $0x2a8] sm:$0xff]  ;;  %v85_v28 = vld [vmem:[%s621_s1 + $0x220] sm:$0xff] }
  0x2d   :  { %239 = vmatpush.msrb.mxu1 %v107_v14  ;;  %150 = vmatmul.f32.vlgmr.msra.gmra.mxu0 %v122_v15  ;;  %v101_v29 = vld [vmem:[%s621_s1 + $0x2a0] sm:$0xff]  ;;  %v84_v30 = vld [vmem:[%s621_s1 + $0x218] sm:$0xff]  ;;  %v83_v32 = vld [vmem:[%s621_s1 + $0x210] sm:$0xff] }
  0x2e   :  { %220 = vmatpush.msrb.mxu0 %v90_v17  ;;  %170 = vmatmul.f32.vlgmr.msra.gmra.mxu1 %v123_v19  ;;  %v100_v31 = vld [vmem:[%s621_s1 + $0x298] sm:$0xff]  ;;  %v99_v33 = vld [vmem:[%s621_s1 + $0x290] sm:$0xff]  ;;  %v82_v34 = vld [vmem:[%s621_s1 + $0x208] sm:$0xff] }
  0x2f   :  { %240 = vmatpush.msrb.mxu1 %v106_v18  ;;  %v98_v35 = vld [vmem:[%s621_s1 + $0x288] sm:$0xff]  ;;  %v81_v36 = vld [vmem:[%s621_s1 + $0x200] sm:$0xff] }
  0x30   :  { %221 = vmatpush.msrb.mxu0 %v89_v20  ;;  %v97_v37 = vld [vmem:[%s621_s1 + $0x280] sm:$0xff]  ;;  %v127_v39 = vld.sshfl [vmem:[#allocation1 + $0x28] sm:$0xff pattern:$0x73625140]  ;;  %s299_s1 = smov [#allocation2]  }
  0x31   :  { %241 = vmatpush.msrb.mxu1 %v105_v21  ;;  %v126_v38 = vld.sshfl [vmem:[#allocation1 + $0x20] sm:$0xff pattern:$0x73625140]  ;;  %s260_s18 = sshll.u32 %s299_s1, 4  ;;  %s261_s18 = int_to_ptr.vmem [resolvable:$true] %s260_s18 }
  0x32   :  { %222 = vmatpush.msrb.mxu0 %v88_v22  ;;  %v272_v40 = vld [vmem:[%s622_s2] ss:$0 sm:$0xff] }
  0x33   :  { %242 = vmatpush.msrb.mxu1 %v104_v23 }
  0x34   :  { %223 = vmatpush.msrb.mxu0 %v87_v24 }
  0x35   :  { %243 = vmatpush.msrb.mxu1 %v103_v25 }
  0x36   :  { %224 = vmatpush.msrb.mxu0 %v86_v26 }
  0x37   :  { %244 = vmatpush.msrb.mxu1 %v102_v27 }
  0x38   :  { %225 = vmatpush.msrb.mxu0 %v85_v28 }
  0x39   :  { %245 = vmatpush.msrb.mxu1 %v101_v29 }
  0x3a   :  { %226 = vmatpush.msrb.mxu0 %v84_v30 }
  0x3b   :  { %246 = vmatpush.msrb.mxu1 %v100_v31 }
  0x3c   :  { %227 = vmatpush.msrb.mxu0 %v83_v32 }
  0x3d   :  { %247 = vmatpush.msrb.mxu1 %v99_v33 }
  0x3e   :  { %228 = vmatpush.msrb.mxu0 %v82_v34 }
  0x3f   :  { %248 = vmatpush.msrb.mxu1 %v98_v35 }
  0x40   :  { %229 = vmatpush.msrb.mxu0 %v81_v36 }
  0x41   :  { %249 = vmatpush.msrb.mxu1 %v97_v37  ;;  %230 = vmatmul.f32.vlgmr.msrb.gmra.mxu0 %v126_v38 }
  0x42   :  { %250 = vmatmul.f32.vlgmr.msrb.gmra.mxu1 %v127_v39 }
  0xaa   :  { %v151_v41 = vpop.f32.mrf.mxu0 }
  0xab   :  { %v152_v42 = vadd.f32 %v272_v40, %v151_v41  ;;  %v171_v43 = vpop.f32.mrf.mxu1 }
  0xad   :  { %v172_v44 = vadd.f32 %v171_v43, %v152_v42  ;;  %v191_v45 = vpop.f32.mrf.mxu2 }
  0xaf   :  { %v192_v46 = vadd.f32 %v191_v45, %v172_v44  ;;  %v211_v47 = vpop.f32.mrf.mxu3 }
  0xb1   :  { %v212_v48 = vadd.f32 %v211_v47, %v192_v46 }
  0xbe   :  { %v231_v49 = vpop.f32.mrf.mxu0 }
  0xbf   :  { %v251_v50 = vpop.f32.mrf.mxu1  ;;  %v232_v51 = vadd.f32 %v231_v49, %v212_v48 }
  0xc1   :  { %v252_v52 = vadd.f32 %v251_v50, %v232_v51 }
  0xc3   :  { %254 = vst [vmem:[#allocation2] sm:$0x3] %v252_v52 }
  0xc4   :  { %265 = dma.vmem_to_hbm [thread:$0]  %s261_s18, 32, %s263_s21, [#allocation3]  }
  0xc5   :  { %297 = dma.done.wait [#allocation3], 32  }
  0xc6   :  { %298 = vsyncadd [#allocation3], 4294967264 }
  0xc7   :  { %270 = vsyncpa [#allocation3], 1 }

</bundles_post_ra>
